<compile_context>
chip_gen: v7x
topology: tpu7x:2x2x1
jax: 0.10.0
libtpu: 0.0.40
codegen_flags: <defaults>
</compile_context>

<pallas_src>
import functools

import jax
import jax.numpy as jnp
from jax.experimental import pallas as pl
from jax.experimental.pallas import tpu as pltpu


# (kernel, stride, out_channels) — static, NEVER placed in the jitted pytree.
CONV_DEFS = (
    (5, 2, 24),
    (5, 2, 36),
    (5, 2, 48),
    (3, 1, 64),
    (3, 1, 64),
)


def _mosaic_params(**kw):
    # jax>=0.5 names it CompilerParams; older releases used TPUCompilerParams.
    cp = getattr(pltpu, "CompilerParams", None) or getattr(pltpu, "TPUCompilerParams", None)
    return cp(**kw) if cp is not None else None


def _elu(x):
    # ELU(alpha=1): x if x > 0 else exp(x) - 1 (clamp exp arg for safety).
    return jnp.where(x > 0, x, jnp.exp(jnp.minimum(x, 0.0)) - 1.0)


# ---------------------------------------------------------------------------
# Pallas kernel 1: out = act(x @ w + b), M-tiled, bf16 operands, f32 accumulate
# ---------------------------------------------------------------------------
def _mm_bias_act_kernel(x_ref, w_ref, b_ref, o_ref, *, act):
    acc = jnp.dot(x_ref[...], w_ref[...], preferred_element_type=jnp.float32)
    acc = acc + b_ref[...]          # (1, N) broadcasts over rows, f32
    if act == "elu":
        acc = _elu(acc)
    o_ref[...] = acc.astype(o_ref.dtype)


def _pick_tile_m(M, cap=512):
    """Largest multiple-of-8 tile <= cap that divides M; else full M / cap."""
    if M <= cap:
        return M, 1                                   # full extent (exempt from 8-div rule)
    tm = next((t for t in range(cap, 7, -8) if M % t == 0), cap)
    return tm, -(-M // tm)                            # edge block (if any) is masked by Pallas


def matmul_bias_act(x, w, b, *, act="none", out_dtype=jnp.float32, tm_cap=512):
    """x: (M, K), w: (K, N), b: (1, N) -> act(x @ w + b), via a Pallas MXU kernel."""
    M, K = x.shape
    N = w.shape[1]
    tm, grid_m = _pick_tile_m(M, tm_cap)
    return pl.pallas_call(
        functools.partial(_mm_bias_act_kernel, act=act),
        out_shape=jax.ShapeDtypeStruct((M, N), out_dtype),
        grid=(grid_m,),
        in_specs=[
            pl.BlockSpec((tm, K), lambda i: (i, 0)),   # K, N full-extent (no host padding)
            pl.BlockSpec((K, N), lambda i: (0, 0)),
            pl.BlockSpec((1, N), lambda i: (0, 0)),
        ],
        out_specs=pl.BlockSpec((tm, N), lambda i: (i, 0)),
        compiler_params=_mosaic_params(dimension_semantics=("parallel",)),
    )(x, w, b)


# ---------------------------------------------------------------------------
# Pallas kernel 2: fused MLP head  (fc1 -> ELU -> fc2 -> ELU -> logits)
# ---------------------------------------------------------------------------
def _mlp_head_kernel(x_ref, w1_ref, b1_ref, w2_ref, b2_ref, w3_ref, b3_ref, o_ref):
    h = jnp.dot(x_ref[...], w1_ref[...], preferred_element_type=jnp.float32) + b1_ref[...]
    h = _elu(h)
    h = jnp.dot(h.astype(jnp.bfloat16), w2_ref[...],
                preferred_element_type=jnp.float32) + b2_ref[...]
    h = _elu(h)
    o_ref[...] = jnp.dot(h.astype(jnp.bfloat16), w3_ref[...],
                         preferred_element_type=jnp.float32) + b3_ref[...]


def mlp_head(h, params):
    B = h.shape[0]
    A = params["head_w"].shape[1]
    args = (h, params["fc1_w"], params["fc1_b"],
            params["fc2_w"], params["fc2_b"],
            params["head_w"], params["head_b"])
    return pl.pallas_call(
        _mlp_head_kernel,
        out_shape=jax.ShapeDtypeStruct((B, A), jnp.float32),
        grid=(1,),
        in_specs=[pl.BlockSpec(a.shape, lambda i: (0, 0)) for a in args],
        out_specs=pl.BlockSpec((B, A), lambda i: (0, 0)),
    )(*args)


# ---------------------------------------------------------------------------
# One-time parameter preparation (hoisted out of the jitted forward)
# ---------------------------------------------------------------------------
def _patch_perm(k, cin):
    """Row permutation mapping (kh, kw, cin)-flattened weights to the feature
    ordering produced by lax.conv_general_dilated_patches (determined
    empirically with an arange probe, so it is correct by construction)."""
    probe = jnp.arange(k * k * cin, dtype=jnp.float32).reshape(1, k, k, cin)
    feat = jax.lax.conv_general_dilated_patches(
        probe, filter_shape=(k, k), window_strides=(1, 1), padding="VALID",
        dimension_numbers=("NHWC", "HWIO", "NHWC"))
    return jnp.asarray(feat[0, 0, 0], dtype=jnp.int32)


def init_raw_params(key, in_channels, hidden_dim, num_actions):
    """Synthetic float32 params in (kh, kw, cin, cout) / (din, dout) layout.
    NOTE: real PyTorch conv weights are (cout, cin, kh, kw) and would need a
    transpose to (kh, kw, cin, cout) before prepare_params()."""
    raw = {"convs": []}
    cin = in_channels
    for (k, s, cout) in CONV_DEFS:
        key, kw_, kb_ = jax.random.split(key, 3)
        fan_in = k * k * cin
        w = jax.random.normal(kw_, (k, k, cin, cout), jnp.float32) / jnp.sqrt(fan_in)
        b = 0.01 * jax.random.normal(kb_, (cout,), jnp.float32)
        raw["convs"].append((w, b))
        cin = cout

    def linear(key, din, dout):
        k1, k2 = jax.random.split(key)
        w = jax.random.normal(k1, (din, dout), jnp.float32) / jnp.sqrt(din)
        b = 0.01 * jax.random.normal(k2, (dout,), jnp.float32)
        return w, b

    key, k1, k2, k3 = jax.random.split(key, 4)
    raw["fc1_w"], raw["fc1_b"] = linear(k1, 64, hidden_dim)
    raw["fc2_w"], raw["fc2_b"] = linear(k2, hidden_dim, hidden_dim)
    raw["head_w"], raw["head_b"] = linear(k3, hidden_dim, num_actions)
    return raw


def prepare_params(raw):
    """Kernel-ready layout: patch-ordered bf16 (K, N) conv matrices, bf16 FC
    weights, (1, N) f32 biases.  Done once; the forward never reshapes weights."""
    params = {"convs": []}
    for (w, b) in raw["convs"]:
        k, _, cin, cout = w.shape
        perm = _patch_perm(k, cin)
        w_mat = w.reshape(k * k * cin, cout)[perm].astype(jnp.bfloat16)
        params["convs"].append((w_mat, b.reshape(1, cout).astype(jnp.float32)))
    for name in ("fc1", "fc2", "head"):
        params[name + "_w"] = raw[name + "_w"].astype(jnp.bfloat16)
        params[name + "_b"] = raw[name + "_b"].reshape(1, -1).astype(jnp.float32)
    return params


# ---------------------------------------------------------------------------
# Forward pass (matches DiscretePolicyCNN.forward -> logits)
# ---------------------------------------------------------------------------
def discrete_policy_cnn_forward(params, state):
    # state: (B, 64, 64, C) — same tensor the PyTorch module receives *before*
    # its .permute(0, 3, 1, 2); we stay in NHWC (channels on the lane axis).
    x = state.astype(jnp.bfloat16)
    for (w_mat, b), (k, s, _) in zip(params["convs"], CONV_DEFS):
        B = x.shape[0]
        cout = w_mat.shape[1]
        patches = jax.lax.conv_general_dilated_patches(
            x, filter_shape=(k, k), window_strides=(s, s), padding="VALID",
            dimension_numbers=("NHWC", "HWIO", "NHWC"))
        _, OH, OW, K = patches.shape
        cols = patches.reshape(B * OH * OW, K)
        y = matmul_bias_act(cols, w_mat, b, act="elu", out_dtype=jnp.bfloat16)
        x = y.reshape(B, OH, OW, cout)
    h = x.reshape(x.shape[0], -1)              # final map is (B, 1, 1, 64) -> (B, 64)
    return mlp_head(h, params)                 # (B, num_actions) f32 logits
    # TODO(synk): sample() (argmax over logits) is host-side glue, not a kernel.


# ---------------------------------------------------------------------------
# Pure-XLA reference (same bf16-operand / f32-accumulate regime) for checking
# ---------------------------------------------------------------------------
def reference_forward(raw, state):
    x = state.astype(jnp.bfloat16)
    for (w, b), (k, s, _) in zip(raw["convs"], CONV_DEFS):
        y = jax.lax.conv_general_dilated(
            x, w.astype(jnp.bfloat16), window_strides=(s, s), padding="VALID",
            dimension_numbers=("NHWC", "HWIO", "NHWC"),
            preferred_element_type=jnp.float32) + b
        x = _elu(y).astype(jnp.bfloat16)
    h = x.reshape(x.shape[0], -1)
    h = _elu(jnp.dot(h, raw["fc1_w"].astype(jnp.bfloat16),
                     preferred_element_type=jnp.float32) + raw["fc1_b"]).astype(jnp.bfloat16)
    h = _elu(jnp.dot(h, raw["fc2_w"].astype(jnp.bfloat16),
                     preferred_element_type=jnp.float32) + raw["fc2_b"]).astype(jnp.bfloat16)
    return jnp.dot(h, raw["head_w"].astype(jnp.bfloat16),
                   preferred_element_type=jnp.float32) + raw["head_b"]


if __name__ == "__main__":
    B, H, W, C = 2, 64, 64, 4          # module asserts 64x64 spatial input
    HIDDEN, NUM_ACTIONS = 32, 8

    root = jax.random.PRNGKey(0)
    k_x, k_p = jax.random.split(root)
    state = jax.random.normal(k_x, (B, H, W, C), jnp.float32)
    raw = init_raw_params(k_p, C, HIDDEN, NUM_ACTIONS)
    params = prepare_params(raw)       # one-time weight layout / bf16 cast

    fwd = jax.jit(discrete_policy_cnn_forward)
    logits = fwd(params, state)
    jax.block_until_ready(logits)

    assert logits.shape == (B, NUM_ACTIONS)
    assert bool(jnp.all(jnp.isfinite(logits)))

    ref = reference_forward(raw, state)
    assert bool(jnp.allclose(logits, ref.astype(jnp.float32), rtol=1e-2, atol=1e-2)), (
        f"mismatch vs reference, max abs diff = {float(jnp.max(jnp.abs(logits - ref)))}")

    print("KERNEL_OK")
</pallas_src>

<mosaic_0001>
module attributes {stable_mosaic.version = 11 : i64} {
  func.func @_mm_bias_act_kernel(%arg0: i32, %arg1: memref<360x100xbf16, #tpu.memory_space<vmem>>, %arg2: memref<100x24xbf16, #tpu.memory_space<vmem>>, %arg3: memref<1x24xf32, #tpu.memory_space<vmem>>, %arg4: memref<360x24xbf16, #tpu.memory_space<vmem>>) attributes {dimension_semantics = [#tpu.dimension_semantics<parallel>], iteration_bounds = array<i64: 5>, scalar_prefetch = 0 : i64, scratch_operands = 0 : i64, tpu.core_type = #tpu.core_type<tc>, window_params = [{transform_indices = @transform_0, window_bounds = array<i64: 360, 100>}, {pipeline_mode = #tpu.pipeline_mode<synchronous>, transform_indices = @transform_1, window_bounds = array<i64: 100, 24>}, {pipeline_mode = #tpu.pipeline_mode<synchronous>, transform_indices = @transform_2, window_bounds = array<i64: 1, 24>}, {transform_indices = @transform_3, window_bounds = array<i64: 360, 24>}]} {
    %c0 = arith.constant 0 : index
    %c0_0 = arith.constant 0 : index
    %0 = vector.load %arg1[%c0, %c0_0] : memref<360x100xbf16, #tpu.memory_space<vmem>>, vector<360x100xbf16>
    %c0_1 = arith.constant 0 : index
    %c0_2 = arith.constant 0 : index
    %1 = vector.load %arg2[%c0_1, %c0_2] : memref<100x24xbf16, #tpu.memory_space<vmem>>, vector<100x24xbf16>
    %cst = arith.constant dense<0.000000e+00> : vector<360x24xf32>
    %2 = tpu.matmul %0, %1, %cst {dimension_numbers = #tpu.dot_dimension_numbers<[1], [0], [0], [1], [0, 0, 1, 1], [], []>} : vector<360x100xbf16>, vector<100x24xbf16>, vector<360x24xf32> -> vector<360x24xf32>
    %c0_3 = arith.constant 0 : index
    %c0_4 = arith.constant 0 : index
    %3 = vector.load %arg3[%c0_3, %c0_4] : memref<1x24xf32, #tpu.memory_space<vmem>>, vector<1x24xf32>
    %4 = vector.broadcast %3 : vector<1x24xf32> to vector<360x24xf32>
    %5 = arith.addf %2, %4 : vector<360x24xf32>
    %cst_5 = arith.constant 0.000000e+00 : f32
    %6 = vector.broadcast %cst_5 : f32 to vector<360x24xf32>
    %7 = arith.cmpf ogt, %5, %6 : vector<360x24xf32>
    %cst_6 = arith.constant 0.000000e+00 : f32
    %8 = vector.broadcast %cst_6 : f32 to vector<360x24xf32>
    %9 = arith.minimumf %5, %8 : vector<360x24xf32>
    %10 = math.exp %9 : vector<360x24xf32>
    %cst_7 = arith.constant 1.000000e+00 : f32
    %11 = vector.broadcast %cst_7 : f32 to vector<360x24xf32>
    %12 = arith.subf %10, %11 : vector<360x24xf32>
    %13 = arith.select %7, %5, %12 : vector<360x24xi1>, vector<360x24xf32>
    %14 = arith.truncf %13 : vector<360x24xf32> to vector<360x24xbf16>
    %c0_8 = arith.constant 0 : index
    %c0_9 = arith.constant 0 : index
    %15 = vector.load %arg4[%c0_8, %c0_9] : memref<360x24xbf16, #tpu.memory_space<vmem>>, vector<360x24xbf16>
    tpu.vector_store %arg4[%c0_8, %c0_9], %14 {strides = array<i32>} : memref<360x24xbf16, #tpu.memory_space<vmem>>, vector<360x24xbf16>,
    return
  }
  func.func @transform_0(%arg0: i32) -> (i32, i32) {
    %c0_i32 = arith.constant 0 : i32
    %c0_i32_0 = arith.constant 0 : i32
    return %arg0, %c0_i32 : i32, i32
  }
  func.func @transform_1(%arg0: i32) -> (i32, i32) {
    %c0_i32 = arith.constant 0 : i32
    %c0_i32_0 = arith.constant 0 : i32
    %c0_i32_1 = arith.constant 0 : i32
    return %c0_i32, %c0_i32_0 : i32, i32
  }
  func.func @transform_2(%arg0: i32) -> (i32, i32) {
    %c0_i32 = arith.constant 0 : i32
    %c0_i32_0 = arith.constant 0 : i32
    %c0_i32_1 = arith.constant 0 : i32
    return %c0_i32, %c0_i32_0 : i32, i32
  }
  func.func @transform_3(%arg0: i32) -> (i32, i32) {
    %c0_i32 = arith.constant 0 : i32
    %c0_i32_0 = arith.constant 0 : i32
    return %arg0, %c0_i32 : i32, i32
  }
}

module attributes {stable_mosaic.version = 11 : i64} {
  func.func @_mm_bias_act_kernel(%arg0: i32, %arg1: memref<338x600xbf16, #tpu.memory_space<vmem>>, %arg2: memref<600x36xbf16, #tpu.memory_space<vmem>>, %arg3: memref<1x36xf32, #tpu.memory_space<vmem>>, %arg4: memref<338x36xbf16, #tpu.memory_space<vmem>>) attributes {dimension_semantics = [#tpu.dimension_semantics<parallel>], iteration_bounds = array<i64: 1>, scalar_prefetch = 0 : i64, scratch_operands = 0 : i64, tpu.core_type = #tpu.core_type<tc>, window_params = [{transform_indices = @transform_0, window_bounds = array<i64: 338, 600>}, {pipeline_mode = #tpu.pipeline_mode<synchronous>, transform_indices = @transform_1, window_bounds = array<i64: 600, 36>}, {pipeline_mode = #tpu.pipeline_mode<synchronous>, transform_indices = @transform_2, window_bounds = array<i64: 1, 36>}, {transform_indices = @transform_3, window_bounds = array<i64: 338, 36>}]} {
    %c0 = arith.constant 0 : index
    %c0_0 = arith.constant 0 : index
    %0 = vector.load %arg1[%c0, %c0_0] : memref<338x600xbf16, #tpu.memory_space<vmem>>, vector<338x600xbf16>
    %c0_1 = arith.constant 0 : index
    %c0_2 = arith.constant 0 : index
    %1 = vector.load %arg2[%c0_1, %c0_2] : memref<600x36xbf16, #tpu.memory_space<vmem>>, vector<600x36xbf16>
    %cst = arith.constant dense<0.000000e+00> : vector<338x36xf32>
    %2 = tpu.matmul %0, %1, %cst {dimension_numbers = #tpu.dot_dimension_numbers<[1], [0], [0], [1], [0, 0, 1, 1], [], []>} : vector<338x600xbf16>, vector<600x36xbf16>, vector<338x36xf32> -> vector<338x36xf32>
    %c0_3 = arith.constant 0 : index
    %c0_4 = arith.constant 0 : index
    %3 = vector.load %arg3[%c0_3, %c0_4] : memref<1x36xf32, #tpu.memory_space<vmem>>, vector<1x36xf32>
    %4 = vector.broadcast %3 : vector<1x36xf32> to vector<338x36xf32>
    %5 = arith.addf %2, %4 : vector<338x36xf32>
    %cst_5 = arith.constant 0.000000e+00 : f32
    %6 = vector.broadcast %cst_5 : f32 to vector<338x36xf32>
    %7 = arith.cmpf ogt, %5, %6 : vector<338x36xf32>
    %cst_6 = arith.constant 0.000000e+00 : f32
    %8 = vector.broadcast %cst_6 : f32 to vector<338x36xf32>
    %9 = arith.minimumf %5, %8 : vector<338x36xf32>
    %10 = math.exp %9 : vector<338x36xf32>
    %cst_7 = arith.constant 1.000000e+00 : f32
    %11 = vector.broadcast %cst_7 : f32 to vector<338x36xf32>
    %12 = arith.subf %10, %11 : vector<338x36xf32>
    %13 = arith.select %7, %5, %12 : vector<338x36xi1>, vector<338x36xf32>
    %14 = arith.truncf %13 : vector<338x36xf32> to vector<338x36xbf16>
    %c0_8 = arith.constant 0 : index
    %c0_9 = arith.constant 0 : index
    %15 = vector.load %arg4[%c0_8, %c0_9] : memref<338x36xbf16, #tpu.memory_space<vmem>>, vector<338x36xbf16>
    tpu.vector_store %arg4[%c0_8, %c0_9], %14 {strides = array<i32>} : memref<338x36xbf16, #tpu.memory_space<vmem>>, vector<338x36xbf16>,
    return
  }
  func.func @transform_0(%arg0: i32) -> (i32, i32) {
    %c0_i32 = arith.constant 0 : i32
    %c0_i32_0 = arith.constant 0 : i32
    return %arg0, %c0_i32 : i32, i32
  }
  func.func @transform_1(%arg0: i32) -> (i32, i32) {
    %c0_i32 = arith.constant 0 : i32
    %c0_i32_0 = arith.constant 0 : i32
    %c0_i32_1 = arith.constant 0 : i32
    return %c0_i32, %c0_i32_0 : i32, i32
  }
  func.func @transform_2(%arg0: i32) -> (i32, i32) {
    %c0_i32 = arith.constant 0 : i32
    %c0_i32_0 = arith.constant 0 : i32
    %c0_i32_1 = arith.constant 0 : i32
    return %c0_i32, %c0_i32_0 : i32, i32
  }
  func.func @transform_3(%arg0: i32) -> (i32, i32) {
    %c0_i32 = arith.constant 0 : i32
    %c0_i32_0 = arith.constant 0 : i32
    return %arg0, %c0_i32 : i32, i32
  }
}

module attributes {stable_mosaic.version = 11 : i64} {
  func.func @_mm_bias_act_kernel(%arg0: i32, %arg1: memref<50x900xbf16, #tpu.memory_space<vmem>>, %arg2: memref<900x48xbf16, #tpu.memory_space<vmem>>, %arg3: memref<1x48xf32, #tpu.memory_space<vmem>>, %arg4: memref<50x48xbf16, #tpu.memory_space<vmem>>) attributes {dimension_semantics = [#tpu.dimension_semantics<parallel>], iteration_bounds = array<i64: 1>, scalar_prefetch = 0 : i64, scratch_operands = 0 : i64, tpu.core_type = #tpu.core_type<tc>, window_params = [{transform_indices = @transform_0, window_bounds = array<i64: 50, 900>}, {pipeline_mode = #tpu.pipeline_mode<synchronous>, transform_indices = @transform_1, window_bounds = array<i64: 900, 48>}, {pipeline_mode = #tpu.pipeline_mode<synchronous>, transform_indices = @transform_2, window_bounds = array<i64: 1, 48>}, {transform_indices = @transform_3, window_bounds = array<i64: 50, 48>}]} {
    %c0 = arith.constant 0 : index
    %c0_0 = arith.constant 0 : index
    %0 = vector.load %arg1[%c0, %c0_0] : memref<50x900xbf16, #tpu.memory_space<vmem>>, vector<50x900xbf16>
    %c0_1 = arith.constant 0 : index
    %c0_2 = arith.constant 0 : index
    %1 = vector.load %arg2[%c0_1, %c0_2] : memref<900x48xbf16, #tpu.memory_space<vmem>>, vector<900x48xbf16>
    %cst = arith.constant dense<0.000000e+00> : vector<50x48xf32>
    %2 = tpu.matmul %0, %1, %cst {dimension_numbers = #tpu.dot_dimension_numbers<[1], [0], [0], [1], [0, 0, 1, 1], [], []>} : vector<50x900xbf16>, vector<900x48xbf16>, vector<50x48xf32> -> vector<50x48xf32>
    %c0_3 = arith.constant 0 : index
    %c0_4 = arith.constant 0 : index
    %3 = vector.load %arg3[%c0_3, %c0_4] : memref<1x48xf32, #tpu.memory_space<vmem>>, vector<1x48xf32>
    %4 = vector.broadcast %3 : vector<1x48xf32> to vector<50x48xf32>
    %5 = arith.addf %2, %4 : vector<50x48xf32>
    %cst_5 = arith.constant 0.000000e+00 : f32
    %6 = vector.broadcast %cst_5 : f32 to vector<50x48xf32>
    %7 = arith.cmpf ogt, %5, %6 : vector<50x48xf32>
    %cst_6 = arith.constant 0.000000e+00 : f32
    %8 = vector.broadcast %cst_6 : f32 to vector<50x48xf32>
    %9 = arith.minimumf %5, %8 : vector<50x48xf32>
    %10 = math.exp %9 : vector<50x48xf32>
    %cst_7 = arith.constant 1.000000e+00 : f32
    %11 = vector.broadcast %cst_7 : f32 to vector<50x48xf32>
    %12 = arith.subf %10, %11 : vector<50x48xf32>
    %13 = arith.select %7, %5, %12 : vector<50x48xi1>, vector<50x48xf32>
    %14 = arith.truncf %13 : vector<50x48xf32> to vector<50x48xbf16>
    %c0_8 = arith.constant 0 : index
    %c0_9 = arith.constant 0 : index
    %15 = vector.load %arg4[%c0_8, %c0_9] : memref<50x48xbf16, #tpu.memory_space<vmem>>, vector<50x48xbf16>
    tpu.vector_store %arg4[%c0_8, %c0_9], %14 {strides = array<i32>} : memref<50x48xbf16, #tpu.memory_space<vmem>>, vector<50x48xbf16>,
    return
  }
  func.func @transform_0(%arg0: i32) -> (i32, i32) {
    %c0_i32 = arith.constant 0 : i32
    %c0_i32_0 = arith.constant 0 : i32
    return %arg0, %c0_i32 : i32, i32
  }
  func.func @transform_1(%arg0: i32) -> (i32, i32) {
    %c0_i32 = arith.constant 0 : i32
    %c0_i32_0 = arith.constant 0 : i32
    %c0_i32_1 = arith.constant 0 : i32
    return %c0_i32, %c0_i32_0 : i32, i32
  }
  func.func @transform_2(%arg0: i32) -> (i32, i32) {
    %c0_i32 = arith.constant 0 : i32
    %c0_i32_0 = arith.constant 0 : i32
    %c0_i32_1 = arith.constant 0 : i32
    return %c0_i32, %c0_i32_0 : i32, i32
  }
  func.func @transform_3(%arg0: i32) -> (i32, i32) {
    %c0_i32 = arith.constant 0 : i32
    %c0_i32_0 = arith.constant 0 : i32
    return %arg0, %c0_i32 : i32, i32
  }
}

module attributes {stable_mosaic.version = 11 : i64} {
  func.func @_mm_bias_act_kernel(%arg0: i32, %arg1: memref<18x432xbf16, #tpu.memory_space<vmem>>, %arg2: memref<432x64xbf16, #tpu.memory_space<vmem>>, %arg3: memref<1x64xf32, #tpu.memory_space<vmem>>, %arg4: memref<18x64xbf16, #tpu.memory_space<vmem>>) attributes {dimension_semantics = [#tpu.dimension_semantics<parallel>], iteration_bounds = array<i64: 1>, scalar_prefetch = 0 : i64, scratch_operands = 0 : i64, tpu.core_type = #tpu.core_type<tc>, window_params = [{transform_indices = @transform_0, window_bounds = array<i64: 18, 432>}, {pipeline_mode = #tpu.pipeline_mode<synchronous>, transform_indices = @transform_1, window_bounds = array<i64: 432, 64>}, {pipeline_mode = #tpu.pipeline_mode<synchronous>, transform_indices = @transform_2, window_bounds = array<i64: 1, 64>}, {transform_indices = @transform_3, window_bounds = array<i64: 18, 64>}]} {
    %c0 = arith.constant 0 : index
    %c0_0 = arith.constant 0 : index
    %0 = vector.load %arg1[%c0, %c0_0] : memref<18x432xbf16, #tpu.memory_space<vmem>>, vector<18x432xbf16>
    %c0_1 = arith.constant 0 : index
    %c0_2 = arith.constant 0 : index
    %1 = vector.load %arg2[%c0_1, %c0_2] : memref<432x64xbf16, #tpu.memory_space<vmem>>, vector<432x64xbf16>
    %cst = arith.constant dense<0.000000e+00> : vector<18x64xf32>
    %2 = tpu.matmul %0, %1, %cst {dimension_numbers = #tpu.dot_dimension_numbers<[1], [0], [0], [1], [0, 0, 1, 1], [], []>} : vector<18x432xbf16>, vector<432x64xbf16>, vector<18x64xf32> -> vector<18x64xf32>
    %c0_3 = arith.constant 0 : index
    %c0_4 = arith.constant 0 : index
    %3 = vector.load %arg3[%c0_3, %c0_4] : memref<1x64xf32, #tpu.memory_space<vmem>>, vector<1x64xf32>
    %4 = vector.broadcast %3 : vector<1x64xf32> to vector<18x64xf32>
    %5 = arith.addf %2, %4 : vector<18x64xf32>
    %cst_5 = arith.constant 0.000000e+00 : f32
    %6 = vector.broadcast %cst_5 : f32 to vector<18x64xf32>
    %7 = arith.cmpf ogt, %5, %6 : vector<18x64xf32>
    %cst_6 = arith.constant 0.000000e+00 : f32
    %8 = vector.broadcast %cst_6 : f32 to vector<18x64xf32>
    %9 = arith.minimumf %5, %8 : vector<18x64xf32>
    %10 = math.exp %9 : vector<18x64xf32>
    %cst_7 = arith.constant 1.000000e+00 : f32
    %11 = vector.broadcast %cst_7 : f32 to vector<18x64xf32>
    %12 = arith.subf %10, %11 : vector<18x64xf32>
    %13 = arith.select %7, %5, %12 : vector<18x64xi1>, vector<18x64xf32>
    %14 = arith.truncf %13 : vector<18x64xf32> to vector<18x64xbf16>
    %c0_8 = arith.constant 0 : index
    %c0_9 = arith.constant 0 : index
    %15 = vector.load %arg4[%c0_8, %c0_9] : memref<18x64xbf16, #tpu.memory_space<vmem>>, vector<18x64xbf16>
    tpu.vector_store %arg4[%c0_8, %c0_9], %14 {strides = array<i32>} : memref<18x64xbf16, #tpu.memory_space<vmem>>, vector<18x64xbf16>,
    return
  }
  func.func @transform_0(%arg0: i32) -> (i32, i32) {
    %c0_i32 = arith.constant 0 : i32
    %c0_i32_0 = arith.constant 0 : i32
    return %arg0, %c0_i32 : i32, i32
  }
  func.func @transform_1(%arg0: i32) -> (i32, i32) {
    %c0_i32 = arith.constant 0 : i32
    %c0_i32_0 = arith.constant 0 : i32
    %c0_i32_1 = arith.constant 0 : i32
    return %c0_i32, %c0_i32_0 : i32, i32
  }
  func.func @transform_2(%arg0: i32) -> (i32, i32) {
    %c0_i32 = arith.constant 0 : i32
    %c0_i32_0 = arith.constant 0 : i32
    %c0_i32_1 = arith.constant 0 : i32
    return %c0_i32, %c0_i32_0 : i32, i32
  }
  func.func @transform_3(%arg0: i32) -> (i32, i32) {
    %c0_i32 = arith.constant 0 : i32
    %c0_i32_0 = arith.constant 0 : i32
    return %arg0, %c0_i32 : i32, i32
  }
}

module attributes {stable_mosaic.version = 11 : i64} {
  func.func @_mm_bias_act_kernel(%arg0: i32, %arg1: memref<2x576xbf16, #tpu.memory_space<vmem>>, %arg2: memref<576x64xbf16, #tpu.memory_space<vmem>>, %arg3: memref<1x64xf32, #tpu.memory_space<vmem>>, %arg4: memref<2x64xbf16, #tpu.memory_space<vmem>>) attributes {dimension_semantics = [#tpu.dimension_semantics<parallel>], iteration_bounds = array<i64: 1>, scalar_prefetch = 0 : i64, scratch_operands = 0 : i64, tpu.core_type = #tpu.core_type<tc>, window_params = [{transform_indices = @transform_0, window_bounds = array<i64: 2, 576>}, {pipeline_mode = #tpu.pipeline_mode<synchronous>, transform_indices = @transform_1, window_bounds = array<i64: 576, 64>}, {pipeline_mode = #tpu.pipeline_mode<synchronous>, transform_indices = @transform_2, window_bounds = array<i64: 1, 64>}, {transform_indices = @transform_3, window_bounds = array<i64: 2, 64>}]} {
    %c0 = arith.constant 0 : index
    %c0_0 = arith.constant 0 : index
    %0 = vector.load %arg1[%c0, %c0_0] : memref<2x576xbf16, #tpu.memory_space<vmem>>, vector<2x576xbf16>
    %c0_1 = arith.constant 0 : index
    %c0_2 = arith.constant 0 : index
    %1 = vector.load %arg2[%c0_1, %c0_2] : memref<576x64xbf16, #tpu.memory_space<vmem>>, vector<576x64xbf16>
    %cst = arith.constant dense<0.000000e+00> : vector<2x64xf32>
    %2 = tpu.matmul %0, %1, %cst {dimension_numbers = #tpu.dot_dimension_numbers<[1], [0], [0], [1], [0, 0, 1, 1], [], []>} : vector<2x576xbf16>, vector<576x64xbf16>, vector<2x64xf32> -> vector<2x64xf32>
    %c0_3 = arith.constant 0 : index
    %c0_4 = arith.constant 0 : index
    %3 = vector.load %arg3[%c0_3, %c0_4] : memref<1x64xf32, #tpu.memory_space<vmem>>, vector<1x64xf32>
    %4 = vector.broadcast %3 : vector<1x64xf32> to vector<2x64xf32>
    %5 = arith.addf %2, %4 : vector<2x64xf32>
    %cst_5 = arith.constant 0.000000e+00 : f32
    %6 = vector.broadcast %cst_5 : f32 to vector<2x64xf32>
    %7 = arith.cmpf ogt, %5, %6 : vector<2x64xf32>
    %cst_6 = arith.constant 0.000000e+00 : f32
    %8 = vector.broadcast %cst_6 : f32 to vector<2x64xf32>
    %9 = arith.minimumf %5, %8 : vector<2x64xf32>
    %10 = math.exp %9 : vector<2x64xf32>
    %cst_7 = arith.constant 1.000000e+00 : f32
    %11 = vector.broadcast %cst_7 : f32 to vector<2x64xf32>
    %12 = arith.subf %10, %11 : vector<2x64xf32>
    %13 = arith.select %7, %5, %12 : vector<2x64xi1>, vector<2x64xf32>
    %14 = arith.truncf %13 : vector<2x64xf32> to vector<2x64xbf16>
    %c0_8 = arith.constant 0 : index
    %c0_9 = arith.constant 0 : index
    %15 = vector.load %arg4[%c0_8, %c0_9] : memref<2x64xbf16, #tpu.memory_space<vmem>>, vector<2x64xbf16>
    tpu.vector_store %arg4[%c0_8, %c0_9], %14 {strides = array<i32>} : memref<2x64xbf16, #tpu.memory_space<vmem>>, vector<2x64xbf16>,
    return
  }
  func.func @transform_0(%arg0: i32) -> (i32, i32) {
    %c0_i32 = arith.constant 0 : i32
    %c0_i32_0 = arith.constant 0 : i32
    return %arg0, %c0_i32 : i32, i32
  }
  func.func @transform_1(%arg0: i32) -> (i32, i32) {
    %c0_i32 = arith.constant 0 : i32
    %c0_i32_0 = arith.constant 0 : i32
    %c0_i32_1 = arith.constant 0 : i32
    return %c0_i32, %c0_i32_0 : i32, i32
  }
  func.func @transform_2(%arg0: i32) -> (i32, i32) {
    %c0_i32 = arith.constant 0 : i32
    %c0_i32_0 = arith.constant 0 : i32
    %c0_i32_1 = arith.constant 0 : i32
    return %c0_i32, %c0_i32_0 : i32, i32
  }
  func.func @transform_3(%arg0: i32) -> (i32, i32) {
    %c0_i32 = arith.constant 0 : i32
    %c0_i32_0 = arith.constant 0 : i32
    return %arg0, %c0_i32 : i32, i32
  }
}

module attributes {stable_mosaic.version = 11 : i64} {
  func.func @_mlp_head_kernel(%arg0: i32, %arg1: memref<2x64xbf16, #tpu.memory_space<vmem>>, %arg2: memref<64x32xbf16, #tpu.memory_space<vmem>>, %arg3: memref<1x32xf32, #tpu.memory_space<vmem>>, %arg4: memref<32x32xbf16, #tpu.memory_space<vmem>>, %arg5: memref<1x32xf32, #tpu.memory_space<vmem>>, %arg6: memref<32x8xbf16, #tpu.memory_space<vmem>>, %arg7: memref<1x8xf32, #tpu.memory_space<vmem>>, %arg8: memref<2x8xf32, #tpu.memory_space<vmem>>) attributes {dimension_semantics = [#tpu.dimension_semantics<arbitrary>], iteration_bounds = array<i64: 1>, scalar_prefetch = 0 : i64, scratch_operands = 0 : i64, tpu.core_type = #tpu.core_type<tc>, window_params = [{pipeline_mode = #tpu.pipeline_mode<synchronous>, transform_indices = @transform_0, window_bounds = array<i64: 2, 64>}, {pipeline_mode = #tpu.pipeline_mode<synchronous>, transform_indices = @transform_1, window_bounds = array<i64: 64, 32>}, {pipeline_mode = #tpu.pipeline_mode<synchronous>, transform_indices = @transform_2, window_bounds = array<i64: 1, 32>}, {pipeline_mode = #tpu.pipeline_mode<synchronous>, transform_indices = @transform_3, window_bounds = array<i64: 32, 32>}, {pipeline_mode = #tpu.pipeline_mode<synchronous>, transform_indices = @transform_4, window_bounds = array<i64: 1, 32>}, {pipeline_mode = #tpu.pipeline_mode<synchronous>, transform_indices = @transform_5, window_bounds = array<i64: 32, 8>}, {pipeline_mode = #tpu.pipeline_mode<synchronous>, transform_indices = @transform_6, window_bounds = array<i64: 1, 8>}, {pipeline_mode = #tpu.pipeline_mode<synchronous>, transform_indices = @transform_7, window_bounds = array<i64: 2, 8>}]} {
    %c0 = arith.constant 0 : index
    %c0_0 = arith.constant 0 : index
    %0 = vector.load %arg1[%c0, %c0_0] : memref<2x64xbf16, #tpu.memory_space<vmem>>, vector<2x64xbf16>
    %c0_1 = arith.constant 0 : index
    %c0_2 = arith.constant 0 : index
    %1 = vector.load %arg2[%c0_1, %c0_2] : memref<64x32xbf16, #tpu.memory_space<vmem>>, vector<64x32xbf16>
    %cst = arith.constant dense<0.000000e+00> : vector<2x32xf32>
    %2 = tpu.matmul %0, %1, %cst {dimension_numbers = #tpu.dot_dimension_numbers<[1], [0], [0], [1], [0, 0, 1, 1], [], []>} : vector<2x64xbf16>, vector<64x32xbf16>, vector<2x32xf32> -> vector<2x32xf32>
    %c0_3 = arith.constant 0 : index
    %c0_4 = arith.constant 0 : index
    %3 = vector.load %arg3[%c0_3, %c0_4] : memref<1x32xf32, #tpu.memory_space<vmem>>, vector<1x32xf32>
    %4 = vector.broadcast %3 : vector<1x32xf32> to vector<2x32xf32>
    %5 = arith.addf %2, %4 : vector<2x32xf32>
    %cst_5 = arith.constant 0.000000e+00 : f32
    %6 = vector.broadcast %cst_5 : f32 to vector<2x32xf32>
    %7 = arith.cmpf ogt, %5, %6 : vector<2x32xf32>
    %cst_6 = arith.constant 0.000000e+00 : f32
    %8 = vector.broadcast %cst_6 : f32 to vector<2x32xf32>
    %9 = arith.minimumf %5, %8 : vector<2x32xf32>
    %10 = math.exp %9 : vector<2x32xf32>
    %cst_7 = arith.constant 1.000000e+00 : f32
    %11 = vector.broadcast %cst_7 : f32 to vector<2x32xf32>
    %12 = arith.subf %10, %11 : vector<2x32xf32>
    %13 = arith.select %7, %5, %12 : vector<2x32xi1>, vector<2x32xf32>
    %14 = arith.truncf %13 : vector<2x32xf32> to vector<2x32xbf16>
    %c0_8 = arith.constant 0 : index
    %c0_9 = arith.constant 0 : index
    %15 = vector.load %arg4[%c0_8, %c0_9] : memref<32x32xbf16, #tpu.memory_space<vmem>>, vector<32x32xbf16>
    %cst_10 = arith.constant dense<0.000000e+00> : vector<2x32xf32>
    %16 = tpu.matmul %14, %15, %cst_10 {dimension_numbers = #tpu.dot_dimension_numbers<[1], [0], [0], [1], [0, 0, 1, 1], [], []>} : vector<2x32xbf16>, vector<32x32xbf16>, vector<2x32xf32> -> vector<2x32xf32>
    %c0_11 = arith.constant 0 : index
    %c0_12 = arith.constant 0 : index
    %17 = vector.load %arg5[%c0_11, %c0_12] : memref<1x32xf32, #tpu.memory_space<vmem>>, vector<1x32xf32>
    %18 = vector.broadcast %17 : vector<1x32xf32> to vector<2x32xf32>
    %19 = arith.addf %16, %18 : vector<2x32xf32>
    %cst_13 = arith.constant 0.000000e+00 : f32
    %20 = vector.broadcast %cst_13 : f32 to vector<2x32xf32>
    %21 = arith.cmpf ogt, %19, %20 : vector<2x32xf32>
    %cst_14 = arith.constant 0.000000e+00 : f32
    %22 = vector.broadcast %cst_14 : f32 to vector<2x32xf32>
    %23 = arith.minimumf %19, %22 : vector<2x32xf32>
    %24 = math.exp %23 : vector<2x32xf32>
    %cst_15 = arith.constant 1.000000e+00 : f32
    %25 = vector.broadcast %cst_15 : f32 to vector<2x32xf32>
    %26 = arith.subf %24, %25 : vector<2x32xf32>
    %27 = arith.select %21, %19, %26 : vector<2x32xi1>, vector<2x32xf32>
    %28 = arith.truncf %27 : vector<2x32xf32> to vector<2x32xbf16>
    %c0_16 = arith.constant 0 : index
    %c0_17 = arith.constant 0 : index
    %29 = vector.load %arg6[%c0_16, %c0_17] : memref<32x8xbf16, #tpu.memory_space<vmem>>, vector<32x8xbf16>
    %cst_18 = arith.constant dense<0.000000e+00> : vector<2x8xf32>
    %30 = tpu.matmul %28, %29, %cst_18 {dimension_numbers = #tpu.dot_dimension_numbers<[1], [0], [0], [1], [0, 0, 1, 1], [], []>} : vector<2x32xbf16>, vector<32x8xbf16>, vector<2x8xf32> -> vector<2x8xf32>
    %c0_19 = arith.constant 0 : index
    %c0_20 = arith.constant 0 : index
    %31 = vector.load %arg7[%c0_19, %c0_20] : memref<1x8xf32, #tpu.memory_space<vmem>>, vector<1x8xf32>
    %32 = vector.broadcast %31 : vector<1x8xf32> to vector<2x8xf32>
    %33 = arith.addf %30, %32 : vector<2x8xf32>
    %c0_21 = arith.constant 0 : index
    %c0_22 = arith.constant 0 : index
    %34 = vector.load %arg8[%c0_21, %c0_22] : memref<2x8xf32, #tpu.memory_space<vmem>>, vector<2x8xf32>
    tpu.vector_store %arg8[%c0_21, %c0_22], %33 {strides = array<i32>} : memref<2x8xf32, #tpu.memory_space<vmem>>, vector<2x8xf32>,
    return
  }
  func.func @transform_0(%arg0: i32) -> (i32, i32) {
    %c0_i32 = arith.constant 0 : i32
    %c0_i32_0 = arith.constant 0 : i32
    %c0_i32_1 = arith.constant 0 : i32
    return %c0_i32, %c0_i32_0 : i32, i32
  }
  func.func @transform_1(%arg0: i32) -> (i32, i32) {
    %c0_i32 = arith.constant 0 : i32
    %c0_i32_0 = arith.constant 0 : i32
    %c0_i32_1 = arith.constant 0 : i32
    return %c0_i32, %c0_i32_0 : i32, i32
  }
  func.func @transform_2(%arg0: i32) -> (i32, i32) {
    %c0_i32 = arith.constant 0 : i32
    %c0_i32_0 = arith.constant 0 : i32
    %c0_i32_1 = arith.constant 0 : i32
    return %c0_i32, %c0_i32_0 : i32, i32
  }
  func.func @transform_3(%arg0: i32) -> (i32, i32) {
    %c0_i32 = arith.constant 0 : i32
    %c0_i32_0 = arith.constant 0 : i32
    %c0_i32_1 = arith.constant 0 : i32
    return %c0_i32, %c0_i32_0 : i32, i32
  }
  func.func @transform_4(%arg0: i32) -> (i32, i32) {
    %c0_i32 = arith.constant 0 : i32
    %c0_i32_0 = arith.constant 0 : i32
    %c0_i32_1 = arith.constant 0 : i32
    return %c0_i32, %c0_i32_0 : i32, i32
  }
  func.func @transform_5(%arg0: i32) -> (i32, i32) {
    %c0_i32 = arith.constant 0 : i32
    %c0_i32_0 = arith.constant 0 : i32
    %c0_i32_1 = arith.constant 0 : i32
    return %c0_i32, %c0_i32_0 : i32, i32
  }
  func.func @transform_6(%arg0: i32) -> (i32, i32) {
    %c0_i32 = arith.constant 0 : i32
    %c0_i32_0 = arith.constant 0 : i32
    %c0_i32_1 = arith.constant 0 : i32
    return %c0_i32, %c0_i32_0 : i32, i32
  }
  func.func @transform_7(%arg0: i32) -> (i32, i32) {
    %c0_i32 = arith.constant 0 : i32
    %c0_i32_0 = arith.constant 0 : i32
    %c0_i32_1 = arith.constant 0 : i32
    return %c0_i32, %c0_i32_0 : i32, i32
  }
}

</mosaic_0001>

<bundles_post_ra>
// kernel: discrete_policy_cnn_forward.6
= control target key start
LH: loop header
LB: loop body
LE: loop exit
PB: predicated region body
PF: predicated region fallthrough
CT: control target
= control target key end

     0   :  { %s1743_s12 = smov 0   ;;  %s2274_s0 = inlined_call_operand.vmem [shape: bf16[1800,100], index: 0, kind: input, shape index: {}]   ;;  %s2275_s1 = inlined_call_operand.vmem [shape: bf16[100,24], index: 1, kind: input, shape index: {}]   ;;  %s2276_s2 = inlined_call_operand.vmem [shape: f32[1,24], index: 2, kind: input, shape index: {}]   ;;  %s2277_s3 = inlined_call_operand.vmem [shape: bf16[1800,24], index: 3, kind: output, shape index: {}]  }
   0x1 LB: > { %s1235_s13 = sadd.s32 4294967295, %s1719_s12   ;;  %p1239_p0 = scmp.ge.s32.totalorder %s1719_s12, 1  ;;  %s1719_s12 = sphi %s1743_s12, %s13_s12  }
   0x2   : > { %p138_p1 = scmp.lt.s32.totalorder %s1719_s12, 6 }
   0x4   : > { %p139_p2 = pnand %p1239_p0, %p138_p1 }
   0x5   : > { %v1593_v0 = vld [vmem:[%s2275_s1] sm:$0xff] (!%p139_p2)   ;;  %v1721_v1 = vmov (!%p139_p2), 0.0   ;;  %v1594_v2 = vld [vmem:[%s2275_s1 + $0x8] sm:$0xff] (!%p139_p2)   ;;  %s162_s18 = smul.u32 (!%p139_p2), 45, %s1235_s13  ;;  %vm1722_vm0 = vmmov (!%p139_p2), 0   ;;  %v1595_v3 = vld [vmem:[%s2275_s1 + $0x10] sm:$0xff] (!%p139_p2)  }
   0x6   : > { %142 = sbr.rel (%p139_p2) target bundleno = 359 (0x167), region = 32  ;;  %1463 = vmatprep.subr.bf16.mxu0 (!%p139_p2), %v1721_v1  ;;  %1569 = vmatprep.subr.bf16.mxu1 (!%p139_p2), %v1721_v1  ;;  %v1596_v4 = vld [vmem:[%s2275_s1 + $0x18] sm:$0xff] (!%p139_p2)   ;;  %v1597_v5 = vld [vmem:[%s2275_s1 + $0x20] sm:$0xff] (!%p139_p2)   ;;  %v1599_v6 = vld [vmem:[%s2275_s1 + $0x30] ss:$0 sps:$4 sm:$0x33] (!%p139_p2)  }
   0x7   : > { %1464 = vmatpush3.bf16.msra.mxu0 (!%p139_p2), %v1593_v0  ;;  %1576 = vmatpush3.bf16.msra.mxu1 (!%p139_p2), %v1593_v0  ;;  %p163_p3 = scmp.lt.s32.totalorder (!%p139_p2), %s162_s18, 224  ;;  %v1598_v7 = vld [vmem:[%s2275_s1 + $0x28] sm:$0xff] (!%p139_p2)   ;;  %vm462_vm1 = vcmask (!%p139_p2), 1041408   ;;  %vm392_vm2 = vcmask (!%p139_p2), 818176   ;;  %v1891_v32 = vld [vmem:[%s2276_s2] ss:$0 sm:$0xff] (!%p139_p2) }
   0x8   : > { %1465 = vmatprep.subr.bf16.mxu0 (!%p139_p2), %v1721_v1  ;;  %1570 = vmatprep.subr.bf16.mxu1 (!%p139_p2), %v1721_v1  ;;  %v464_v8 = vsel (!%p139_p2), %vm462_vm1, %v1599_v6, 0  ;;  %vm1133_vm4 = vcmask (!%p139_p2), 191488  }
   0x9   : > { %1477 = vmatprep.mubr.msk.bf16.mxu0 (!%p139_p2), %vm1722_vm0, %v1721_v1  ;;  %1525 = vmatprep.mubr.msk.bf16.mxu1 (!%p139_p2), %vm1722_vm0, %v1721_v1 }
   0xb   : > { %1466 = vmatpush3.bf16.msra.mxu0 (!%p139_p2), %v1594_v2  ;;  %1577 = vmatpush3.bf16.msra.mxu1 (!%p139_p2), %v1594_v2 }
   0xc   : > { %1467 = vmatprep.subr.bf16.mxu0 (!%p139_p2), %v1721_v1  ;;  %1571 = vmatprep.subr.bf16.mxu1 (!%p139_p2), %v1721_v1 }
   0xd   : > { %s2279_s18 = smov (!%p163_p3, %s162_s18), 224 }
   0xe   : > { %s1240_s21 = sshll.u32 %s2279_s18, 2 }
   0xf   : > { %1468 = vmatpush3.bf16.msra.mxu0 %v1595_v3  ;;  %1578 = vmatpush3.bf16.msra.mxu1 %v1595_v3  ;;  %s1781_s26 = scalar_lea.vmem %s2274_s0, %s1240_s21  ;;  %s1939_s10 = scalar_lea.vmem %s2277_s3, %s1240_s21 }
  0x10   : > { %1469 = vmatprep.subr.bf16.mxu0 %v1721_v1  ;;  %1572 = vmatprep.subr.bf16.mxu1 %v1721_v1  ;;  %v1600_v9 = vld [vmem:[%s1781_s26] sm:$0xff]   ;;  %v1602_v11 = vld [vmem:[%s1781_s26 + $0x8] sm:$0xff]   ;;  %v1604_v13 = vld [vmem:[%s1781_s26 + $0x10] sm:$0xff]  }
  0x11   : > { %v1601_v10 = vld [vmem:[%s1781_s26 + $0x60] sm:$0xff]   ;;  %v1603_v12 = vld [vmem:[%s1781_s26 + $0x68] sm:$0xff]   ;;  %v1605_v14 = vld [vmem:[%s1781_s26 + $0x70] sm:$0xff]  }
  0x12   : > { %v1606_v15 = vld [vmem:[%s1781_s26 + $0x18] sm:$0xff]   ;;  %v1608_v17 = vld [vmem:[%s1781_s26 + $0x20] sm:$0xff]   ;;  %v1610_v19 = vld [vmem:[%s1781_s26 + $0x28] sm:$0xff]  }
  0x13   : > { %1470 = vmatpush3.bf16.msra.mxu0 %v1596_v4  ;;  %1579 = vmatpush3.bf16.msra.mxu1 %v1596_v4  ;;  %v1607_v16 = vld [vmem:[%s1781_s26 + $0x78] sm:$0xff]   ;;  %v1609_v18 = vld [vmem:[%s1781_s26 + $0x80] sm:$0xff]   ;;  %v1611_v20 = vld [vmem:[%s1781_s26 + $0x88] sm:$0xff]  }
  0x14   : > { %1471 = vmatprep.subr.bf16.mxu0 %v1721_v1  ;;  %1573 = vmatprep.subr.bf16.mxu1 %v1721_v1  ;;  %v1612_v21 = vld [vmem:[%s1781_s26 + $0x30] sm:$0xff]   ;;  %v1614_v23 = vld [vmem:[%s1781_s26 + $0x38] sm:$0xff]   ;;  %v1616_v25 = vld [vmem:[%s1781_s26 + $0x40] sm:$0xff]  }
  0x15   : > { %v1613_v22 = vld [vmem:[%s1781_s26 + $0x90] sm:$0xff]   ;;  %v1615_v24 = vld [vmem:[%s1781_s26 + $0x98] sm:$0xff]   ;;  %v1617_v26 = vld [vmem:[%s1781_s26 + $0xa0] sm:$0xff]  }
  0x16   : > { %v1618_v27 = vld [vmem:[%s1781_s26 + $0x48] sm:$0xff]   ;;  %v1620_v29 = vld [vmem:[%s1781_s26 + $0x50] sm:$0xff]   ;;  %v1622_v31 = vld [vmem:[%s1781_s26 + $0x58] sm:$0xff]  }
  0x17   : > { %1472 = vmatpush3.bf16.msra.mxu0 %v1597_v5  ;;  %1580 = vmatpush3.bf16.msra.mxu1 %v1597_v5  ;;  %v1619_v28 = vld [vmem:[%s1781_s26 + $0xa8] sm:$0xff]   ;;  %v1621_v30 = vld [vmem:[%s1781_s26 + $0xb0] ss:$0 sps:$4 sm:$0xff]  }
  0x18   : > { %1473 = vmatprep.subr.bf16.mxu0 %v1721_v1  ;;  %1574 = vmatprep.subr.bf16.mxu1 %v1721_v1 }
  0x1b   : > { %1474 = vmatpush3.bf16.msra.mxu0 %v1598_v7  ;;  %1581 = vmatpush3.bf16.msra.mxu1 %v1598_v7 }
  0x1c   : > { %1475 = vmatprep.subr.bf16.mxu0 %v1721_v1  ;;  %1575 = vmatprep.subr.bf16.mxu1 %v1721_v1 }
  0x1f   : > { %1476 = vmatpush3.bf16.msra.mxu0 %v464_v8  ;;  %1582 = vmatpush3.bf16.msra.mxu1 %v464_v8 }
  0x22   : > { %1478 = vmatmul.mubr.msk.bf16.vlgmr.msra.gmra.mrb[0].mxu0 %vm392_vm2, %v1600_v9  ;;  %1526 = vmatmul.mubr.msk.bf16.vlgmr.msra.gmra.mrb[0].mxu1 %vm392_vm2, %v1601_v10 }
  0x23   : > { %1481 = vmatprep.mubr.msk.bf16.mxu0 %vm1722_vm0, %v1721_v1  ;;  %1529 = vmatprep.mubr.msk.bf16.mxu1 %vm1722_vm0, %v1721_v1 }
  0x2a   : > { %1482 = vmatmul.mubr.msk.bf16.gmra.mrb[4].mxu0 %vm392_vm2, %v1602_v11  ;;  %1530 = vmatmul.mubr.msk.bf16.gmra.mrb[4].mxu1 %vm392_vm2, %v1603_v12 }
  0x2b   : > { %1485 = vmatprep.mubr.msk.bf16.mxu0 %vm1722_vm0, %v1721_v1  ;;  %1533 = vmatprep.mubr.msk.bf16.mxu1 %vm1722_vm0, %v1721_v1 }
  0x32   : > { %1486 = vmatmul.mubr.msk.bf16.gmra.mrb[8].mxu0 %vm392_vm2, %v1604_v13  ;;  %1534 = vmatmul.mubr.msk.bf16.gmra.mrb[8].mxu1 %vm392_vm2, %v1605_v14 }
  0x33   : > { %1489 = vmatprep.mubr.msk.bf16.mxu0 %vm1722_vm0, %v1721_v1  ;;  %1537 = vmatprep.mubr.msk.bf16.mxu1 %vm1722_vm0, %v1721_v1 }
  0x3a   : > { %1490 = vmatmul.mubr.msk.bf16.gmra.mrb[12].mxu0 %vm392_vm2, %v1606_v15  ;;  %1538 = vmatmul.mubr.msk.bf16.gmra.mrb[12].mxu1 %vm392_vm2, %v1607_v16 }
  0x3b   : > { %1493 = vmatprep.mubr.msk.bf16.mxu0 %vm1722_vm0, %v1721_v1  ;;  %1541 = vmatprep.mubr.msk.bf16.mxu1 %vm1722_vm0, %v1721_v1 }
  0x42   : > { %1494 = vmatmul.mubr.msk.bf16.gmra.mrb[16].mxu0 %vm392_vm2, %v1608_v17  ;;  %1542 = vmatmul.mubr.msk.bf16.gmra.mrb[16].mxu1 %vm392_vm2, %v1609_v18 }
  0x43   : > { %1497 = vmatprep.mubr.msk.bf16.mxu0 %vm1722_vm0, %v1721_v1  ;;  %1545 = vmatprep.mubr.msk.bf16.mxu1 %vm1722_vm0, %v1721_v1 }
  0x4a   : > { %1498 = vmatmul.mubr.msk.bf16.gmra.mrb[20].mxu0 %vm392_vm2, %v1610_v19  ;;  %1546 = vmatmul.mubr.msk.bf16.gmra.mrb[20].mxu1 %vm392_vm2, %v1611_v20 }
  0x4b   : > { %1501 = vmatprep.mubr.msk.bf16.mxu0 %vm1722_vm0, %v1721_v1  ;;  %1549 = vmatprep.mubr.msk.bf16.mxu1 %vm1722_vm0, %v1721_v1 }
  0x52   : > { %1502 = vmatmul.mubr.msk.bf16.gmra.mrb[24].mxu0 %vm392_vm2, %v1612_v21  ;;  %1550 = vmatmul.mubr.msk.bf16.gmra.mrb[24].mxu1 %vm392_vm2, %v1613_v22 }
  0x53   : > { %1505 = vmatprep.mubr.msk.bf16.mxu0 %vm1722_vm0, %v1721_v1  ;;  %1553 = vmatprep.mubr.msk.bf16.mxu1 %vm1722_vm0, %v1721_v1 }
  0x5a   : > { %1506 = vmatmul.mubr.msk.bf16.gmra.mrb[28].mxu0 %vm392_vm2, %v1614_v23  ;;  %1554 = vmatmul.mubr.msk.bf16.gmra.mrb[28].mxu1 %vm392_vm2, %v1615_v24 }
  0x5b   : > { %1509 = vmatprep.mubr.msk.bf16.mxu0 %vm1722_vm0, %v1721_v1  ;;  %1557 = vmatprep.mubr.msk.bf16.mxu1 %vm1722_vm0, %v1721_v1 }
  0x62   : > { %1510 = vmatmul.mubr.msk.bf16.gmra.mrb[32].mxu0 %vm392_vm2, %v1616_v25  ;;  %1558 = vmatmul.mubr.msk.bf16.gmra.mrb[32].mxu1 %vm392_vm2, %v1617_v26 }
  0x63   : > { %1513 = vmatprep.mubr.msk.bf16.mxu0 %vm1722_vm0, %v1721_v1  ;;  %1561 = vmatprep.mubr.msk.bf16.mxu1 %vm1722_vm0, %v1721_v1 }
  0x6a   : > { %1514 = vmatmul.mubr.msk.bf16.gmra.mrb[36].mxu0 %vm392_vm2, %v1618_v27  ;;  %1562 = vmatmul.mubr.msk.bf16.gmra.mrb[36].mxu1 %vm392_vm2, %v1619_v28 }
  0x6b   : > { %1517 = vmatprep.mubr.msk.bf16.mxu0 %vm1722_vm0, %v1721_v1  ;;  %1565 = vmatprep.mubr.msk.bf16.mxu1 %vm1722_vm0, %v1721_v1 }
  0x72   : > { %1518 = vmatmul.mubr.msk.bf16.gmra.mrb[40].mxu0 %vm392_vm2, %v1620_v29  ;;  %1566 = vmatmul.mubr.msk.bf16.gmra.mrb[40].mxu1 %vm392_vm2, %v1621_v30 }
  0x73   : > { %1521 = vmatprep.mubr.msk.bf16.mxu0 %vm1722_vm0, %v1721_v1 }
  0x7a   : > { %1522 = vmatmul.mubr.msk.bf16.gmra.mrb[44].mxu0 %vm392_vm2, %v1622_v31 }
  0xf5   : > { %v500_v33 = vpop.f32.mrb[0].mxu0  ;;  %v596_v34 = vpop.f32.mrb[0].mxu1 }
  0xf6   : > { %v1894_v35 = vadd.f32 %v1891_v32, %v500_v33  ;;  %v1897_v36 = vadd.f32 %v1891_v32, %v596_v34  ;;  %v1479_v37 = vpop.f32.mrb[1].mxu0  ;;  %v1527_v38 = vpop.f32.mrb[1].mxu1 }
  0xf7   : > { %v503_v39 = vpop.f32.mrb[2].mxu0  ;;  %v599_v40 = vpop.f32.mrb[2].mxu1 }
  0xf8   : > { %v727_v41 = vmin.f32 %v1894_v35, 0.0  ;;  %v751_v42 = vmin.f32 %v1897_v36, 0.0  ;;  %v1480_v43 = vpop.f32.mrb[3].mxu0  ;;  %v1528_v44 = vpop.f32.mrb[3].mxu1  ;;  %v1902_v45 = vadd.f32 %v1891_v32, %v503_v39  ;;  %v1905_v46 = vadd.f32 %v1891_v32, %v599_v40 }
  0xf9   : > { %vm682_vm3 = vcmp.gt.f32.partialorder %v1894_v35, 0.0  ;;  %vm706_vm5 = vcmp.gt.f32.partialorder %v1897_v36, 0.0 }
  0xfa   : > { %v772_v47 = vmul.f32 1.442695, %v727_v41  ;;  %v820_v48 = vmul.f32 1.442695, %v751_v42  ;;  %v728_v49 = vmin.f32 %v1902_v45, 0.0  ;;  %v752_v50 = vmin.f32 %v1905_v46, 0.0 }
  0xfb   : > { %vm683_vm6 = vcmp.gt.f32.partialorder %v1902_v45, 0.0  ;;  %vm707_vm7 = vcmp.gt.f32.partialorder %v1905_v46, 0.0 }
  0xfc   : > { %1623 = vpow2.f32 %v772_v47  ;;  %v774_v51 = vmul.f32 1.442695, %v728_v49  ;;  %v822_v52 = vmul.f32 1.442695, %v752_v50 }
  0xfd   : > { %1625 = vpow2.f32 %v820_v48  ;;  %v508_v53 = vpop.f32.mrb[4].mxu0  ;;  %v604_v54 = vpop.f32.mrb[4].mxu1 }
  0xfe   : > { %v1910_v55 = vadd.f32 %v1891_v32, %v508_v53  ;;  %v1913_v56 = vadd.f32 %v1891_v32, %v604_v54  ;;  %v1483_v57 = vpop.f32.mrb[5].mxu0  ;;  %v1531_v58 = vpop.f32.mrb[5].mxu1  ;;  %1627 = vpow2.f32 %v774_v51 }
  0xff   : > { %v511_v59 = vpop.f32.mrb[6].mxu0  ;;  %v607_v60 = vpop.f32.mrb[6].mxu1  ;;  %1629 = vpow2.f32 %v822_v52 }
 0x100   : > { %v729_v61 = vmin.f32 %v1910_v55, 0.0  ;;  %v1484_v62 = vpop.f32.mrb[7].mxu0  ;;  %v1532_v63 = vpop.f32.mrb[7].mxu1  ;;  %v753_v0 = vmin.f32 %v1913_v56, 0.0  ;;  %v1918_v1 = vadd.f32 %v1891_v32, %v511_v59  ;;  %v1921_v2 = vadd.f32 %v1891_v32, %v607_v60 }
 0x101   : > { %vm684_vm8 = vcmp.gt.f32.partialorder %v1910_v55, 0.0  ;;  %vm708_vm9 = vcmp.gt.f32.partialorder %v1913_v56, 0.0 }
 0x102   : > { %v776_v3 = vmul.f32 1.442695, %v729_v61  ;;  %v824_v4 = vmul.f32 1.442695, %v753_v0  ;;  %v730_v5 = vmin.f32 %v1918_v1, 0.0  ;;  %v754_v6 = vmin.f32 %v1921_v2, 0.0 }
 0x103   : > { %vm685_vm10 = vcmp.gt.f32.partialorder %v1918_v1, 0.0  ;;  %vm709_vm11 = vcmp.gt.f32.partialorder %v1921_v2, 0.0 }
 0x104   : > { %1631 = vpow2.f32 %v776_v3  ;;  %v778_v7 = vmul.f32 1.442695, %v730_v5  ;;  %v826_v11 = vmul.f32 1.442695, %v754_v6 }
 0x105   : > { %1633 = vpow2.f32 %v824_v4  ;;  %v516_v8 = vpop.f32.mrb[8].mxu0  ;;  %v612_v9 = vpop.f32.mrb[8].mxu1 }
 0x106   : > { %v1624_v10 = vpop.eup %1623  ;;  %v1926_v12 = vadd.f32 %v1891_v32, %v516_v8  ;;  %v1929_v13 = vadd.f32 %v1891_v32, %v612_v9  ;;  %v1487_v14 = vpop.f32.mrb[9].mxu0  ;;  %1635 = vpow2.f32 %v778_v7 }
 0x107   : > { %v1535_v15 = vpop.f32.mrb[9].mxu1  ;;  %v1626_v16 = vpop.eup %1625  ;;  %v1296_v17 = vadd.f32 -1.0, %v1624_v10  ;;  %1637 = vpow2.f32 %v826_v11 }
 0x108   : > { %v519_v18 = vpop.f32.mrb[10].mxu0  ;;  %v615_v19 = vpop.f32.mrb[10].mxu1  ;;  %v1320_v20 = vadd.f32 -1.0, %v1626_v16  ;;  %v731_v21 = vmin.f32 %v1926_v12, 0.0  ;;  %v755_v26 = vmin.f32 %v1929_v13, 0.0  ;;  %vm686_vm12 = vcmp.gt.f32.partialorder %v1926_v12, 0.0 }
 0x109   : > { %v1488_v22 = vpop.f32.mrb[11].mxu0  ;;  %v1536_v23 = vpop.f32.mrb[11].mxu1  ;;  %v907_v25 = vsel %vm682_vm3, %v1894_v35, %v1296_v17  ;;  %v1945_v27 = vadd.f32 %v1891_v32, %v519_v18  ;;  %v1954_v40 = vadd.f32 %v1891_v32, %v615_v19  ;;  %vm710_vm13 = vcmp.gt.f32.partialorder %v1929_v13, 0.0 }
 0x10a   : > { %v1628_v24 = vpop.eup %1627  ;;  %v1388_v29 = vpack.c.bf16 %v907_v25, %v907_v25  ;;  %v931_v30 = vsel %vm706_vm5, %v1897_v36, %v1320_v20  ;;  %v780_v33 = vmul.f32 1.442695, %v731_v21  ;;  %v828_v38 = vmul.f32 1.442695, %v755_v26 }
 0x10b   : > { %v1630_v28 = vpop.eup %1629  ;;  %v1297_v31 = vadd.f32 -1.0, %v1628_v24  ;;  %v1412_v34 = vpack.c.bf16 %v931_v30, %v931_v30  ;;  %v732_v39 = vmin.f32 %v1945_v27, 0.0  ;;  %vm687_vm14 = vcmp.gt.f32.partialorder %v1945_v27, 0.0 }
 0x10c   : > { %v1321_v37 = vadd.f32 -1.0, %v1630_v28  ;;  %1134 = vst.msk [vmem:[%s1939_s10] sm:$0xf] %vm1133_vm4, %v1388_v29  ;;  %1639 = vpow2.f32 %v780_v33  ;;  %vm711_vm15 = vcmp.gt.f32.partialorder %v1954_v40, 0.0 }
 0x10d   : > { %v908_v35 = vsel %vm683_vm6, %v1902_v45, %v1297_v31  ;;  %1158 = vst.msk [vmem:[%s1939_s10 + $0x60] sm:$0xf] %vm1133_vm4, %v1412_v34  ;;  %1641 = vpow2.f32 %v828_v38  ;;  %v524_v42 = vpop.f32.mrb[12].mxu0  ;;  %v620_v43 = vpop.f32.mrb[12].mxu1  ;;  %v782_v48 = vmul.f32 1.442695, %v732_v39 }
 0x10e   : > { %v1389_v36 = vpack.c.bf16 %v908_v35, %v908_v35  ;;  %v932_v41 = vsel %vm707_vm7, %v1905_v46, %v1321_v37  ;;  %v1632_v44 = vpop.eup %1631  ;;  %v756_v45 = vmin.f32 %v1954_v40, 0.0  ;;  %v1491_v49 = vpop.f32.mrb[13].mxu0  ;;  %v1964_v53 = vadd.f32 %v1891_v32, %v524_v42 }
 0x10f   : > { %v1413_v47 = vpack.c.bf16 %v932_v41, %v932_v41  ;;  %v1539_v50 = vpop.f32.mrb[13].mxu1  ;;  %v1634_v51 = vpop.eup %1633  ;;  %v1298_v52 = vadd.f32 -1.0, %v1632_v44  ;;  %v1967_v46 = vadd.f32 %v1891_v32, %v620_v43  ;;  %1643 = vpow2.f32 %v782_v48 }
 0x110   : > { %1135 = vst.msk [vmem:[%s1939_s10 + $0x4] sm:$0xf] %vm1133_vm4, %v1389_v36  ;;  %v527_v54 = vpop.f32.mrb[14].mxu0  ;;  %v623_v57 = vpop.f32.mrb[14].mxu1  ;;  %v1322_v58 = vadd.f32 -1.0, %v1634_v51  ;;  %v733_v3 = vmin.f32 %v1964_v53, 0.0 }
 0x111   : > { %1159 = vst.msk [vmem:[%s1939_s10 + $0x64] sm:$0xf] %vm1133_vm4, %v1413_v47  ;;  %v830_v59 = vmul.f32 1.442695, %v756_v45  ;;  %v1972_v60 = vadd.f32 %v1891_v32, %v527_v54  ;;  %v1492_v61 = vpop.f32.mrb[15].mxu0  ;;  %v1540_v62 = vpop.f32.mrb[15].mxu1  ;;  %v909_v0 = vsel %vm684_vm8, %v1910_v55, %v1298_v52  ;;  %v1986_v15 = vadd.f32 %v1891_v32, %v623_v57 }
 0x112   : > { %v1636_v63 = vpop.eup %1635  ;;  %v1390_v5 = vpack.c.bf16 %v909_v0, %v909_v0  ;;  %v933_v6 = vsel %vm708_vm9, %v1913_v56, %v1322_v58  ;;  %v784_v10 = vmul.f32 1.442695, %v733_v3  ;;  %v757_v11 = vmin.f32 %v1967_v46, 0.0 }
 0x113   : > { %v1638_v4 = vpop.eup %1637  ;;  %v1299_v7 = vadd.f32 -1.0, %v1636_v63  ;;  %1645 = vpow2.f32 %v830_v59  ;;  %v1414_v8 = vpack.c.bf16 %v933_v6, %v933_v6  ;;  %v734_v14 = vmin.f32 %v1972_v60, 0.0 }
 0x114   : > { %v1323_v9 = vadd.f32 -1.0, %v1638_v4  ;;  %1136 = vst.msk [vmem:[%s1939_s10 + $0x8] sm:$0xf] %vm1133_vm4, %v1390_v5  ;;  %1647 = vpow2.f32 %v784_v10  ;;  %v832_v17 = vmul.f32 1.442695, %v757_v11  ;;  %v758_v22 = vmin.f32 %v1986_v15, 0.0 }
 0x115   : > { %v910_v55 = vsel %vm685_vm10, %v1918_v1, %v1299_v7  ;;  %1160 = vst.msk [vmem:[%s1939_s10 + $0x68] sm:$0xf] %vm1133_vm4, %v1414_v8  ;;  %v532_v18 = vpop.f32.mrb[16].mxu0  ;;  %v628_v19 = vpop.f32.mrb[16].mxu1  ;;  %v786_v21 = vmul.f32 1.442695, %v734_v14 }
 0x116   : > { %v1391_v56 = vpack.c.bf16 %v910_v55, %v910_v55  ;;  %v934_v16 = vsel %vm709_vm11, %v1921_v2, %v1323_v9  ;;  %v1640_v20 = vpop.eup %1639  ;;  %v1495_v23 = vpop.f32.mrb[17].mxu0  ;;  %1649 = vpow2.f32 %v832_v17  ;;  %v1996_v2 = vadd.f32 %v1891_v32, %v532_v18 }
 0x117   : > { %v1415_v1 = vpack.c.bf16 %v934_v16, %v934_v16  ;;  %v1543_v24 = vpop.f32.mrb[17].mxu1  ;;  %v1642_v25 = vpop.eup %1641  ;;  %v1300_v26 = vadd.f32 -1.0, %v1640_v20  ;;  %v1999_v28 = vadd.f32 %v1891_v32, %v628_v19  ;;  %1651 = vpow2.f32 %v786_v21 }
 0x118   : > { %1137 = vst.msk [vmem:[%s1939_s10 + $0xc] sm:$0xf] %vm1133_vm4, %v1391_v56  ;;  %v535_v29 = vpop.f32.mrb[18].mxu0  ;;  %v631_v30 = vpop.f32.mrb[18].mxu1  ;;  %v1324_v31 = vadd.f32 -1.0, %v1642_v25  ;;  %v735_v39 = vmin.f32 %v1996_v2, 0.0 }
 0x119   : > { %1161 = vst.msk [vmem:[%s1939_s10 + $0x6c] sm:$0xf] %vm1133_vm4, %v1415_v1  ;;  %v834_v33 = vmul.f32 1.442695, %v758_v22  ;;  %v2004_v34 = vadd.f32 %v1891_v32, %v535_v29  ;;  %v1496_v37 = vpop.f32.mrb[19].mxu0  ;;  %v1544_v38 = vpop.f32.mrb[19].mxu1  ;;  %v911_v35 = vsel %vm686_vm12, %v1926_v12, %v1300_v26  ;;  %v2018_v50 = vadd.f32 %v1891_v32, %v631_v30 }
 0x11a   : > { %v1644_v36 = vpop.eup %1643  ;;  %v1392_v41 = vpack.c.bf16 %v911_v35, %v911_v35  ;;  %v935_v42 = vsel %vm710_vm13, %v1929_v13, %v1324_v31  ;;  %v759_v43 = vmin.f32 %v1999_v28, 0.0  ;;  %v788_v48 = vmul.f32 1.442695, %v735_v39 }
 0x11b   : > { %1653 = vpow2.f32 %v834_v33  ;;  %v1416_v44 = vpack.c.bf16 %v935_v42, %v935_v42  ;;  %v1301_v47 = vadd.f32 -1.0, %v1644_v36  ;;  %v736_v49 = vmin.f32 %v2004_v34, 0.0 }
 0x11c   : > { %1138 = vst.msk [vmem:[%s1939_s10 + $0x10] sm:$0xf] %vm1133_vm4, %v1392_v41  ;;  %v836_v12 = vmul.f32 1.442695, %v759_v43  ;;  %1655 = vpow2.f32 %v788_v48  ;;  %v760_v0 = vmin.f32 %v2018_v50, 0.0  ;;  %vm688_vm0 = vcmp.gt.f32.partialorder %v1964_v53, 0.0 }
 0x11d   : > { %v1646_v45 = vpop.eup %1645  ;;  %1162 = vst.msk [vmem:[%s1939_s10 + $0x70] sm:$0xf] %vm1133_vm4, %v1416_v44  ;;  %v912_v13 = vsel %vm687_vm14, %v1945_v27, %v1301_v47  ;;  %v540_v52 = vpop.f32.mrb[20].mxu0  ;;  %v790_v58 = vmul.f32 1.442695, %v736_v49  ;;  %vm712_vm1 = vcmp.gt.f32.partialorder %v1967_v46, 0.0 }
 0x11e   : > { %v1325_v51 = vadd.f32 -1.0, %v1646_v45  ;;  %v636_v54 = vpop.f32.mrb[20].mxu1  ;;  %v1393_v57 = vpack.c.bf16 %v912_v13, %v912_v13  ;;  %1657 = vpow2.f32 %v836_v12  ;;  %v1499_v59 = vpop.f32.mrb[21].mxu0  ;;  %v2027_v3 = vadd.f32 %v1891_v32, %v540_v52 }
 0x11f   : > { %v1547_v61 = vpop.f32.mrb[21].mxu1  ;;  %v1648_v62 = vpop.eup %1647  ;;  %v2030_v27 = vadd.f32 %v1891_v32, %v636_v54  ;;  %1659 = vpow2.f32 %v790_v58  ;;  %v838_v11 = vmul.f32 1.442695, %v760_v0  ;;  %vm689_vm2 = vcmp.gt.f32.partialorder %v1972_v60, 0.0 }
 0x120   : > { %v936_v63 = vsel %vm711_vm15, %v1954_v40, %v1325_v51  ;;  %v543_v4 = vpop.f32.mrb[22].mxu0  ;;  %v639_v5 = vpop.f32.mrb[22].mxu1  ;;  %1139 = vst.msk [vmem:[%s1939_s10 + $0x14] sm:$0xf] %vm1133_vm4, %v1393_v57  ;;  %v1302_v7 = vadd.f32 -1.0, %v1648_v62  ;;  %v737_v55 = vmin.f32 %v2027_v3, 0.0 }
 0x121   : > { %v1417_v6 = vpack.c.bf16 %v936_v63, %v936_v63  ;;  %v2035_v8 = vadd.f32 %v1891_v32, %v543_v4  ;;  %v1500_v40 = vpop.f32.mrb[23].mxu0  ;;  %v1548_v9 = vpop.f32.mrb[23].mxu1  ;;  %v761_v17 = vmin.f32 %v2030_v27, 0.0  ;;  %1661 = vpow2.f32 %v838_v11 }
 0x122   : > { %v1650_v10 = vpop.eup %1649  ;;  %v913_v56 = vsel %vm688_vm0, %v1964_v53, %v1302_v7  ;;  %v792_v20 = vmul.f32 1.442695, %v737_v55  ;;  %v2048_v24 = vadd.f32 %v1891_v32, %v639_v5  ;;  %vm713_vm3 = vcmp.gt.f32.partialorder %v1986_v15, 0.0 }
 0x123   : > { %v1652_v14 = vpop.eup %1651  ;;  %1163 = vst.msk [vmem:[%s1939_s10 + $0x74] sm:$0xf] %vm1133_vm4, %v1417_v6  ;;  %v1326_v16 = vadd.f32 -1.0, %v1650_v10  ;;  %v1394_v18 = vpack.c.bf16 %v913_v56, %v913_v56  ;;  %v840_v22 = vmul.f32 1.442695, %v761_v17  ;;  %v738_v23 = vmin.f32 %v2035_v8, 0.0 }
 0x124   : > { %v1303_v19 = vadd.f32 -1.0, %v1652_v14  ;;  %1663 = vpow2.f32 %v792_v20  ;;  %v762_v39 = vmin.f32 %v2048_v24, 0.0  ;;  %vm690_vm5 = vcmp.gt.f32.partialorder %v1996_v2, 0.0 }
 0x125   : > { %v1654_v1 = vpop.eup %1653  ;;  %v937_v21 = vsel %vm712_vm1, %v1967_v46, %v1326_v16  ;;  %1140 = vst.msk [vmem:[%s1939_s10 + $0x18] sm:$0xf] %vm1133_vm4, %v1394_v18  ;;  %v548_v29 = vpop.f32.mrb[24].mxu0  ;;  %1665 = vpow2.f32 %v840_v22  ;;  %v794_v46 = vmul.f32 1.442695, %v738_v23  ;;  %vm714_vm6 = vcmp.gt.f32.partialorder %v1999_v28, 0.0 }
 0x126   : > { %v1418_v53 = vpack.c.bf16 %v937_v21, %v937_v21  ;;  %v914_v25 = vsel %vm689_vm2, %v1972_v60, %v1303_v19  ;;  %v1327_v26 = vadd.f32 -1.0, %v1654_v1  ;;  %v644_v30 = vpop.f32.mrb[24].mxu1  ;;  %v1503_v33 = vpop.f32.mrb[25].mxu0  ;;  %v2059_v60 = vadd.f32 %v1891_v32, %v548_v29 }
 0x127   : > { %v1395_v31 = vpack.c.bf16 %v914_v25, %v914_v25  ;;  %v1551_v37 = vpop.f32.mrb[25].mxu1  ;;  %v1656_v38 = vpop.eup %1655  ;;  %v2062_v36 = vadd.f32 %v1891_v32, %v644_v30  ;;  %1667 = vpow2.f32 %v794_v46  ;;  %v842_v49 = vmul.f32 1.442695, %v762_v39 }
 0x128   : > { %1164 = vst.msk [vmem:[%s1939_s10 + $0x78] sm:$0xf] %vm1133_vm4, %v1418_v53  ;;  %v938_v35 = vsel %vm713_vm3, %v1986_v15, %v1327_v26  ;;  %v551_v41 = vpop.f32.mrb[26].mxu0  ;;  %v647_v42 = vpop.f32.mrb[26].mxu1  ;;  %v1304_v47 = vadd.f32 -1.0, %v1656_v38  ;;  %v739_v13 = vmin.f32 %v2059_v60, 0.0 }
 0x129   : > { %v1658_v43 = vpop.eup %1657  ;;  %1141 = vst.msk [vmem:[%s1939_s10 + $0x1c] sm:$0xf] %vm1133_vm4, %v1395_v31  ;;  %v1419_v44 = vpack.c.bf16 %v938_v35, %v938_v35  ;;  %v2067_v48 = vadd.f32 %v1891_v32, %v551_v41  ;;  %v1504_v15 = vpop.f32.mrb[27].mxu0  ;;  %vm691_vm7 = vcmp.gt.f32.partialorder %v2004_v34, 0.0  ;;  %v763_v54 = vmin.f32 %v2062_v36, 0.0 }
 0x12a   : > { %v1552_v45 = vpop.f32.mrb[27].mxu1  ;;  %v1328_v12 = vadd.f32 -1.0, %v1658_v43  ;;  %v1660_v51 = vpop.eup %1659  ;;  %v915_v52 = vsel %vm690_vm5, %v1996_v2, %v1304_v47  ;;  %1669 = vpow2.f32 %v842_v49  ;;  %v796_v62 = vmul.f32 1.442695, %v739_v13 }
 0x12b   : > { %1165 = vst.msk [vmem:[%s1939_s10 + $0x7c] sm:$0xf] %vm1133_vm4, %v1419_v44  ;;  %v1396_v57 = vpack.c.bf16 %v915_v52, %v915_v52  ;;  %v1305_v59 = vadd.f32 -1.0, %v1660_v51  ;;  %v844_v63 = vmul.f32 1.442695, %v763_v54  ;;  %v740_v0 = vmin.f32 %v2067_v48, 0.0  ;;  %v1662_v4 = vpop.eup %1661 }
 0x12c   : > { %v939_v58 = vsel %vm714_vm6, %v1999_v28, %v1328_v12  ;;  %vm715_vm8 = vcmp.gt.f32.partialorder %v2018_v50, 0.0  ;;  %v2084_v5 = vadd.f32 %v1891_v32, %v647_v42  ;;  %v1329_v40 = vadd.f32 -1.0, %v1662_v4 }
 0x12d   : > { %v1420_v61 = vpack.c.bf16 %v939_v58, %v939_v58  ;;  %1142 = vst.msk [vmem:[%s1939_s10 + $0x20] sm:$0xf] %vm1133_vm4, %v1396_v57  ;;  %v916_v2 = vsel %vm691_vm7, %v2004_v34, %v1305_v59  ;;  %v556_v6 = vpop.f32.mrb[28].mxu0  ;;  %v652_v7 = vpop.f32.mrb[28].mxu1  ;;  %1671 = vpow2.f32 %v796_v62  ;;  %v798_v9 = vmul.f32 1.442695, %v740_v0 }
 0x12e   : > { %v1397_v28 = vpack.c.bf16 %v916_v2, %v916_v2  ;;  %v1507_v10 = vpop.f32.mrb[29].mxu0  ;;  %v1555_v11 = vpop.f32.mrb[29].mxu1  ;;  %vm692_vm9 = vcmp.gt.f32.partialorder %v2027_v3, 0.0  ;;  %1673 = vpow2.f32 %v844_v63  ;;  %v764_v34 = vmin.f32 %v2084_v5, 0.0 }
 0x12f   : > { %1166 = vst.msk [vmem:[%s1939_s10 + $0x80] sm:$0xf] %vm1133_vm4, %v1420_v61  ;;  %v1664_v55 = vpop.eup %1663  ;;  %v2091_v14 = vadd.f32 %v1891_v32, %v556_v6  ;;  %v559_v56 = vpop.f32.mrb[30].mxu0  ;;  %v940_v18 = vsel %vm715_vm8, %v2018_v50, %v1329_v40  ;;  %1675 = vpow2.f32 %v798_v9  ;;  %v2099_v20 = vadd.f32 %v1891_v32, %v652_v7 }
 0x130   : > { %v655_v16 = vpop.f32.mrb[30].mxu1  ;;  %v1666_v17 = vpop.eup %1665  ;;  %1143 = vst.msk [vmem:[%s1939_s10 + $0x24] sm:$0xf] %vm1133_vm4, %v1397_v28  ;;  %v1306_v19 = vadd.f32 -1.0, %v1664_v55  ;;  %v1421_v22 = vpack.c.bf16 %v940_v18, %v940_v18  ;;  %vm716_vm10 = vcmp.gt.f32.partialorder %v2030_v27, 0.0  ;;  %vm693_vm11 = vcmp.gt.f32.partialorder %v2035_v8, 0.0 }
 0x131   : > { %v1508_v1 = vpop.f32.mrb[31].mxu0  ;;  %v1556_v21 = vpop.f32.mrb[31].mxu1  ;;  %v1330_v23 = vadd.f32 -1.0, %v1666_v17  ;;  %v846_v53 = vmul.f32 1.442695, %v764_v34  ;;  %v741_v50 = vmin.f32 %v2091_v14, 0.0  ;;  %v2112_v35 = vadd.f32 %v1891_v32, %v559_v56 }
 0x132   : > { %v1668_v25 = vpop.eup %1667  ;;  %v917_v26 = vsel %vm692_vm9, %v2027_v3, %v1306_v19  ;;  %v765_v29 = vmin.f32 %v2099_v20, 0.0  ;;  %1167 = vst.msk [vmem:[%s1939_s10 + $0x84] sm:$0xf] %vm1133_vm4, %v1421_v22  ;;  %v2118_v41 = vadd.f32 %v1891_v32, %v655_v16  ;;  %vm717_vm12 = vcmp.gt.f32.partialorder %v2048_v24, 0.0 }
 0x133   : > { %v1398_v30 = vpack.c.bf16 %v917_v26, %v917_v26  ;;  %v941_v31 = vsel %vm716_vm10, %v2030_v27, %v1330_v23  ;;  %v1307_v46 = vadd.f32 -1.0, %v1668_v25  ;;  %1677 = vpow2.f32 %v846_v53 }
 0x134   : > { %v1422_v33 = vpack.c.bf16 %v941_v31, %v941_v31  ;;  %v800_v37 = vmul.f32 1.442695, %v741_v50  ;;  %v848_v38 = vmul.f32 1.442695, %v765_v29  ;;  %v1670_v3 = vpop.eup %1669  ;;  %vm694_vm13 = vcmp.gt.f32.partialorder %v2059_v60, 0.0 }
 0x135   : > { %1144 = vst.msk [vmem:[%s1939_s10 + $0x28] sm:$0xf] %vm1133_vm4, %v1398_v30  ;;  %v918_v39 = vsel %vm693_vm11, %v2035_v8, %v1307_v46  ;;  %v564_v42 = vpop.f32.mrb[32].mxu0  ;;  %v660_v43 = vpop.f32.mrb[32].mxu1  ;;  %v1331_v44 = vadd.f32 -1.0, %v1670_v3  ;;  %v742_v8 = vmin.f32 %v2112_v35, 0.0 }
 0x136   : > { %1168 = vst.msk [vmem:[%s1939_s10 + $0x88] sm:$0xf] %vm1133_vm4, %v1422_v33  ;;  %v1399_v27 = vpack.c.bf16 %v918_v39, %v918_v39  ;;  %1679 = vpow2.f32 %v800_v37  ;;  %v1511_v47 = vpop.f32.mrb[33].mxu0  ;;  %v1559_v15 = vpop.f32.mrb[33].mxu1  ;;  %v766_v45 = vmin.f32 %v2118_v41, 0.0  ;;  %vm718_vm14 = vcmp.gt.f32.partialorder %v2062_v36, 0.0 }
 0x137   : > { %1681 = vpow2.f32 %v848_v38  ;;  %v567_v12 = vpop.f32.mrb[34].mxu0  ;;  %v663_v49 = vpop.f32.mrb[34].mxu1  ;;  %v942_v51 = vsel %vm717_vm12, %v2048_v24, %v1331_v44  ;;  %v2131_v52 = vadd.f32 %v1891_v32, %v564_v42  ;;  %v2134_v54 = vadd.f32 %v1891_v32, %v660_v43 }
 0x138   : > { %v1672_v13 = vpop.eup %1671  ;;  %1145 = vst.msk [vmem:[%s1939_s10 + $0x2c] sm:$0xf] %vm1133_vm4, %v1399_v27  ;;  %v1512_v57 = vpop.f32.mrb[35].mxu0  ;;  %v1423_v61 = vpack.c.bf16 %v942_v51, %v942_v51  ;;  %v802_v63 = vmul.f32 1.442695, %v742_v8  ;;  %vm695_vm15 = vcmp.gt.f32.partialorder %v2067_v48, 0.0  ;;  %v2139_v6 = vadd.f32 %v1891_v32, %v567_v12 }
 0x139   : > { %v1560_v58 = vpop.f32.mrb[35].mxu1  ;;  %v1674_v59 = vpop.eup %1673  ;;  %v1308_v62 = vadd.f32 -1.0, %v1672_v13  ;;  %v850_v0 = vmul.f32 1.442695, %v766_v45  ;;  %v743_v24 = vmin.f32 %v2131_v52, 0.0  ;;  %v767_v40 = vmin.f32 %v2134_v54, 0.0 }
 0x13a   : > { %v1676_v4 = vpop.eup %1675  ;;  %v1332_v2 = vadd.f32 -1.0, %v1674_v59  ;;  %1169 = vst.msk [vmem:[%s1939_s10 + $0x8c] sm:$0xf] %vm1133_vm4, %v1423_v61  ;;  %1683 = vpow2.f32 %v802_v63  ;;  %vm719_vm0 = vcmp.gt.f32.partialorder %v2084_v5, 0.0  ;;  %vm696_vm1 = vcmp.gt.f32.partialorder %v2091_v14, 0.0 }
 0x13b   : > { %v919_v7 = vsel %vm694_vm13, %v2059_v60, %v1308_v62  ;;  %v1309_v28 = vadd.f32 -1.0, %v1676_v4  ;;  %1685 = vpow2.f32 %v850_v0  ;;  %v804_v11 = vmul.f32 1.442695, %v743_v24 }
 0x13c   : > { %v1400_v9 = vpack.c.bf16 %v919_v7, %v919_v7  ;;  %v943_v10 = vsel %vm718_vm14, %v2062_v36, %v1332_v2  ;;  %v852_v16 = vmul.f32 1.442695, %v767_v40  ;;  %v744_v36 = vmin.f32 %v2139_v6, 0.0 }
 0x13d   : > { %v1678_v55 = vpop.eup %1677  ;;  %v1424_v34 = vpack.c.bf16 %v943_v10, %v943_v10  ;;  %v920_v56 = vsel %vm695_vm15, %v2067_v48, %v1309_v28  ;;  %v572_v60 = vpop.f32.mrb[36].mxu0  ;;  %1687 = vpow2.f32 %v804_v11  ;;  %v2158_v48 = vadd.f32 %v1891_v32, %v663_v49 }
 0x13e   : > { %v668_v17 = vpop.f32.mrb[36].mxu1  ;;  %1146 = vst.msk [vmem:[%s1939_s10 + $0x30] sm:$0xf] %vm1133_vm4, %v1400_v9  ;;  %v1401_v18 = vpack.c.bf16 %v920_v56, %v920_v56  ;;  %v1333_v19 = vadd.f32 -1.0, %v1678_v55  ;;  %v1515_v1 = vpop.f32.mrb[37].mxu0  ;;  %1689 = vpow2.f32 %v852_v16  ;;  %v2161_v22 = vadd.f32 %v1891_v32, %v572_v60 }
 0x13f   : > { %v1563_v21 = vpop.f32.mrb[37].mxu1  ;;  %1170 = vst.msk [vmem:[%s1939_s10 + $0x90] sm:$0xf] %vm1133_vm4, %v1424_v34  ;;  %v2164_v23 = vadd.f32 %v1891_v32, %v668_v17  ;;  %v575_v53 = vpop.f32.mrb[38].mxu0  ;;  %v806_v29 = vmul.f32 1.442695, %v744_v36 }
 0x140   : > { %v671_v25 = vpop.f32.mrb[38].mxu1  ;;  %v1680_v26 = vpop.eup %1679  ;;  %1147 = vst.msk [vmem:[%s1939_s10 + $0x34] sm:$0xf] %vm1133_vm4, %v1401_v18  ;;  %v944_v50 = vsel %vm719_vm0, %v2084_v5, %v1333_v19  ;;  %v768_v38 = vmin.f32 %v2158_v48, 0.0  ;;  %v2174_v3 = vadd.f32 %v1891_v32, %v575_v53  ;;  %v745_v42 = vmin.f32 %v2161_v22, 0.0 }
 0x141   : > { %v1516_v30 = vpop.f32.mrb[39].mxu0  ;;  %v1564_v31 = vpop.f32.mrb[39].mxu1  ;;  %v1425_v33 = vpack.c.bf16 %v944_v50, %v944_v50  ;;  %v1310_v37 = vadd.f32 -1.0, %v1680_v26  ;;  %1691 = vpow2.f32 %v806_v29  ;;  %v2178_v43 = vadd.f32 %v1891_v32, %v671_v25 }
 0x142   : > { %v1682_v46 = vpop.eup %1681  ;;  %vm720_vm2 = vcmp.gt.f32.partialorder %v2099_v20, 0.0  ;;  %v854_v27 = vmul.f32 1.442695, %v768_v38  ;;  %v769_v44 = vmin.f32 %v2164_v23, 0.0  ;;  %vm697_vm3 = vcmp.gt.f32.partialorder %v2112_v35, 0.0 }
 0x143   : > { %v1334_v39 = vadd.f32 -1.0, %v1682_v46  ;;  %1171 = vst.msk [vmem:[%s1939_s10 + $0x94] sm:$0xf] %vm1133_vm4, %v1425_v33  ;;  %v921_v5 = vsel %vm696_vm1, %v2091_v14, %v1310_v37  ;;  %v808_v8 = vmul.f32 1.442695, %v745_v42  ;;  %v746_v13 = vmin.f32 %v2174_v3, 0.0 }
 0x144   : > { %v1402_v47 = vpack.c.bf16 %v921_v5, %v921_v5  ;;  %v1684_v45 = vpop.eup %1683  ;;  %1693 = vpow2.f32 %v854_v27  ;;  %v856_v49 = vmul.f32 1.442695, %v769_v44  ;;  %vm721_vm5 = vcmp.gt.f32.partialorder %v2118_v41, 0.0 }
 0x145   : > { %v945_v15 = vsel %vm720_vm2, %v2099_v20, %v1334_v39  ;;  %v580_v14 = vpop.f32.mrb[40].mxu0  ;;  %v676_v51 = vpop.f32.mrb[40].mxu1  ;;  %v1311_v58 = vadd.f32 -1.0, %v1684_v45  ;;  %1695 = vpow2.f32 %v808_v8  ;;  %v770_v20 = vmin.f32 %v2178_v43, 0.0 }
 0x146   : > { %v1426_v12 = vpack.c.bf16 %v945_v15, %v945_v15  ;;  %v1686_v57 = vpop.eup %1685  ;;  %1148 = vst.msk [vmem:[%s1939_s10 + $0x38] sm:$0xf] %vm1133_vm4, %v1402_v47  ;;  %v1519_v59 = vpop.f32.mrb[41].mxu0  ;;  %1697 = vpow2.f32 %v856_v49  ;;  %v810_v63 = vmul.f32 1.442695, %v746_v13  ;;  %v2195_v0 = vadd.f32 %v1891_v32, %v580_v14 }
 0x147   : > { %v1567_v61 = vpop.f32.mrb[41].mxu1  ;;  %v1335_v62 = vadd.f32 -1.0, %v1686_v57  ;;  %v583_v4 = vpop.f32.mrb[42].mxu0  ;;  %v922_v7 = vsel %vm697_vm3, %v2112_v35, %v1311_v58  ;;  %v858_v28 = vmul.f32 1.442695, %v770_v20  ;;  %v2201_v40 = vadd.f32 %v1891_v32, %v676_v51 }
 0x148   : > { %1172 = vst.msk [vmem:[%s1939_s10 + $0x98] sm:$0xf] %vm1133_vm4, %v1426_v12  ;;  %v679_v2 = vpop.f32.mrb[42].mxu1  ;;  %v1688_v24 = vpop.eup %1687  ;;  %v2204_v9 = vadd.f32 %v1891_v32, %v583_v4  ;;  %v1403_v34 = vpack.c.bf16 %v922_v7, %v922_v7  ;;  %1699 = vpow2.f32 %v810_v63  ;;  %vm698_vm6 = vcmp.gt.f32.partialorder %v2131_v52, 0.0 }
 0x149   : > { %v1520_v10 = vpop.f32.mrb[43].mxu0  ;;  %v1568_v11 = vpop.f32.mrb[43].mxu1  ;;  %v946_v56 = vsel %vm721_vm5, %v2118_v41, %v1335_v62  ;;  %v1312_v16 = vadd.f32 -1.0, %v1688_v24  ;;  %1701 = vpow2.f32 %v858_v28  ;;  %vm722_vm7 = vcmp.gt.f32.partialorder %v2134_v54, 0.0 }
 0x14a   : > { %v1690_v55 = vpop.eup %1689  ;;  %v1427_v60 = vpack.c.bf16 %v946_v56, %v946_v56  ;;  %1149 = vst.msk [vmem:[%s1939_s10 + $0x3c] sm:$0xf] %vm1133_vm4, %v1403_v34  ;;  %v747_v18 = vmin.f32 %v2195_v0, 0.0  ;;  %v771_v19 = vmin.f32 %v2201_v40, 0.0  ;;  %v748_v21 = vmin.f32 %v2204_v9, 0.0 }
 0x14b   : > { %v1336_v35 = vadd.f32 -1.0, %v1690_v55  ;;  %v923_v17 = vsel %vm698_vm6, %v2131_v52, %v1312_v16  ;;  %v1692_v36 = vpop.eup %1691  ;;  %vm699_vm8 = vcmp.gt.f32.partialorder %v2139_v6, 0.0  ;;  %vm723_vm9 = vcmp.gt.f32.partialorder %v2158_v48, 0.0 }
 0x14c   : > { %1173 = vst.msk [vmem:[%s1939_s10 + $0x9c] sm:$0xf] %vm1133_vm4, %v1427_v60  ;;  %v1404_v41 = vpack.c.bf16 %v923_v17, %v923_v17  ;;  %v1313_v25 = vadd.f32 -1.0, %v1692_v36  ;;  %v812_v26 = vmul.f32 1.442695, %v747_v18  ;;  %vm700_vm10 = vcmp.gt.f32.partialorder %v2161_v22, 0.0 }
 0x14d   : > { %v947_v1 = vsel %vm722_vm7, %v2134_v54, %v1336_v35  ;;  %v860_v50 = vmul.f32 1.442695, %v771_v19  ;;  %v588_v52 = vpop.f32.mrb[44].mxu0  ;;  %v814_v29 = vmul.f32 1.442695, %v748_v21  ;;  %vm724_vm11 = vcmp.gt.f32.partialorder %v2164_v23, 0.0 }
 0x14e   : > { %v1428_v53 = vpack.c.bf16 %v947_v1, %v947_v1  ;;  %1150 = vst.msk [vmem:[%s1939_s10 + $0x40] sm:$0xf] %vm1133_vm4, %v1404_v41  ;;  %v2224_v30 = vadd.f32 %v1891_v32, %v588_v52  ;;  %v1523_v31 = vpop.f32.mrb[45].mxu0  ;;  %v1694_v46 = vpop.eup %1693  ;;  %v924_v54 = vsel %vm699_vm8, %v2139_v6, %v1313_v25  ;;  %1703 = vpow2.f32 %v812_v26 }
 0x14f   : > { %v591_v33 = vpop.f32.mrb[46].mxu0  ;;  %v1696_v37 = vpop.eup %1695  ;;  %v1405_v38 = vpack.c.bf16 %v924_v54, %v924_v54  ;;  %v1337_v39 = vadd.f32 -1.0, %v1694_v46  ;;  %1705 = vpow2.f32 %v860_v50  ;;  %vm701_vm12 = vcmp.gt.f32.partialorder %v2174_v3, 0.0 }
 0x150   : > { %1174 = vst.msk [vmem:[%s1939_s10 + $0xa0] sm:$0xf] %vm1133_vm4, %v1428_v53  ;;  %v1524_v42 = vpop.f32.mrb[47].mxu0  ;;  %v1698_v5 = vpop.eup %1697  ;;  %v1314_v27 = vadd.f32 -1.0, %v1696_v37  ;;  %1707 = vpow2.f32 %v814_v29  ;;  %v749_v44 = vmin.f32 %v2224_v30, 0.0  ;;  %v592_v47 = vadd.f32 %v1891_v32, %v591_v33 }
 0x151   : > { %1151 = vst.msk [vmem:[%s1939_s10 + $0x44] sm:$0xf] %vm1133_vm4, %v1405_v38  ;;  %v948_v6 = vsel %vm723_vm9, %v2158_v48, %v1337_v39  ;;  %v1338_v15 = vadd.f32 -1.0, %v1698_v5  ;;  %vm725_vm13 = vcmp.gt.f32.partialorder %v2178_v43, 0.0  ;;  %vm702_vm14 = vcmp.gt.f32.partialorder %v2195_v0, 0.0 }
 0x152   : > { %v1700_v8 = vpop.eup %1699  ;;  %v1429_v45 = vpack.c.bf16 %v948_v6, %v948_v6  ;;  %v925_v12 = vsel %vm700_vm10, %v2161_v22, %v1314_v27  ;;  %v816_v49 = vmul.f32 1.442695, %v749_v44  ;;  %v750_v57 = vmin.f32 %v592_v47, 0.0 }
 0x153   : > { %v1702_v13 = vpop.eup %1701  ;;  %v1406_v14 = vpack.c.bf16 %v925_v12, %v925_v12  ;;  %v949_v32 = vsel %vm724_vm11, %v2164_v23, %v1338_v15  ;;  %v1315_v51 = vadd.f32 -1.0, %v1700_v8  ;;  %vm726_vm15 = vcmp.gt.f32.partialorder %v2201_v40, 0.0 }
 0x154   : > { %1175 = vst.msk [vmem:[%s1939_s10 + $0xa4] sm:$0xf] %vm1133_vm4, %v1429_v45  ;;  %v1430_v48 = vpack.c.bf16 %v949_v32, %v949_v32  ;;  %v1339_v58 = vadd.f32 -1.0, %v1702_v13  ;;  %1709 = vpow2.f32 %v816_v49  ;;  %v818_v20 = vmul.f32 1.442695, %v750_v57 }
 0x155   : > { %1152 = vst.msk [vmem:[%s1939_s10 + $0x48] sm:$0xf] %vm1133_vm4, %v1406_v14  ;;  %v926_v22 = vsel %vm701_vm12, %v2174_v3, %v1315_v51  ;;  %vm703_vm0 = vcmp.gt.f32.partialorder %v2204_v9, 0.0  ;;  %vm704_vm1 = vcmp.gt.f32.partialorder %v2224_v30, 0.0  ;;  %vm705_vm2 = vcmp.gt.f32.partialorder %v592_v47, 0.0 }
 0x156   : > { %1176 = vst.msk [vmem:[%s1939_s10 + $0xa8] sm:$0xf] %vm1133_vm4, %v1430_v48  ;;  %v1407_v23 = vpack.c.bf16 %v926_v22, %v926_v22  ;;  %v950_v59 = vsel %vm725_vm13, %v2178_v43, %v1339_v58  ;;  %1711 = vpow2.f32 %v818_v20 }
 0x157   : > { %v1431_v61 = vpack.c.bf16 %v950_v59, %v950_v59 }
 0x158   : > { %v1704_v62 = vpop.eup %1703  ;;  %1153 = vst.msk [vmem:[%s1939_s10 + $0x4c] sm:$0xf] %vm1133_vm4, %v1407_v23 }
 0x159   : > { %v1706_v63 = vpop.eup %1705  ;;  %1177 = vst.msk [vmem:[%s1939_s10 + $0xac] sm:$0xf] %vm1133_vm4, %v1431_v61  ;;  %v1316_v4 = vadd.f32 -1.0, %v1704_v62 }
 0x15a   : > { %v1708_v3 = vpop.eup %1707  ;;  %v1340_v2 = vadd.f32 -1.0, %v1706_v63 }
 0x15b   : > { %v927_v24 = vsel %vm702_vm14, %v2195_v0, %v1316_v4  ;;  %v1317_v43 = vadd.f32 -1.0, %v1708_v3 }
 0x15c   : > { %v1408_v7 = vpack.c.bf16 %v927_v24, %v927_v24  ;;  %v951_v28 = vsel %vm726_vm15, %v2201_v40, %v1340_v2 }
 0x15d   : > { %v1432_v10 = vpack.c.bf16 %v951_v28, %v951_v28  ;;  %v928_v11 = vsel %vm703_vm0, %v2204_v9, %v1317_v43 }
 0x15e   : > { %v1710_v55 = vpop.eup %1709  ;;  %1154 = vst.msk [vmem:[%s1939_s10 + $0x50] sm:$0xf] %vm1133_vm4, %v1408_v7  ;;  %v1409_v34 = vpack.c.bf16 %v928_v11, %v928_v11 }
 0x15f   : > { %1178 = vst.msk [vmem:[%s1939_s10 + $0xb0] sm:$0xf] %vm1133_vm4, %v1432_v10  ;;  %v1318_v0 = vadd.f32 -1.0, %v1710_v55 }
 0x160   : > { %1155 = vst.msk [vmem:[%s1939_s10 + $0x54] sm:$0xf] %vm1133_vm4, %v1409_v34  ;;  %v1712_v56 = vpop.eup %1711 }
 0x161   : > { %v929_v40 = vsel %vm704_vm1, %v2224_v30, %v1318_v0  ;;  %v1319_v60 = vadd.f32 -1.0, %v1712_v56 }
 0x162   : > { %v1410_v16 = vpack.c.bf16 %v929_v40, %v929_v40 }
 0x163   : > { %v930_v9 = vsel %vm705_vm2, %v592_v47, %v1319_v60 }
 0x164   : > { %1156 = vst.msk [vmem:[%s1939_s10 + $0x58] sm:$0xf] %vm1133_vm4, %v1410_v16  ;;  %v1411_v35 = vpack.c.bf16 %v930_v9, %v930_v9 }
 0x166   : > { %1157 = vst.msk [vmem:[%s1939_s10 + $0x5c] sm:$0xf] %vm1133_vm4, %v1411_v35 }
 0x167 PF: > { %s13_s12 = sadd.s32 1, %s1719_s12  }
 0x168   : > { %p10_p4 = scmp.ge.s32.totalorder %s13_s12, 7  }
 0x16a   :  { %12 = sbr.rel (!%p10_p4) target bundleno = 1 (0x1), region = 62 }

// kernel: discrete_policy_cnn_forward.7
= control target key start
LH: loop header
LB: loop body
LE: loop exit
PB: predicated region body
PF: predicated region fallthrough
CT: control target
= control target key end

     0   :  { %v2959_v0 = vmov 0   ;;  %vm1060_vm0 = vcmask 1043456   ;;  %vm993_vm1 = vcmask 719872   ;;  %vm2119_vm3 = vcmask 289792   ;;  %s4284_s1 = inlined_call_operand.vmem [shape: bf16[600,36], index: 1, kind: input, shape index: {}]   ;;  %s4285_s0 = inlined_call_operand.vmem [shape: bf16[338,600], index: 0, kind: input, shape index: {}]   ;;  %s4286_s2 = inlined_call_operand.vmem [shape: f32[1,36], index: 2, kind: input, shape index: {}]   ;;  %s4287_s3 = inlined_call_operand.vmem [shape: bf16[338,36], index: 3, kind: output, shape index: {}]  }
   0x1   :  { %1064 = vmatprep.subr.bf16.mxu0 %v2959_v0  ;;  %2552 = vmatprep.subr.bf16.mxu1 %v2959_v0  ;;  %v2682_v1 = vld [vmem:[%s4284_s1] sm:$0xff]   ;;  %v2684_v3 = vld [vmem:[%s4284_s1 + $0x8] sm:$0xff]   ;;  %v2686_v5 = vld [vmem:[%s4284_s1 + $0x10] sm:$0xff]  }
   0x2   :  { %v2988_v2 = vld [vmem:[%s4284_s1 + $0x80] sm:$0xff]   ;;  %1065 = vmatpush1.bf16.msra.mxu0 %v2682_v1  ;;  %v2998_v4 = vld [vmem:[%s4284_s1 + $0x88] sm:$0xff]   ;;  %v3009_v6 = vld [vmem:[%s4284_s1 + $0x90] sm:$0xff]  }
   0x3   :  { %2568 = vmatpush1.bf16.msra.mxu1 %v2988_v2  ;;  %1066 = vmatprep.subr.bf16.mxu0 %v2959_v0  ;;  %v2688_v7 = vld [vmem:[%s4284_s1 + $0x18] sm:$0xff]   ;;  %v2690_v9 = vld [vmem:[%s4284_s1 + $0x20] sm:$0xff]   ;;  %v2692_v11 = vld [vmem:[%s4284_s1 + $0x28] sm:$0xff]  }
   0x4   :  { %2553 = vmatprep.subr.bf16.mxu1 %v2959_v0  ;;  %v3020_v8 = vld [vmem:[%s4284_s1 + $0x98] sm:$0xff]   ;;  %v3031_v10 = vld [vmem:[%s4284_s1 + $0xa0] sm:$0xff]   ;;  %v3042_v12 = vld [vmem:[%s4284_s1 + $0xa8] sm:$0xff]  }
   0x5   :  { %v2694_v13 = vld [vmem:[%s4284_s1 + $0x30] sm:$0xff]   ;;  %v2696_v15 = vld [vmem:[%s4284_s1 + $0x38] sm:$0xff]   ;;  %v2698_v17 = vld [vmem:[%s4284_s1 + $0x40] sm:$0xff]  }
   0x6   :  { %1067 = vmatpush1.bf16.msra.mxu0 %v2684_v3  ;;  %v3053_v14 = vld [vmem:[%s4284_s1 + $0xb0] sm:$0xff]   ;;  %v3064_v16 = vld [vmem:[%s4284_s1 + $0xb8] sm:$0xff]   ;;  %v3075_v18 = vld [vmem:[%s4284_s1 + $0xc0] sm:$0xff]  }
   0x7   :  { %2569 = vmatpush1.bf16.msra.mxu1 %v2998_v4  ;;  %1068 = vmatprep.subr.bf16.mxu0 %v2959_v0  ;;  %v2716_v19 = vld [vmem:[%s4285_s0 + $0x4] ss:$20 sps:$4 sm:$0xff]   ;;  %v2700_v20 = vld [vmem:[%s4284_s1 + $0x48] sm:$0xff]   ;;  %v2719_v21 = vld [vmem:[%s4285_s0 + $0xfc] ss:$20 sps:$4 sm:$0xff]  }
   0x8   :  { %2554 = vmatprep.subr.bf16.mxu1 %v2959_v0  ;;  %v3092_v22 = vld [vmem:[%s4284_s1 + $0xc8] sm:$0xff]   ;;  %1096 = vmatprep.mubr.bf16.mxu0 %v2716_v19  ;;  %v2702_v23 = vld [vmem:[%s4284_s1 + $0x50] sm:$0xff]   ;;  %v2704_v25 = vld [vmem:[%s4284_s1 + $0x58] sm:$0xff]  }
   0x9   :  { %1352 = vmatprep.mubr.bf16.mxu1 %v2719_v21  ;;  %v3103_v24 = vld [vmem:[%s4284_s1 + $0xd0] sm:$0xff]   ;;  %v3114_v26 = vld [vmem:[%s4284_s1 + $0xd8] sm:$0xff]   ;;  %v2706_v27 = vld [vmem:[%s4284_s1 + $0x60] sm:$0xff]  }
   0xa   :  { %1069 = vmatpush1.bf16.msra.mxu0 %v2686_v5  ;;  %v3125_v28 = vld [vmem:[%s4284_s1 + $0xe0] sm:$0xff]   ;;  %v2708_v29 = vld [vmem:[%s4284_s1 + $0x68] sm:$0xff]   ;;  %v2710_v31 = vld [vmem:[%s4284_s1 + $0x70] sm:$0xff]  }
   0xb   :  { %2570 = vmatpush1.bf16.msra.mxu1 %v3009_v6  ;;  %1070 = vmatprep.subr.bf16.mxu0 %v2959_v0  ;;  %v3136_v30 = vld [vmem:[%s4284_s1 + $0xe8] sm:$0xff]   ;;  %v3147_v32 = vld [vmem:[%s4284_s1 + $0xf0] sm:$0xff]   ;;  %v2712_v33 = vld [vmem:[%s4284_s1 + $0x78] sm:$0xff]  }
   0xc   :  { %2555 = vmatprep.subr.bf16.mxu1 %v2959_v0  ;;  %v3158_v34 = vld [vmem:[%s4284_s1 + $0xf8] sm:$0xff]   ;;  %v2726_v35 = vld [vmem:[%s4284_s1 + $0x100] sm:$0xff]   ;;  %v2743_v40 = vld [vmem:[%s4284_s1 + $0x108] sm:$0xff]  }
   0xd   :  { %v2714_v36 = vld [vmem:[%s4285_s0] ss:$20 sps:$4 sm:$0xff]   ;;  %v2717_v37 = vld [vmem:[%s4285_s0 + $0xf8] ss:$20 sps:$4 sm:$0xff]   ;;  %v2724_v41 = vld [vmem:[%s4285_s0 + $0x28] ss:$20 sps:$4 sm:$0xff]  }
   0xe   :  { %1071 = vmatpush1.bf16.msra.mxu0 %v2688_v7  ;;  %v2720_v38 = vld [vmem:[%s4285_s0 + $0x2c] ss:$20 sps:$4 sm:$0xff]   ;;  %v2722_v39 = vld [vmem:[%s4285_s0 + $0x124] ss:$20 sps:$4 sm:$0xff]   ;;  %v2758_v43 = vld [vmem:[%s4284_s1 + $0x110] sm:$0xff]  }
   0xf   :  { %2571 = vmatpush1.bf16.msra.mxu1 %v3020_v8  ;;  %1072 = vmatprep.subr.bf16.mxu0 %v2959_v0  ;;  %v2725_v42 = vld [vmem:[%s4285_s0 + $0x120] ss:$20 sps:$4 sm:$0xff]   ;;  %v2777_v46 = vld [vmem:[%s4284_s1 + $0x118] sm:$0xff]   ;;  %v2731_v47 = vld [vmem:[%s4285_s0 + $0x50] ss:$20 sps:$4 sm:$0xff]  }
  0x10   :  { %2556 = vmatprep.subr.bf16.mxu1 %v2959_v0  ;;  %v2727_v44 = vld [vmem:[%s4285_s0 + $0x54] ss:$20 sps:$4 sm:$0xff]   ;;  %v2729_v45 = vld [vmem:[%s4285_s0 + $0x14c] ss:$20 sps:$4 sm:$0xff]   ;;  %v2733_v50 = vld [vmem:[%s4285_s0 + $0x7c] ss:$20 sps:$4 sm:$0xff]  }
  0x11   :  { %v2794_v48 = vld [vmem:[%s4284_s1 + $0x120] sm:$0xff]   ;;  %v2732_v49 = vld [vmem:[%s4285_s0 + $0x148] ss:$20 sps:$4 sm:$0xff]   ;;  %v2737_v53 = vld [vmem:[%s4285_s0 + $0x78] ss:$20 sps:$4 sm:$0xff]  }
  0x12   :  { %1073 = vmatpush1.bf16.msra.mxu0 %v2690_v9  ;;  %v2735_v51 = vld [vmem:[%s4285_s0 + $0x174] ss:$20 sps:$4 sm:$0xff]   ;;  %v2738_v54 = vld [vmem:[%s4285_s0 + $0x170] ss:$20 sps:$4 sm:$0xff]   ;;  %v2745_v59 = vld [vmem:[%s4285_s0 + $0x198] ss:$20 sps:$4 sm:$0xff]  }
  0x13   :  { %2572 = vmatpush1.bf16.msra.mxu1 %v3031_v10  ;;  %1074 = vmatprep.subr.bf16.mxu0 %v2959_v0  ;;  %v2809_v52 = vld [vmem:[%s4284_s1 + $0x128] ss:$0 sps:$4 sm:$0xff]   ;;  %v2739_v56 = vld [vmem:[%s4285_s0 + $0xa4] ss:$20 sps:$4 sm:$0xff]   ;;  %v2741_v57 = vld [vmem:[%s4285_s0 + $0x19c] ss:$20 sps:$4 sm:$0xff]  }
  0x14   :  { %2557 = vmatprep.subr.bf16.mxu1 %v2959_v0  ;;  %v1062_v55 = vsel %vm1060_vm0, %v2809_v52, 0  ;;  %v2744_v58 = vld [vmem:[%s4285_s0 + $0xa0] ss:$20 sps:$4 sm:$0xff]   ;;  %v2748_v61 = vld [vmem:[%s4285_s0 + $0x1c4] ss:$20 sps:$4 sm:$0xff]  }
  0x15   :  { %v2746_v60 = vld [vmem:[%s4285_s0 + $0xcc] ss:$20 sps:$4 sm:$0xff]   ;;  %v2750_v62 = vld [vmem:[%s4285_s0 + $0xc8] ss:$20 sps:$4 sm:$0xff]   ;;  %v2756_v3 = vld [vmem:[%s4285_s0 + $0xf0] ss:$20 sps:$4 sm:$0xff]  }
  0x16   :  { %1075 = vmatpush1.bf16.msra.mxu0 %v2692_v11  ;;  %v2751_v63 = vld [vmem:[%s4285_s0 + $0x1c0] ss:$20 sps:$4 sm:$0xff]   ;;  %v2759_v5 = vld [vmem:[%s4285_s0 + $0x11c] ss:$20 sps:$4 sm:$0xff]   ;;  %v2763_v7 = vld [vmem:[%s4285_s0 + $0x118] ss:$20 sps:$4 sm:$0xff]  }
  0x17   :  { %2573 = vmatpush1.bf16.msra.mxu1 %v3042_v12  ;;  %1076 = vmatprep.subr.bf16.mxu0 %v2959_v0  ;;  %v2752_v1 = vld [vmem:[%s4285_s0 + $0xf4] ss:$20 sps:$4 sm:$0xff]   ;;  %v2765_v9 = vld [vmem:[%s4285_s0 + $0x144] ss:$20 sps:$4 sm:$0xff]  }
  0x18   :  { %2558 = vmatprep.subr.bf16.mxu1 %v2959_v0  ;;  %v2769_v11 = vld [vmem:[%s4285_s0 + $0x140] ss:$20 sps:$4 sm:$0xff]   ;;  %v2783_v19 = vld [vmem:[%s4285_s0 + $0x288] ss:$20 sps:$4 sm:$0xff]  }
  0x19   :  { %v2786_v21 = vld [vmem:[%s4285_s0 + $0x2b4] ss:$20 sps:$4 sm:$0xff]  }
  0x1a   :  { %1077 = vmatpush1.bf16.msra.mxu0 %v2694_v13  ;;  %v2771_v13 = vld [vmem:[%s4285_s0 + $0x16c] ss:$20 sps:$4 sm:$0xff]  }
  0x1b   :  { %2574 = vmatpush1.bf16.msra.mxu1 %v3053_v14  ;;  %1078 = vmatprep.subr.bf16.mxu0 %v2959_v0 }
  0x1c   :  { %2559 = vmatprep.subr.bf16.mxu1 %v2959_v0 }
  0x1e   :  { %1079 = vmatpush1.bf16.msra.mxu0 %v2696_v15  ;;  %v2776_v15 = vld [vmem:[%s4285_s0 + $0x260] ss:$20 sps:$4 sm:$0xff]  }
  0x1f   :  { %2575 = vmatpush1.bf16.msra.mxu1 %v3064_v16  ;;  %1080 = vmatprep.subr.bf16.mxu0 %v2959_v0 }
  0x20   :  { %2560 = vmatprep.subr.bf16.mxu1 %v2959_v0 }
  0x22   :  { %1081 = vmatpush1.bf16.msra.mxu0 %v2698_v17  ;;  %v2780_v17 = vld [vmem:[%s4285_s0 + $0x28c] ss:$20 sps:$4 sm:$0xff]  }
  0x23   :  { %2576 = vmatpush1.bf16.msra.mxu1 %v3075_v18  ;;  %1082 = vmatprep.subr.bf16.mxu0 %v2959_v0 }
  0x24   :  { %2561 = vmatprep.subr.bf16.mxu1 %v2959_v0 }
  0x26   :  { %1083 = vmatpush1.bf16.msra.mxu0 %v2700_v20  ;;  %v2784_v20 = vld [vmem:[%s4285_s0 + $0x1bc] ss:$20 sps:$4 sm:$0xff]  }
  0x27   :  { %2577 = vmatpush1.bf16.msra.mxu1 %v3092_v22  ;;  %1084 = vmatprep.subr.bf16.mxu0 %v2959_v0 }
  0x28   :  { %2562 = vmatprep.subr.bf16.mxu1 %v2959_v0 }
  0x2a   :  { %1085 = vmatpush1.bf16.msra.mxu0 %v2702_v23  ;;  %v2789_v23 = vld [vmem:[%s4285_s0 + $0x2b0] ss:$20 sps:$4 sm:$0xff]  }
  0x2b   :  { %2578 = vmatpush1.bf16.msra.mxu1 %v3103_v24  ;;  %1086 = vmatprep.subr.bf16.mxu0 %v2959_v0 }
  0x2c   :  { %2563 = vmatprep.subr.bf16.mxu1 %v2959_v0 }
  0x2e   :  { %1087 = vmatpush1.bf16.msra.mxu0 %v2704_v25  ;;  %v2792_v25 = vld [vmem:[%s4285_s0 + $0x2dc] ss:$20 sps:$4 sm:$0xff]  }
  0x2f   :  { %2579 = vmatpush1.bf16.msra.mxu1 %v3114_v26  ;;  %1088 = vmatprep.subr.bf16.mxu0 %v2959_v0 }
  0x30   :  { %2564 = vmatprep.subr.bf16.mxu1 %v2959_v0 }
  0x32   :  { %1089 = vmatpush1.bf16.msra.mxu0 %v2706_v27  ;;  %v2796_v27 = vld [vmem:[%s4285_s0 + $0x2d8] ss:$20 sps:$4 sm:$0xff]  }
  0x33   :  { %2580 = vmatpush1.bf16.msra.mxu1 %v3125_v28  ;;  %1090 = vmatprep.subr.bf16.mxu0 %v2959_v0 }
  0x34   :  { %2565 = vmatprep.subr.bf16.mxu1 %v2959_v0 }
  0x36   :  { %1091 = vmatpush1.bf16.msra.mxu0 %v2708_v29  ;;  %v2799_v29 = vld [vmem:[%s4285_s0 + $0x304] ss:$20 sps:$4 sm:$0xff]  }
  0x37   :  { %2581 = vmatpush1.bf16.msra.mxu1 %v3136_v30  ;;  %1092 = vmatprep.subr.bf16.mxu0 %v2959_v0 }
  0x38   :  { %2566 = vmatprep.subr.bf16.mxu1 %v2959_v0 }
  0x3a   :  { %1093 = vmatpush1.bf16.msra.mxu0 %v2710_v31  ;;  %v2802_v31 = vld [vmem:[%s4285_s0 + $0x300] ss:$20 sps:$4 sm:$0xff]  }
  0x3b   :  { %2582 = vmatpush1.bf16.msra.mxu1 %v3147_v32  ;;  %1094 = vmatprep.subr.bf16.mxu0 %v2959_v0 }
  0x3c   :  { %2567 = vmatprep.subr.bf16.mxu1 %v2959_v0 }
  0x3e   :  { %1095 = vmatpush1.bf16.msra.mxu0 %v2712_v33  ;;  %v2805_v33 = vld [vmem:[%s4285_s0 + $0x32c] ss:$20 sps:$4 sm:$0xff]  }
  0x3f   :  { %2583 = vmatpush1.bf16.msra.mxu1 %v3158_v34  ;;  %1272 = vmatprep.subr.bf16.mxu0 %v2959_v0 }
  0x40   :  { %2496 = vmatprep.subr.bf16.mxu1 %v2726_v35 }
  0x41   :  { %1097 = vmatmul.mubr.bf16.vlgmr.msra.gmra.mrb[0].mxu0 %v2714_v36  ;;  %v2808_v36 = vld [vmem:[%s4285_s0 + $0x328] ss:$20 sps:$4 sm:$0xff]  }
  0x42   :  { %1353 = vmatmul.mubr.bf16.vlgmr.msra.gmra.mrb[0].mxu1 %v2717_v37  ;;  %1273 = vmatpush1.bf16.msra.mxu0 %v2988_v2  ;;  %v2754_v2 = vld [vmem:[%s4285_s0 + $0x1ec] ss:$20 sps:$4 sm:$0xff]   ;;  %v2810_v37 = vld [vmem:[%s4285_s0 + $0x25c] ss:$20 sps:$4 sm:$0xff]  }
  0x43   :  { %1104 = vmatprep.mubr.bf16.mxu0 %v2720_v38  ;;  %1360 = vmatprep.mubr.bf16.mxu1 %v2722_v39  ;;  %v2813_v39 = vld [vmem:[%s4285_s0 + $0x258] ss:$20 sps:$4 sm:$0xff]  }
  0x44   :  { %2497 = vmatpush3.bf16.msra.mxu1 %v2726_v35  ;;  %1274 = vmatprep.subr.bf16.mxu0 %v2959_v0  ;;  %v2807_v35 = vld [vmem:[%s4285_s0 + $0x230] ss:$20 sps:$4 sm:$0xff]  }
  0x45   :  { %2498 = vmatprep.subr.bf16.mxu1 %v2743_v40 }
  0x46   :  { %1275 = vmatpush1.bf16.msra.mxu0 %v2998_v4  ;;  %v2757_v4 = vld [vmem:[%s4285_s0 + $0x1e8] ss:$20 sps:$4 sm:$0xff]  }
  0x47   :  { %1276 = vmatprep.subr.bf16.mxu0 %v2959_v0 }
  0x48   :  { %2499 = vmatpush3.bf16.msra.mxu1 %v2743_v40 }
  0x49   :  { %1105 = vmatmul.mubr.bf16.gmra.mrb[4].mxu0 %v2724_v41  ;;  %2500 = vmatprep.subr.bf16.mxu1 %v2758_v43  ;;  %v2815_v41 = vld [vmem:[%s4285_s0 + $0x284] ss:$20 sps:$4 sm:$0xff]  }
  0x4a   :  { %1361 = vmatmul.mubr.bf16.gmra.mrb[4].mxu1 %v2725_v42  ;;  %1112 = vmatprep.mubr.bf16.mxu0 %v2727_v44  ;;  %v2817_v42 = vld [vmem:[%s4285_s0 + $0x10] ss:$20 sps:$4 sm:$0xff]   ;;  %v2819_v44 = vld [vmem:[%s4285_s0 + $0x38] ss:$20 sps:$4 sm:$0xff]  }
  0x4b   :  { %1368 = vmatprep.mubr.bf16.mxu1 %v2729_v45  ;;  %1277 = vmatpush1.bf16.msra.mxu0 %v3009_v6  ;;  %v2761_v6 = vld [vmem:[%s4285_s0 + $0x214] ss:$20 sps:$4 sm:$0xff]   ;;  %v2820_v45 = vld [vmem:[%s4285_s0 + $0x2ac] ss:$20 sps:$4 sm:$0xff]  }
  0x4c   :  { %1278 = vmatprep.subr.bf16.mxu0 %v2959_v0  ;;  %2501 = vmatpush3.bf16.msra.mxu1 %v2758_v43  ;;  %v2818_v43 = vld [vmem:[%s4285_s0 + $0x280] ss:$20 sps:$4 sm:$0xff]  }
  0x4d   :  { %2502 = vmatprep.subr.bf16.mxu1 %v2777_v46 }
  0x4f   :  { %1279 = vmatpush1.bf16.msra.mxu0 %v3020_v8  ;;  %v2764_v8 = vld [vmem:[%s4285_s0 + $0x210] ss:$20 sps:$4 sm:$0xff]  }
  0x50   :  { %1280 = vmatprep.subr.bf16.mxu0 %v2959_v0  ;;  %2503 = vmatpush3.bf16.msra.mxu1 %v2777_v46  ;;  %v2822_v46 = vld [vmem:[%s4285_s0 + $0x60] ss:$20 sps:$4 sm:$0xff]  }
  0x51   :  { %1113 = vmatmul.mubr.bf16.gmra.mrb[8].mxu0 %v2731_v47  ;;  %2504 = vmatprep.subr.bf16.mxu1 %v2794_v48  ;;  %v2823_v47 = vld [vmem:[%s4285_s0 + $0x2a8] ss:$20 sps:$4 sm:$0xff]  }
  0x52   :  { %1369 = vmatmul.mubr.bf16.gmra.mrb[8].mxu1 %v2732_v49  ;;  %1120 = vmatprep.mubr.bf16.mxu0 %v2733_v50  ;;  %v2825_v49 = vld [vmem:[%s4285_s0 + $0x2d4] ss:$20 sps:$4 sm:$0xff]   ;;  %v2827_v50 = vld [vmem:[%s4285_s0 + $0xb0] ss:$20 sps:$4 sm:$0xff]  }
  0x53   :  { %1376 = vmatprep.mubr.bf16.mxu1 %v2735_v51  ;;  %1281 = vmatpush1.bf16.msra.mxu0 %v3031_v10  ;;  %v2767_v10 = vld [vmem:[%s4285_s0 + $0x23c] ss:$20 sps:$4 sm:$0xff]  }
  0x54   :  { %1282 = vmatprep.subr.bf16.mxu0 %v2959_v0  ;;  %2505 = vmatpush3.bf16.msra.mxu1 %v2794_v48  ;;  %v2824_v48 = vld [vmem:[%s4285_s0 + $0x88] ss:$20 sps:$4 sm:$0xff]   ;;  %v2828_v51 = vld [vmem:[%s4285_s0 + $0x2d0] ss:$20 sps:$4 sm:$0xff]  }
  0x55   :  { %2680 = vmatprep.subr.msk.bf16.mxu1 %vm1060_vm0, %v2809_v52  ;;  %v2829_v52 = vld [vmem:[%s4285_s0 + $0xd8] ss:$20 sps:$4 sm:$0xff]  }
  0x57   :  { %1283 = vmatpush1.bf16.msra.mxu0 %v3042_v12  ;;  %v2770_v12 = vld [vmem:[%s4285_s0 + $0x238] ss:$20 sps:$4 sm:$0xff]  }
  0x58   :  { %1284 = vmatprep.subr.bf16.mxu0 %v2959_v0  ;;  %2507 = vmatpush3.bf16.msra.mxu1 %v1062_v55  ;;  %v2833_v55 = vld [vmem:[%s4285_s0 + $0x2f8] ss:$20 sps:$4 sm:$0xff]  }
  0x59   :  { %1121 = vmatmul.mubr.bf16.gmra.mrb[12].mxu0 %v2737_v53  ;;  %v2830_v53 = vld [vmem:[%s4285_s0 + $0x2fc] ss:$20 sps:$4 sm:$0xff]  }
  0x5a   :  { %1377 = vmatmul.mubr.bf16.gmra.mrb[12].mxu1 %v2738_v54  ;;  %1128 = vmatprep.mubr.bf16.mxu0 %v2739_v56  ;;  %v2832_v54 = vld [vmem:[%s4285_s0 + $0x100] ss:$20 sps:$4 sm:$0xff]   ;;  %v2834_v56 = vld [vmem:[%s4285_s0 + $0x128] ss:$20 sps:$4 sm:$0xff]  }
  0x5b   :  { %1384 = vmatprep.mubr.bf16.mxu1 %v2741_v57  ;;  %1285 = vmatpush1.bf16.msra.mxu0 %v3053_v14  ;;  %v2773_v14 = vld [vmem:[%s4285_s0 + $0x264] ss:$20 sps:$4 sm:$0xff]  }
  0x5c   :  { %1286 = vmatprep.subr.bf16.mxu0 %v2959_v0  ;;  %v2835_v57 = vld [vmem:[%s4285_s0 + $0x324] ss:$20 sps:$4 sm:$0xff]  }
  0x5f   :  { %1287 = vmatpush1.bf16.msra.mxu0 %v3064_v16  ;;  %v2778_v16 = vld [vmem:[%s4285_s0 + $0x194] ss:$20 sps:$4 sm:$0xff]  }
  0x60   :  { %1288 = vmatprep.subr.bf16.mxu0 %v2959_v0 }
  0x61   :  { %1129 = vmatmul.mubr.bf16.gmra.mrb[16].mxu0 %v2744_v58  ;;  %v2837_v58 = vld [vmem:[%s4285_s0 + $0x150] ss:$20 sps:$4 sm:$0xff]  }
  0x62   :  { %1385 = vmatmul.mubr.bf16.gmra.mrb[16].mxu1 %v2745_v59  ;;  %1136 = vmatprep.mubr.bf16.mxu0 %v2746_v60  ;;  %v141_v59 = vld [vmem:[%s4285_s0 + $0x348] sm:$0x11]  ;;  %v2838_v60 = vld [vmem:[%s4285_s0 + $0x320] ss:$20 sps:$4 sm:$0xff]  }
  0x63   :  { %1392 = vmatprep.mubr.bf16.mxu1 %v2748_v61  ;;  %1289 = vmatpush1.bf16.msra.mxu0 %v3075_v18  ;;  %v2782_v18 = vld [vmem:[%s4285_s0 + $0x190] ss:$20 sps:$4 sm:$0xff]   ;;  %v2839_v61 = vld [vmem:[%s4285_s0 + $0x178] ss:$20 sps:$4 sm:$0xff]  }
  0x64   :  { %1290 = vmatprep.subr.bf16.mxu0 %v2959_v0 }
  0x67   :  { %1291 = vmatpush1.bf16.msra.mxu0 %v3092_v22  ;;  %v2788_v22 = vld [vmem:[%s4285_s0 + $0x1b8] ss:$20 sps:$4 sm:$0xff]  }
  0x68   :  { %1292 = vmatprep.subr.bf16.mxu0 %v2959_v0 }
  0x69   :  { %1137 = vmatmul.mubr.bf16.gmra.mrb[20].mxu0 %v2750_v62  ;;  %v2275_v62 = vcombine.high %v141_v59, %v141_v59 }
  0x6a   :  { %1393 = vmatmul.mubr.bf16.gmra.mrb[20].mxu1 %v2751_v63  ;;  %1144 = vmatprep.mubr.bf16.mxu0 %v2752_v1  ;;  %v2841_v63 = vld [vmem:[%s4285_s0 + $0x1a0] ss:$20 sps:$4 sm:$0xff]   ;;  %v2274_v1 = vcombine.low %v141_v59, %v141_v59 }
  0x6b   :  { %1400 = vmatprep.mubr.bf16.mxu1 %v2754_v2  ;;  %1293 = vmatpush1.bf16.msra.mxu0 %v3103_v24  ;;  %v2790_v24 = vld [vmem:[%s4285_s0 + $0x1e4] ss:$20 sps:$4 sm:$0xff]   ;;  %v2843_v2 = vld [vmem:[%s4285_s0 + $0x1c8] ss:$20 sps:$4 sm:$0xff]  }
  0x6c   :  { %1294 = vmatprep.subr.bf16.mxu0 %v2959_v0 }
  0x6f   :  { %1295 = vmatpush1.bf16.msra.mxu0 %v3114_v26  ;;  %v2795_v26 = vld [vmem:[%s4285_s0 + $0x1e0] ss:$20 sps:$4 sm:$0xff]  }
  0x70   :  { %1296 = vmatprep.subr.bf16.mxu0 %v2959_v0 }
  0x71   :  { %1145 = vmatmul.mubr.bf16.gmra.mrb[24].mxu0 %v2756_v3  ;;  %v2846_v3 = vld [vmem:[%s4285_s0 + $0xc] ss:$20 sps:$4 sm:$0xff]  }
  0x72   :  { %1401 = vmatmul.mubr.bf16.gmra.mrb[24].mxu1 %v2757_v4  ;;  %1152 = vmatprep.mubr.bf16.mxu0 %v2759_v5  ;;  %v2847_v4 = vld [vmem:[%s4285_s0 + $0x1f0] ss:$20 sps:$4 sm:$0xff]   ;;  %v2844_v5 = vld [vmem:[%s4285_s0 + $0x8] ss:$20 sps:$4 sm:$0xff]  }
  0x73   :  { %1408 = vmatprep.mubr.bf16.mxu1 %v2761_v6  ;;  %1297 = vmatpush1.bf16.msra.mxu0 %v3125_v28  ;;  %v2797_v28 = vld [vmem:[%s4285_s0 + $0x20c] ss:$20 sps:$4 sm:$0xff]  }
  0x74   :  { %1298 = vmatprep.subr.bf16.mxu0 %v2959_v0  ;;  %v2848_v6 = vld [vmem:[%s4285_s0 + $0x218] ss:$20 sps:$4 sm:$0xff]  }
  0x77   :  { %1299 = vmatpush1.bf16.msra.mxu0 %v3136_v30  ;;  %v2801_v30 = vld [vmem:[%s4285_s0 + $0x208] ss:$20 sps:$4 sm:$0xff]  }
  0x78   :  { %1300 = vmatprep.subr.bf16.mxu0 %v2959_v0 }
  0x79   :  { %1153 = vmatmul.mubr.bf16.gmra.mrb[28].mxu0 %v2763_v7  ;;  %v2849_v7 = vld [vmem:[%s4285_s0 + $0x34] ss:$20 sps:$4 sm:$0xff]  }
  0x7a   :  { %1409 = vmatmul.mubr.bf16.gmra.mrb[28].mxu1 %v2764_v8  ;;  %1160 = vmatprep.mubr.bf16.mxu0 %v2765_v9  ;;  %v2851_v8 = vld [vmem:[%s4285_s0 + $0x240] ss:$20 sps:$4 sm:$0xff]   ;;  %v2852_v9 = vld [vmem:[%s4285_s0 + $0x30] ss:$20 sps:$4 sm:$0xff]  }
  0x7b   :  { %1416 = vmatprep.mubr.bf16.mxu1 %v2767_v10  ;;  %1301 = vmatpush1.bf16.msra.mxu0 %v3147_v32  ;;  %v2803_v32 = vld [vmem:[%s4285_s0 + $0x234] ss:$20 sps:$4 sm:$0xff]  }
  0x7c   :  { %1302 = vmatprep.subr.bf16.mxu0 %v2959_v0  ;;  %v2775_v0 = vld [vmem:[%s4285_s0 + $0x168] ss:$20 sps:$4 sm:$0xff]  }
  0x7d   :  { %v2853_v10 = vld [vmem:[%s4285_s0 + $0x268] ss:$20 sps:$4 sm:$0xff]  }
  0x7f   :  { %1303 = vmatpush1.bf16.msra.mxu0 %v3158_v34  ;;  %v142_v34 = vld [vmem:[%s4285_s0 + $0x350] sm:$0x11] }
  0x80   :  { %v2277_v38 = vcombine.high %v142_v34, %v142_v34  ;;  %v2276_v40 = vcombine.low %v142_v34, %v142_v34 }
  0x81   :  { %1161 = vmatmul.mubr.bf16.gmra.mrb[32].mxu0 %v2769_v11  ;;  %v2854_v11 = vld [vmem:[%s4285_s0 + $0x5c] ss:$20 sps:$4 sm:$0xff]  }
  0x82   :  { %1417 = vmatmul.mubr.bf16.gmra.mrb[32].mxu1 %v2770_v12  ;;  %1168 = vmatprep.mubr.bf16.mxu0 %v2771_v13  ;;  %v2856_v12 = vld [vmem:[%s4285_s0 + $0x290] ss:$20 sps:$4 sm:$0xff]   ;;  %v2857_v13 = vld [vmem:[%s4285_s0 + $0x58] ss:$20 sps:$4 sm:$0xff]  }
  0x83   :  { %1424 = vmatprep.mubr.bf16.mxu1 %v2773_v14  ;;  %v2858_v14 = vld [vmem:[%s4285_s0 + $0x2b8] ss:$20 sps:$4 sm:$0xff]  }
  0x89   :  { %1169 = vmatmul.mubr.bf16.gmra.mrb[36].mxu0 %v2775_v0  ;;  %v2859_v0 = vld [vmem:[%s4285_s0 + $0x84] ss:$20 sps:$4 sm:$0xff]  }
  0x8a   :  { %1425 = vmatmul.mubr.bf16.gmra.mrb[36].mxu1 %v2776_v15  ;;  %1176 = vmatprep.mubr.bf16.mxu0 %v2778_v16  ;;  %v2861_v15 = vld [vmem:[%s4285_s0 + $0x2e0] ss:$20 sps:$4 sm:$0xff]  }
  0x8b   :  { %1432 = vmatprep.mubr.bf16.mxu1 %v2780_v17  ;;  %v2862_v16 = vld [vmem:[%s4285_s0 + $0x80] ss:$20 sps:$4 sm:$0xff]   ;;  %v2863_v17 = vld [vmem:[%s4285_s0 + $0x308] ss:$20 sps:$4 sm:$0xff]  }
  0x91   :  { %1177 = vmatmul.mubr.bf16.gmra.mrb[40].mxu0 %v2782_v18  ;;  %v2864_v18 = vld [vmem:[%s4285_s0 + $0xac] ss:$20 sps:$4 sm:$0xff]  }
  0x92   :  { %1433 = vmatmul.mubr.bf16.gmra.mrb[40].mxu1 %v2783_v19  ;;  %1184 = vmatprep.mubr.bf16.mxu0 %v2784_v20  ;;  %v2866_v19 = vld [vmem:[%s4285_s0 + $0x330] ss:$20 sps:$4 sm:$0xff]   ;;  %v2867_v20 = vld [vmem:[%s4285_s0 + $0xa8] ss:$20 sps:$4 sm:$0xff]  }
  0x93   :  { %1440 = vmatprep.mubr.bf16.mxu1 %v2786_v21  ;;  %v2868_v21 = vld [vmem:[%s4285_s0 + $0x358] ss:$0 sps:$4 sm:$0x11]  }
  0x99   :  { %1185 = vmatmul.mubr.bf16.gmra.mrb[44].mxu0 %v2788_v22  ;;  %v2869_v22 = vld [vmem:[%s4285_s0 + $0xd4] ss:$20 sps:$4 sm:$0xff]  }
  0x9a   :  { %1441 = vmatmul.mubr.bf16.gmra.mrb[44].mxu1 %v2789_v23  ;;  %1192 = vmatprep.mubr.bf16.mxu0 %v2790_v24  ;;  %v2871_v23 = vld [vmem:[%s4285_s0 + $0xd0] ss:$20 sps:$4 sm:$0xff]  }
  0x9b   :  { %1448 = vmatprep.mubr.bf16.mxu1 %v2792_v25 }
  0xa1   :  { %1193 = vmatmul.mubr.bf16.gmra.mrb[48].mxu0 %v2795_v26 }
  0xa2   :  { %1449 = vmatmul.mubr.bf16.gmra.mrb[48].mxu1 %v2796_v27  ;;  %1200 = vmatprep.mubr.bf16.mxu0 %v2797_v28 }
  0xa3   :  { %1456 = vmatprep.mubr.bf16.mxu1 %v2799_v29 }
  0xa9   :  { %1201 = vmatmul.mubr.bf16.gmra.mrb[52].mxu0 %v2801_v30 }
  0xaa   :  { %1457 = vmatmul.mubr.bf16.gmra.mrb[52].mxu1 %v2802_v31  ;;  %1208 = vmatprep.mubr.bf16.mxu0 %v2803_v32 }
  0xab   :  { %1464 = vmatprep.mubr.bf16.mxu1 %v2805_v33 }
  0xb1   :  { %1209 = vmatmul.mubr.bf16.gmra.mrb[56].mxu0 %v2807_v35 }
  0xb2   :  { %1465 = vmatmul.mubr.bf16.gmra.mrb[56].mxu1 %v2808_v36  ;;  %1216 = vmatprep.mubr.bf16.mxu0 %v2810_v37 }
  0xb3   :  { %1472 = vmatprep.mubr.bf16.mxu1 %v2277_v38 }
  0xb9   :  { %1217 = vmatmul.mubr.bf16.gmra.mrb[60].mxu0 %v2813_v39 }
  0xba   :  { %1473 = vmatmul.mubr.bf16.gmra.mrb[60].mxu1 %v2276_v40  ;;  %1224 = vmatprep.mubr.bf16.mxu0 %v2815_v41 }
  0xbb   :  { %2508 = vmatprep.mubr.msk.bf16.mxu1 %vm993_vm1, %v2817_v42 }
  0xc1   :  { %1225 = vmatmul.mubr.bf16.gmra.mrb[64].mxu0 %v2818_v43 }
  0xc2   :  { %2509 = vmatmul.mubr.msk.bf16.vlgmr.msra.gmra.mrb[64].mxu1 %vm993_vm1, %v2819_v44  ;;  %1232 = vmatprep.mubr.bf16.mxu0 %v2820_v45 }
  0xc3   :  { %2512 = vmatprep.mubr.msk.bf16.mxu1 %vm993_vm1, %v2822_v46 }
  0xc9   :  { %1233 = vmatmul.mubr.bf16.gmra.mrb[68].mxu0 %v2823_v47 }
  0xca   :  { %2513 = vmatmul.mubr.msk.bf16.gmra.mrb[68].mxu1 %vm993_vm1, %v2824_v48  ;;  %1240 = vmatprep.mubr.bf16.mxu0 %v2825_v49  ;;  %v3563_v48 = vld [vmem:[%s4286_s2] ss:$0 sm:$0xff] }
  0xcb   :  { %2516 = vmatprep.mubr.msk.bf16.mxu1 %vm993_vm1, %v2827_v50 }
  0xd1   :  { %1241 = vmatmul.mubr.bf16.gmra.mrb[72].mxu0 %v2828_v51 }
  0xd2   :  { %2517 = vmatmul.mubr.msk.bf16.gmra.mrb[72].mxu1 %vm993_vm1, %v2829_v52  ;;  %1248 = vmatprep.mubr.bf16.mxu0 %v2830_v53 }
  0xd3   :  { %2520 = vmatprep.mubr.msk.bf16.mxu1 %vm993_vm1, %v2832_v54 }
  0xd9   :  { %1249 = vmatmul.mubr.bf16.gmra.mrb[76].mxu0 %v2833_v55 }
  0xda   :  { %2521 = vmatmul.mubr.msk.bf16.gmra.mrb[76].mxu1 %vm993_vm1, %v2834_v56  ;;  %1256 = vmatprep.mubr.bf16.mxu0 %v2835_v57 }
  0xdb   :  { %2524 = vmatprep.mubr.msk.bf16.mxu1 %vm993_vm1, %v2837_v58 }
  0xe1   :  { %1257 = vmatmul.mubr.bf16.gmra.mrb[80].mxu0 %v2838_v60 }
  0xe2   :  { %2525 = vmatmul.mubr.msk.bf16.gmra.mrb[80].mxu1 %vm993_vm1, %v2839_v61  ;;  %1264 = vmatprep.mubr.bf16.mxu0 %v2275_v62 }
  0xe3   :  { %2528 = vmatprep.mubr.msk.bf16.mxu1 %vm993_vm1, %v2841_v63 }
  0xe9   :  { %1265 = vmatmul.mubr.bf16.gmra.mrb[84].mxu0 %v2274_v1 }
  0xea   :  { %2529 = vmatmul.mubr.msk.bf16.gmra.mrb[84].mxu1 %vm993_vm1, %v2843_v2  ;;  %1304 = vmatprep.mubr.bf16.mxu0 %v2846_v3 }
  0xeb   :  { %2532 = vmatprep.mubr.msk.bf16.mxu1 %vm993_vm1, %v2847_v4 }
  0xf1   :  { %1305 = vmatmul.mubr.bf16.vlgmr.msra.gmra.mrb[0].mxu0 %v2844_v5 }
  0xf2   :  { %2533 = vmatmul.mubr.msk.bf16.gmra.mrb[88].mxu1 %vm993_vm1, %v2848_v6  ;;  %1312 = vmatprep.mubr.bf16.mxu0 %v2849_v7 }
  0xf3   :  { %2536 = vmatprep.mubr.msk.bf16.mxu1 %vm993_vm1, %v2851_v8 }
  0xf9   :  { %1313 = vmatmul.mubr.bf16.gmra.mrb[4].mxu0 %v2852_v9 }
  0xfa   :  { %2537 = vmatmul.mubr.msk.bf16.gmra.mrb[92].mxu1 %vm993_vm1, %v2853_v10  ;;  %1320 = vmatprep.mubr.bf16.mxu0 %v2854_v11 }
  0xfb   :  { %2540 = vmatprep.mubr.msk.bf16.mxu1 %vm993_vm1, %v2856_v12 }
 0x101   :  { %1321 = vmatmul.mubr.bf16.gmra.mrb[8].mxu0 %v2857_v13 }
 0x102   :  { %2541 = vmatmul.mubr.msk.bf16.gmra.mrb[96].mxu1 %vm993_vm1, %v2858_v14  ;;  %1328 = vmatprep.mubr.bf16.mxu0 %v2859_v0 }
 0x103   :  { %2544 = vmatprep.mubr.msk.bf16.mxu1 %vm993_vm1, %v2861_v15 }
 0x109   :  { %1329 = vmatmul.mubr.bf16.gmra.mrb[12].mxu0 %v2862_v16 }
 0x10a   :  { %2545 = vmatmul.mubr.msk.bf16.gmra.mrb[100].mxu1 %vm993_vm1, %v2863_v17  ;;  %1336 = vmatprep.mubr.bf16.mxu0 %v2864_v18 }
 0x10b   :  { %2548 = vmatprep.mubr.msk.bf16.mxu1 %vm993_vm1, %v2866_v19 }
 0x111   :  { %1337 = vmatmul.mubr.bf16.gmra.mrb[16].mxu0 %v2867_v20 }
 0x112   :  { %2549 = vmatmul.mubr.msk.bf16.gmra.mrb[104].mxu1 %vm993_vm1, %v2868_v21  ;;  %1344 = vmatprep.mubr.bf16.mxu0 %v2869_v22 }
 0x115   :  { %v1354_v24 = vpop.f32.mrb[0].mxu1 }
 0x116   :  { %v1356_v25 = vpop.f32.mrb[1].mxu1 }
 0x117   :  { %v1357_v26 = vpop.f32.mrb[2].mxu1 }
 0x118   :  { %v1359_v27 = vpop.f32.mrb[3].mxu1 }
 0x119   :  { %1345 = vmatmul.mubr.bf16.gmra.mrb[20].mxu0 %v2871_v23 }
 0x11d   :  { %v1362_v28 = vpop.f32.mrb[4].mxu1 }
 0x11e   :  { %v1364_v29 = vpop.f32.mrb[5].mxu1 }
 0x11f   :  { %v1365_v30 = vpop.f32.mrb[6].mxu1 }
 0x120   :  { %v1367_v31 = vpop.f32.mrb[7].mxu1 }
 0x125   :  { %v1370_v32 = vpop.f32.mrb[8].mxu1 }
 0x126   :  { %v1372_v33 = vpop.f32.mrb[9].mxu1 }
 0x127   :  { %v1373_v34 = vpop.f32.mrb[10].mxu1 }
 0x128   :  { %v1375_v35 = vpop.f32.mrb[11].mxu1 }
 0x12d   :  { %v1378_v36 = vpop.f32.mrb[12].mxu1 }
 0x12e   :  { %v1380_v37 = vpop.f32.mrb[13].mxu1 }
 0x12f   :  { %v1381_v38 = vpop.f32.mrb[14].mxu1 }
 0x130   :  { %v1383_v39 = vpop.f32.mrb[15].mxu1 }
 0x135   :  { %v3552_v40 = vpop.f32.mrb[16].mxu1 }
 0x136   :  { %v1388_v41 = vpop.f32.mrb[17].mxu1 }
 0x137   :  { %v3554_v42 = vpop.f32.mrb[18].mxu1 }
 0x138   :  { %v1391_v43 = vpop.f32.mrb[19].mxu1 }
 0x13d   :  { %v3556_v44 = vpop.f32.mrb[20].mxu1 }
 0x13e   :  { %v1396_v45 = vpop.f32.mrb[21].mxu1 }
 0x13f   :  { %v3558_v46 = vpop.f32.mrb[22].mxu1 }
 0x140   :  { %v1399_v47 = vpop.f32.mrb[23].mxu1 }
 0x144   :  { %v1146_v49 = vpop.f32.mrb[24].mxu0 }
 0x145   :  { %v1147_v50 = vadd.f32 %v3563_v48, %v1146_v49  ;;  %v1148_v51 = vpop.f32.mrb[25].mxu0  ;;  %v3566_v52 = vpop.f32.mrb[24].mxu1 }
 0x146   :  { %v1149_v53 = vpop.f32.mrb[26].mxu0  ;;  %v1404_v54 = vpop.f32.mrb[25].mxu1 }
 0x147   :  { %v1150_v55 = vadd.f32 %v3563_v48, %v1149_v53  ;;  %v1151_v56 = vpop.f32.mrb[27].mxu0  ;;  %v3569_v57 = vpop.f32.mrb[26].mxu1  ;;  %v3571_v58 = vadd.f32 %v1354_v24, %v1147_v50 }
 0x148   :  { %v1407_v59 = vpop.f32.mrb[27].mxu1 }
 0x149   :  { %v3573_v60 = vadd.f32 %v1357_v26, %v1150_v55 }
 0x14c   :  { %v1154_v61 = vpop.f32.mrb[28].mxu0 }
 0x14d   :  { %v1155_v62 = vadd.f32 %v3563_v48, %v1154_v61  ;;  %v1156_v63 = vpop.f32.mrb[29].mxu0  ;;  %v3576_v1 = vpop.f32.mrb[28].mxu1 }
 0x14e   :  { %v1157_v2 = vpop.f32.mrb[30].mxu0  ;;  %v1412_v3 = vpop.f32.mrb[29].mxu1 }
 0x14f   :  { %v1158_v4 = vadd.f32 %v3563_v48, %v1157_v2  ;;  %v1159_v5 = vpop.f32.mrb[31].mxu0  ;;  %v3579_v6 = vpop.f32.mrb[30].mxu1  ;;  %v3581_v7 = vadd.f32 %v1362_v28, %v1155_v62 }
 0x150   :  { %v1415_v8 = vpop.f32.mrb[31].mxu1 }
 0x151   :  { %v3583_v9 = vadd.f32 %v1365_v30, %v1158_v4 }
 0x154   :  { %v1162_v10 = vpop.f32.mrb[32].mxu0 }
 0x155   :  { %v1163_v11 = vadd.f32 %v3563_v48, %v1162_v10  ;;  %v1164_v12 = vpop.f32.mrb[33].mxu0  ;;  %v3586_v13 = vpop.f32.mrb[32].mxu1 }
 0x156   :  { %v1165_v14 = vpop.f32.mrb[34].mxu0  ;;  %v1420_v0 = vpop.f32.mrb[33].mxu1 }
 0x157   :  { %v1166_v15 = vadd.f32 %v3563_v48, %v1165_v14  ;;  %v1167_v16 = vpop.f32.mrb[35].mxu0  ;;  %v3589_v17 = vpop.f32.mrb[34].mxu1  ;;  %v3591_v18 = vadd.f32 %v1370_v32, %v1163_v11 }
 0x158   :  { %v1423_v19 = vpop.f32.mrb[35].mxu1 }
 0x159   :  { %v3593_v20 = vadd.f32 %v1373_v34, %v1166_v15 }
 0x15c   :  { %v1170_v21 = vpop.f32.mrb[36].mxu0 }
 0x15d   :  { %v1171_v22 = vadd.f32 %v3563_v48, %v1170_v21  ;;  %v1172_v23 = vpop.f32.mrb[37].mxu0  ;;  %v3596_v24 = vpop.f32.mrb[36].mxu1 }
 0x15e   :  { %v1173_v25 = vpop.f32.mrb[38].mxu0  ;;  %v1428_v26 = vpop.f32.mrb[37].mxu1 }
 0x15f   :  { %v1174_v27 = vadd.f32 %v3563_v48, %v1173_v25  ;;  %v1175_v28 = vpop.f32.mrb[39].mxu0  ;;  %v3599_v29 = vpop.f32.mrb[38].mxu1  ;;  %v3601_v30 = vadd.f32 %v1378_v36, %v1171_v22 }
 0x160   :  { %v1431_v31 = vpop.f32.mrb[39].mxu1 }
 0x161   :  { %v3603_v32 = vadd.f32 %v1381_v38, %v1174_v27 }
 0x164   :  { %v1178_v33 = vpop.f32.mrb[40].mxu0 }
 0x165   :  { %v1179_v34 = vadd.f32 %v3563_v48, %v1178_v33  ;;  %v1180_v35 = vpop.f32.mrb[41].mxu0  ;;  %v3606_v37 = vpop.f32.mrb[40].mxu1 }
 0x166   :  { %v1181_v39 = vpop.f32.mrb[42].mxu0  ;;  %v1436_v41 = vpop.f32.mrb[41].mxu1 }
 0x167   :  { %v1182_v43 = vadd.f32 %v3563_v48, %v1181_v39  ;;  %v1183_v45 = vpop.f32.mrb[43].mxu0  ;;  %v3609_v47 = vpop.f32.mrb[42].mxu1  ;;  %v3612_v49 = vadd.f32 %v3552_v40, %v1179_v34 }
 0x168   :  { %v1439_v36 = vpop.f32.mrb[43].mxu1 }
 0x169   :  { %v3615_v38 = vadd.f32 %v3554_v42, %v1182_v43 }
 0x16c   :  { %v1186_v50 = vpop.f32.mrb[44].mxu0 }
 0x16d   :  { %v1187_v51 = vadd.f32 %v3563_v48, %v1186_v50  ;;  %v1188_v53 = vpop.f32.mrb[45].mxu0  ;;  %v3618_v54 = vpop.f32.mrb[44].mxu1 }
 0x16e   :  { %v1189_v55 = vpop.f32.mrb[46].mxu0  ;;  %v1444_v56 = vpop.f32.mrb[45].mxu1 }
 0x16f   :  { %v1190_v59 = vadd.f32 %v3563_v48, %v1189_v55  ;;  %v1191_v61 = vpop.f32.mrb[47].mxu0  ;;  %v3621_v62 = vpop.f32.mrb[46].mxu1  ;;  %v3624_v40 = vadd.f32 %v3556_v44, %v1187_v51 }
 0x170   :  { %v1447_v63 = vpop.f32.mrb[47].mxu1 }
 0x171   :  { %v3627_v42 = vadd.f32 %v3558_v46, %v1190_v59 }
 0x174   :  { %v1194_v2 = vpop.f32.mrb[48].mxu0 }
 0x175   :  { %v1195_v3 = vadd.f32 %v3563_v48, %v1194_v2  ;;  %v1196_v4 = vpop.f32.mrb[49].mxu0  ;;  %v3630_v5 = vpop.f32.mrb[48].mxu1 }
 0x176   :  { %v1197_v8 = vpop.f32.mrb[50].mxu0  ;;  %v1452_v10 = vpop.f32.mrb[49].mxu1 }
 0x177   :  { %v1198_v11 = vadd.f32 %v3563_v48, %v1197_v8  ;;  %v1199_v12 = vpop.f32.mrb[51].mxu0  ;;  %v3633_v14 = vpop.f32.mrb[50].mxu1  ;;  %v3636_v44 = vadd.f32 %v3566_v52, %v1195_v3 }
 0x178   :  { %v1455_v0 = vpop.f32.mrb[51].mxu1 }
 0x179   :  { %v3639_v46 = vadd.f32 %v3569_v57, %v1198_v11 }
 0x17c   :  { %v1202_v15 = vpop.f32.mrb[52].mxu0 }
 0x17d   :  { %v1203_v16 = vadd.f32 %v3563_v48, %v1202_v15  ;;  %v1204_v19 = vpop.f32.mrb[53].mxu0  ;;  %v3642_v21 = vpop.f32.mrb[52].mxu1 }
 0x17e   :  { %v1205_v22 = vpop.f32.mrb[54].mxu0  ;;  %v1460_v23 = vpop.f32.mrb[53].mxu1 }
 0x17f   :  { %v1206_v25 = vadd.f32 %v3563_v48, %v1205_v22  ;;  %v1207_v26 = vpop.f32.mrb[55].mxu0  ;;  %v3645_v27 = vpop.f32.mrb[54].mxu1  ;;  %v3648_v52 = vadd.f32 %v3576_v1, %v1203_v16 }
 0x180   :  { %v1463_v28 = vpop.f32.mrb[55].mxu1 }
 0x181   :  { %v3651_v57 = vadd.f32 %v3579_v6, %v1206_v25 }
 0x184   :  { %v1210_v31 = vpop.f32.mrb[56].mxu0 }
 0x185   :  { %v1211_v33 = vadd.f32 %v3563_v48, %v1210_v31  ;;  %v1212_v34 = vpop.f32.mrb[57].mxu0  ;;  %v3654_v35 = vpop.f32.mrb[56].mxu1 }
 0x186   :  { %v1213_v39 = vpop.f32.mrb[58].mxu0  ;;  %v1468_v41 = vpop.f32.mrb[57].mxu1 }
 0x187   :  { %v1214_v43 = vadd.f32 %v3563_v48, %v1213_v39  ;;  %v1215_v45 = vpop.f32.mrb[59].mxu0  ;;  %v3657_v36 = vpop.f32.mrb[58].mxu1  ;;  %v3660_v1 = vadd.f32 %v3586_v13, %v1211_v33 }
 0x188   :  { %v1471_v50 = vpop.f32.mrb[59].mxu1 }
 0x189   :  { %v3663_v6 = vadd.f32 %v3589_v17, %v1214_v43 }
 0x18c   :  { %v1218_v51 = vpop.f32.mrb[60].mxu0 }
 0x18d   :  { %v1219_v53 = vadd.f32 %v3563_v48, %v1218_v51  ;;  %v1220_v55 = vpop.f32.mrb[61].mxu0  ;;  %v3666_v56 = vpop.f32.mrb[60].mxu1 }
 0x18e   :  { %v1221_v59 = vpop.f32.mrb[62].mxu0  ;;  %v1476_v61 = vpop.f32.mrb[61].mxu1 }
 0x18f   :  { %v1222_v63 = vadd.f32 %v3563_v48, %v1221_v59  ;;  %v1223_v2 = vpop.f32.mrb[63].mxu0  ;;  %v1477_v3 = vpop.f32.mrb[62].mxu1  ;;  %v3670_v4 = vadd.f32 %v3596_v24, %v1219_v53 }
 0x190   :  { %v1478_v13 = vpop.f32.mrb[63].mxu1 }
 0x191   :  { %v3673_v8 = vadd.f32 %v3599_v29, %v1222_v63 }
 0x194   :  { %v1226_v17 = vpop.f32.mrb[64].mxu0 }
 0x195   :  { %v1227_v10 = vadd.f32 %v3563_v48, %v1226_v17  ;;  %v1228_v11 = vpop.f32.mrb[65].mxu0  ;;  %v3676_v12 = vpop.f32.mrb[64].mxu1 }
 0x196   :  { %v1229_v0 = vpop.f32.mrb[66].mxu0  ;;  %v3678_v15 = vpop.f32.mrb[65].mxu1 }
 0x197   :  { %v1230_v16 = vadd.f32 %v3563_v48, %v1229_v0  ;;  %v1231_v19 = vpop.f32.mrb[67].mxu0  ;;  %v3681_v22 = vpop.f32.mrb[66].mxu1  ;;  %v3684_v24 = vadd.f32 %v3606_v37, %v1227_v10 }
 0x198   :  { %v3686_v23 = vpop.f32.mrb[67].mxu1 }
 0x199   :  { %v3689_v29 = vadd.f32 %v3609_v47, %v1230_v16 }
 0x19c   :  { %v1234_v25 = vpop.f32.mrb[68].mxu0 }
 0x19d   :  { %v1235_v26 = vadd.f32 %v3563_v48, %v1234_v25  ;;  %v1236_v28 = vpop.f32.mrb[69].mxu0  ;;  %v3692_v31 = vpop.f32.mrb[68].mxu1 }
 0x19e   :  { %v1237_v33 = vpop.f32.mrb[70].mxu0  ;;  %v3694_v34 = vpop.f32.mrb[69].mxu1 }
 0x19f   :  { %v1238_v39 = vadd.f32 %v3563_v48, %v1237_v33  ;;  %v1239_v41 = vpop.f32.mrb[71].mxu0  ;;  %v3697_v43 = vpop.f32.mrb[70].mxu1  ;;  %v3700_v37 = vadd.f32 %v3618_v54, %v1235_v26 }
 0x1a0   :  { %v3702_v45 = vpop.f32.mrb[71].mxu1 }
 0x1a1   :  { %v3705_v47 = vadd.f32 %v3621_v62, %v1238_v39 }
 0x1a4   :  { %v1242_v50 = vpop.f32.mrb[72].mxu0 }
 0x1a5   :  { %v1243_v51 = vadd.f32 %v3563_v48, %v1242_v50  ;;  %v1244_v53 = vpop.f32.mrb[73].mxu0  ;;  %v3708_v55 = vpop.f32.mrb[72].mxu1 }
 0x1a6   :  { %v1245_v59 = vpop.f32.mrb[74].mxu0  ;;  %v3710_v61 = vpop.f32.mrb[73].mxu1 }
 0x1a7   :  { %v1246_v63 = vadd.f32 %v3563_v48, %v1245_v59  ;;  %v1247_v2 = vpop.f32.mrb[75].mxu0  ;;  %v3713_v3 = vpop.f32.mrb[74].mxu1  ;;  %v3716_v54 = vadd.f32 %v3630_v5, %v1243_v51 }
 0x1a8   :  { %v3718_v13 = vpop.f32.mrb[75].mxu1 }
 0x1a9   :  { %v3721_v62 = vadd.f32 %v3633_v14, %v1246_v63 }
 0x1ac   :  { %v1250_v17 = vpop.f32.mrb[76].mxu0 }
 0x1ad   :  { %v1251_v10 = vadd.f32 %v3563_v48, %v1250_v17  ;;  %v2522_v11 = vpop.f32.mrb[76].mxu1  ;;  %v1252_v0 = vpop.f32.mrb[77].mxu0 }
 0x1ae   :  { %v3725_v16 = vadd.f32 %v2522_v11, %v3581_v7  ;;  %v1562_v19 = vpop.f32.mrb[77].mxu1  ;;  %v1253_v25 = vpop.f32.mrb[78].mxu0 }
 0x1af   :  { %v3728_v26 = vadd.f32 %v1562_v19, %v3571_v58  ;;  %v1254_v5 = vadd.f32 %v3563_v48, %v1253_v25  ;;  %v2523_v28 = vpop.f32.mrb[78].mxu1  ;;  %v1255_v33 = vpop.f32.mrb[79].mxu0  ;;  %v3732_v14 = vadd.f32 %v3642_v21, %v1251_v10 }
 0x1b0   :  { %v1745_v39 = vmin.f32 %v3725_v16, 0.0  ;;  %v3736_v41 = vadd.f32 %v2523_v28, %v3583_v9  ;;  %v1565_v50 = vpop.f32.mrb[79].mxu1  ;;  %vm1702_vm2 = vcmp.gt.f32.partialorder %v3725_v16, 0.0 }
 0x1b1   :  { %v1743_v7 = vmin.f32 %v3728_v26, 0.0  ;;  %v3740_v51 = vadd.f32 %v1565_v50, %v3573_v60  ;;  %v3743_v58 = vadd.f32 %v3645_v27, %v1254_v5  ;;  %vm1700_vm4 = vcmp.gt.f32.partialorder %v3728_v26, 0.0 }
 0x1b2   :  { %v1802_v53 = vmul.f32 1.442695, %v1745_v39  ;;  %v1746_v59 = vmin.f32 %v3736_v41, 0.0  ;;  %vm1703_vm5 = vcmp.gt.f32.partialorder %v3736_v41, 0.0 }
 0x1b3   :  { %v1798_v63 = vmul.f32 1.442695, %v1743_v7  ;;  %v1744_v21 = vmin.f32 %v3740_v51, 0.0  ;;  %vm1701_vm6 = vcmp.gt.f32.partialorder %v3740_v51, 0.0 }
 0x1b4   :  { %2872 = vpow2.f32 %v1802_v53  ;;  %v1804_v2 = vmul.f32 1.442695, %v1746_v59  ;;  %v1258_v17 = vpop.f32.mrb[80].mxu0 }
 0x1b5   :  { %2874 = vpow2.f32 %v1798_v63  ;;  %v1800_v9 = vmul.f32 1.442695, %v1744_v21  ;;  %v1259_v10 = vadd.f32 %v3563_v48, %v1258_v17  ;;  %v2526_v11 = vpop.f32.mrb[80].mxu1  ;;  %v1260_v0 = vpop.f32.mrb[81].mxu0 }
 0x1b6   :  { %2876 = vpow2.f32 %v1804_v2  ;;  %v3749_v60 = vadd.f32 %v2526_v11, %v3601_v30  ;;  %v1578_v27 = vpop.f32.mrb[81].mxu1  ;;  %v1261_v19 = vpop.f32.mrb[82].mxu0 }
 0x1b7   :  { %2878 = vpow2.f32 %v1800_v9  ;;  %v3752_v25 = vadd.f32 %v1578_v27, %v3591_v18  ;;  %v1262_v5 = vadd.f32 %v3563_v48, %v1261_v19  ;;  %v2527_v28 = vpop.f32.mrb[82].mxu1  ;;  %v1263_v33 = vpop.f32.mrb[83].mxu0  ;;  %v3756_v39 = vadd.f32 %v3654_v35, %v1259_v10 }
 0x1b8   :  { %v1749_v50 = vmin.f32 %v3749_v60, 0.0  ;;  %v3760_v7 = vadd.f32 %v2527_v28, %v3603_v32  ;;  %v1581_v30 = vpop.f32.mrb[83].mxu1  ;;  %vm1706_vm7 = vcmp.gt.f32.partialorder %v3749_v60, 0.0 }
 0x1b9   :  { %v1747_v53 = vmin.f32 %v3752_v25, 0.0  ;;  %v3764_v59 = vadd.f32 %v1581_v30, %v3593_v20  ;;  %v3767_v18 = vadd.f32 %v3657_v36, %v1262_v5  ;;  %vm1704_vm8 = vcmp.gt.f32.partialorder %v3752_v25, 0.0 }
 0x1ba   :  { %v1810_v63 = vmul.f32 1.442695, %v1749_v50  ;;  %v1750_v21 = vmin.f32 %v3760_v7, 0.0  ;;  %vm1707_vm9 = vcmp.gt.f32.partialorder %v3760_v7, 0.0 }
 0x1bb   :  { %v1806_v2 = vmul.f32 1.442695, %v1747_v53  ;;  %v1748_v35 = vmin.f32 %v3764_v59, 0.0  ;;  %vm1705_vm10 = vcmp.gt.f32.partialorder %v3764_v59, 0.0 }
 0x1bc   :  { %2880 = vpow2.f32 %v1810_v63  ;;  %v1812_v17 = vmul.f32 1.442695, %v1750_v21  ;;  %v1266_v9 = vpop.f32.mrb[84].mxu0 }
 0x1bd   :  { %2882 = vpow2.f32 %v1806_v2  ;;  %v1808_v32 = vmul.f32 1.442695, %v1748_v35  ;;  %v1267_v10 = vadd.f32 %v3563_v48, %v1266_v9  ;;  %v2530_v11 = vpop.f32.mrb[84].mxu1  ;;  %v1268_v0 = vpop.f32.mrb[85].mxu0 }
 0x1be   :  { %v2873_v20 = vpop.eup %2872  ;;  %2884 = vpow2.f32 %v1812_v17  ;;  %v3774_v36 = vadd.f32 %v2530_v11, %v3624_v40  ;;  %v1594_v27 = vpop.f32.mrb[85].mxu1 }
 0x1bf   :  { %v1269_v19 = vpop.f32.mrb[86].mxu0  ;;  %v2875_v5 = vpop.eup %2874  ;;  %v2353_v28 = vadd.f32 -1.0, %v2873_v20  ;;  %2886 = vpow2.f32 %v1808_v32  ;;  %v3777_v33 = vadd.f32 %v1594_v27, %v3612_v49  ;;  %v3780_v53 = vadd.f32 %v3666_v56, %v1267_v10 }
 0x1c0   :  { %v2531_v50 = vpop.f32.mrb[86].mxu1  ;;  %v1270_v30 = vpop.f32.mrb[87].mxu0  ;;  %v2351_v21 = vadd.f32 -1.0, %v2875_v5  ;;  %v1753_v40 = vmin.f32 %v3774_v36, 0.0  ;;  %vm1710_vm11 = vcmp.gt.f32.partialorder %v3774_v36, 0.0 }
 0x1c1   :  { %v2877_v63 = vpop.eup %2876  ;;  %v3785_v2 = vadd.f32 %v2531_v50, %v3627_v42  ;;  %v1597_v35 = vpop.f32.mrb[87].mxu1  ;;  %v1917_v49 = vsel %vm1702_vm2, %v3725_v16, %v2353_v28  ;;  %v1751_v56 = vmin.f32 %v3777_v33, 0.0  ;;  %vm1708_vm12 = vcmp.gt.f32.partialorder %v3777_v33, 0.0 }
 0x1c2   :  { %v2879_v17 = vpop.eup %2878  ;;  %v2354_v9 = vadd.f32 -1.0, %v2877_v63  ;;  %v2439_v32 = vpack.c.bf16 %v1917_v49, %v1917_v49  ;;  %v1915_v10 = vsel %vm1700_vm4, %v3728_v26, %v2351_v21  ;;  %v1818_v0 = vmul.f32 1.442695, %v1753_v40 }
 0x1c3   :  { %v2352_v11 = vadd.f32 -1.0, %v2879_v17  ;;  %v2437_v20 = vpack.c.bf16 %v1915_v10, %v1915_v10  ;;  %v1814_v27 = vmul.f32 1.442695, %v1751_v56  ;;  %v1754_v5 = vmin.f32 %v3785_v2, 0.0 }
 0x1c4   :  { %v1918_v42 = vsel %vm1703_vm5, %v3736_v41, %v2354_v9  ;;  %2134 = vst.msk [vmem:[%s4287_s3 + $0x38] sm:$0xf] %vm2119_vm3, %v2439_v32  ;;  %2888 = vpow2.f32 %v1818_v0  ;;  %v1306_v26 = vpop.f32.mrb[0].mxu0  ;;  %v3806_v28 = vadd.f32 %v1597_v35, %v3615_v38  ;;  %vm1711_vm13 = vcmp.gt.f32.partialorder %v3785_v2, 0.0 }
 0x1c5   :  { %v2440_v16 = vpack.c.bf16 %v1918_v42, %v1918_v42  ;;  %v1916_v19 = vsel %vm1701_vm6, %v3740_v51, %v2352_v11  ;;  %2132 = vst.msk [vmem:[%s4287_s3 + $0x30] sm:$0xf] %vm2119_vm3, %v2437_v20  ;;  %2890 = vpow2.f32 %v1814_v27  ;;  %v2584_v50 = vadd.f32 %v3563_v48, %v1306_v26  ;;  %v2534_v30 = vpop.f32.mrb[88].mxu1  ;;  %v1308_v63 = vpop.f32.mrb[1].mxu0 }
 0x1c6   :  { %v2438_v41 = vpack.c.bf16 %v1916_v19, %v1916_v19  ;;  %v2881_v21 = vpop.eup %2880  ;;  %v1820_v51 = vmul.f32 1.442695, %v1754_v5  ;;  %v3815_v40 = vadd.f32 %v2534_v30, %v3648_v52  ;;  %v1610_v17 = vpop.f32.mrb[89].mxu1  ;;  %v1752_v9 = vmin.f32 %v3806_v28, 0.0 }
 0x1c7   :  { %2135 = vst.msk [vmem:[%s4287_s3 + $0x3c] sm:$0xf] %vm2119_vm3, %v2440_v16  ;;  %v1309_v49 = vpop.f32.mrb[2].mxu0  ;;  %v2883_v38 = vpop.eup %2882  ;;  %v2357_v35 = vadd.f32 -1.0, %v2881_v21  ;;  %v3824_v56 = vadd.f32 %v2584_v50, %v3678_v15  ;;  %vm1709_vm14 = vcmp.gt.f32.partialorder %v3806_v28, 0.0 }
 0x1c8   :  { %2133 = vst.msk [vmem:[%s4287_s3 + $0x34] sm:$0xf] %vm2119_vm3, %v2438_v41  ;;  %v2535_v32 = vpop.f32.mrb[90].mxu1  ;;  %v1311_v10 = vpop.f32.mrb[3].mxu0  ;;  %v2355_v11 = vadd.f32 -1.0, %v2883_v38  ;;  %2892 = vpow2.f32 %v1820_v51  ;;  %v1757_v0 = vmin.f32 %v3815_v40, 0.0  ;;  %v3843_v38 = vadd.f32 %v1610_v17, %v3636_v44 }
 0x1c9   :  { %v2885_v52 = vpop.eup %2884  ;;  %v1613_v20 = vpop.f32.mrb[91].mxu1  ;;  %v1921_v27 = vsel %vm1706_vm7, %v3749_v60, %v2357_v35  ;;  %v1816_v15 = vmul.f32 1.442695, %v1752_v9  ;;  %v1731_v41 = vmin.f32 %v3824_v56, 0.0  ;;  %v2585_v35 = vadd.f32 %v3563_v48, %v1309_v49 }
 0x1ca   :  { %v2887_v42 = vpop.eup %2886  ;;  %v2358_v16 = vadd.f32 -1.0, %v2885_v52  ;;  %v2443_v19 = vpack.c.bf16 %v1921_v27, %v1921_v27  ;;  %v1919_v5 = vsel %vm1704_vm8, %v3752_v25, %v2355_v11  ;;  %v1826_v63 = vmul.f32 1.442695, %v1757_v0 }
 0x1cb   :  { %v2356_v26 = vadd.f32 -1.0, %v2887_v42  ;;  %v2441_v50 = vpack.c.bf16 %v1919_v5, %v1919_v5  ;;  %2894 = vpow2.f32 %v1816_v15  ;;  %v1774_v51 = vmul.f32 1.442695, %v1731_v41 }
 0x1cc   :  { %v1922_v30 = vsel %vm1707_vm9, %v3760_v7, %v2358_v16  ;;  %2138 = vst.msk [vmem:[%s4287_s3 + $0x48] sm:$0xf] %vm2119_vm3, %v2443_v19  ;;  %v1314_v25 = vpop.f32.mrb[4].mxu0  ;;  %2896 = vpow2.f32 %v1826_v63  ;;  %v3851_v9 = vadd.f32 %v2535_v32, %v3651_v57  ;;  %v1755_v44 = vmin.f32 %v3843_v38, 0.0 }
 0x1cd   :  { %v2444_v60 = vpack.c.bf16 %v1922_v30, %v1922_v30  ;;  %v1920_v21 = vsel %vm1705_vm10, %v3764_v59, %v2356_v26  ;;  %2136 = vst.msk [vmem:[%s4287_s3 + $0x40] sm:$0xf] %vm2119_vm3, %v2441_v50  ;;  %v2538_v10 = vpop.f32.mrb[92].mxu1  ;;  %v1316_v52 = vpop.f32.mrb[5].mxu0  ;;  %2898 = vpow2.f32 %v1774_v51  ;;  %v3860_v17 = vadd.f32 %v1613_v20, %v3639_v46 }
 0x1ce   :  { %v2442_v7 = vpack.c.bf16 %v1920_v21, %v1920_v21  ;;  %v2889_v59 = vpop.eup %2888  ;;  %v1626_v49 = vpop.f32.mrb[93].mxu1  ;;  %v3868_v0 = vadd.f32 %v2585_v35, %v3686_v23  ;;  %v1758_v42 = vmin.f32 %v3851_v9, 0.0  ;;  %v1822_v20 = vmul.f32 1.442695, %v1755_v44 }
 0x1cf   :  { %2139 = vst.msk [vmem:[%s4287_s3 + $0x4c] sm:$0xf] %vm2119_vm3, %v2444_v60  ;;  %v1317_v11 = vpop.f32.mrb[6].mxu0  ;;  %v2891_v57 = vpop.eup %2890  ;;  %v2361_v32 = vadd.f32 -1.0, %v2889_v59  ;;  %v1756_v15 = vmin.f32 %v3860_v17, 0.0  ;;  %v3892_v35 = vadd.f32 %v1626_v49, %v3660_v1  ;;  %vm1714_vm15 = vcmp.gt.f32.partialorder %v3815_v40, 0.0 }
 0x1d0   :  { %2137 = vst.msk [vmem:[%s4287_s3 + $0x44] sm:$0xf] %vm2119_vm3, %v2442_v7  ;;  %v2539_v27 = vpop.f32.mrb[94].mxu1  ;;  %v1319_v16 = vpop.f32.mrb[7].mxu0  ;;  %v2359_v46 = vadd.f32 -1.0, %v2891_v57  ;;  %v1732_v23 = vmin.f32 %v3868_v0, 0.0  ;;  %2900 = vpow2.f32 %v1822_v20  ;;  %v3889_v7 = vadd.f32 %v2538_v10, %v3670_v4 }
 0x1d1   :  { %v3873_v19 = vpop.f32.mrb[95].mxu1  ;;  %v1925_v5 = vsel %vm1710_vm11, %v3774_v36, %v2361_v32  ;;  %v1828_v26 = vmul.f32 1.442695, %v1758_v42  ;;  %v1824_v63 = vmul.f32 1.442695, %v1756_v15  ;;  %v2586_v36 = vadd.f32 %v3563_v48, %v1314_v25 }
 0x1d2   :  { %v2893_v41 = vpop.eup %2892  ;;  %v2447_v50 = vpack.c.bf16 %v1925_v5, %v1925_v5  ;;  %v1923_v30 = vsel %vm1708_vm12, %v3777_v33, %v2359_v46  ;;  %v1776_v51 = vmul.f32 1.442695, %v1732_v23  ;;  %v2587_v25 = vadd.f32 %v3563_v48, %v1317_v11 }
 0x1d3   :  { %v2445_v60 = vpack.c.bf16 %v1923_v30, %v1923_v30  ;;  %v2362_v21 = vadd.f32 -1.0, %v2893_v41  ;;  %2902 = vpow2.f32 %v1828_v26  ;;  %v3903_v4 = vadd.f32 %v2539_v27, %v3673_v8 }
 0x1d4   :  { %2142 = vst.msk [vmem:[%s4287_s3 + $0x58] sm:$0xf] %vm2119_vm3, %v2447_v50  ;;  %2904 = vpow2.f32 %v1824_v63  ;;  %v1322_v33 = vpop.f32.mrb[8].mxu0  ;;  %v3907_v57 = vadd.f32 %v2586_v36, %v3676_v12  ;;  %vm1688_vm0 = vcmp.gt.f32.partialorder %v3824_v56, 0.0  ;;  %v1761_v11 = vmin.f32 %v3889_v7, 0.0 }
 0x1d5   :  { %v2895_v52 = vpop.eup %2894  ;;  %2140 = vst.msk [vmem:[%s4287_s3 + $0x50] sm:$0xf] %vm2119_vm3, %v2445_v60  ;;  %v1926_v59 = vsel %vm1711_vm13, %v3785_v2, %v2362_v21  ;;  %2906 = vpow2.f32 %v1776_v51  ;;  %v2542_v10 = vpop.f32.mrb[96].mxu1  ;;  %v1759_v8 = vmin.f32 %v3892_v35, 0.0  ;;  %v3917_v27 = vadd.f32 %v2587_v25, %v3681_v22 }
 0x1d6   :  { %v1324_v1 = vpop.f32.mrb[9].mxu0  ;;  %v2448_v44 = vpack.c.bf16 %v1926_v59, %v1926_v59  ;;  %v2360_v49 = vadd.f32 -1.0, %v2895_v52  ;;  %v3909_v32 = vpop.f32.mrb[97].mxu1  ;;  %vm1712_vm1 = vcmp.gt.f32.partialorder %v3843_v38, 0.0  ;;  %v1733_v5 = vmin.f32 %v3907_v57, 0.0 }
 0x1d7   :  { %v3911_v42 = vpop.f32.mrb[10].mxu0  ;;  %v2897_v2 = vpop.eup %2896  ;;  %v1834_v41 = vmul.f32 1.442695, %v1761_v11  ;;  %v1830_v50 = vmul.f32 1.442695, %v1759_v8  ;;  %vm1715_vm2 = vcmp.gt.f32.partialorder %v3851_v9, 0.0 }
 0x1d8   :  { %v3919_v16 = vpop.f32.mrb[98].mxu1  ;;  %v1327_v46 = vpop.f32.mrb[11].mxu0  ;;  %2143 = vst.msk [vmem:[%s4287_s3 + $0x5c] sm:$0xf] %vm2119_vm3, %v2448_v44  ;;  %v1924_v12 = vsel %vm1709_vm14, %v3806_v28, %v2360_v49  ;;  %v2365_v15 = vadd.f32 -1.0, %v2897_v2  ;;  %v1734_v28 = vmin.f32 %v3917_v27, 0.0  ;;  %v2588_v44 = vadd.f32 %v3563_v48, %v1322_v33 }
 0x1d9   :  { %v2899_v20 = vpop.eup %2898  ;;  %v3930_v22 = vpop.f32.mrb[99].mxu1  ;;  %v2446_v23 = vpack.c.bf16 %v1924_v12, %v1924_v12  ;;  %v1778_v63 = vmul.f32 1.442695, %v1733_v5  ;;  %vm1713_vm4 = vcmp.gt.f32.partialorder %v3860_v17, 0.0  ;;  %2908 = vpow2.f32 %v1834_v41 }
 0x1da   :  { %v2339_v26 = vadd.f32 -1.0, %v2899_v20  ;;  %v1929_v30 = vsel %vm1714_vm15, %v3815_v40, %v2365_v15  ;;  %v2901_v51 = vpop.eup %2900  ;;  %v1780_v36 = vmul.f32 1.442695, %v1734_v28  ;;  %v1762_v52 = vmin.f32 %v3903_v4, 0.0 }
 0x1db   :  { %2141 = vst.msk [vmem:[%s4287_s3 + $0x54] sm:$0xf] %vm2119_vm3, %v2446_v23  ;;  %v2451_v21 = vpack.c.bf16 %v1929_v30, %v1929_v30  ;;  %2910 = vpow2.f32 %v1778_v63  ;;  %v2363_v1 = vadd.f32 -1.0, %v2901_v51  ;;  %v3962_v20 = vadd.f32 %v2542_v10, %v3700_v37 }
 0x1dc   :  { %v1903_v60 = vsel %vm1688_vm0, %v3824_v56, %v2339_v26  ;;  %v3946_v59 = vpop.f32.mrb[12].mxu0  ;;  %2912 = vpow2.f32 %v1830_v50  ;;  %v3954_v56 = vadd.f32 %v3873_v19, %v3663_v6  ;;  %v1836_v46 = vmul.f32 1.442695, %v1762_v52 }
 0x1dd   :  { %v2425_v40 = vpack.c.bf16 %v1903_v60, %v1903_v60  ;;  %v2903_v25 = vpop.eup %2902  ;;  %2146 = vst.msk [vmem:[%s4287_s3 + $0x68] sm:$0xf] %vm2119_vm3, %v2451_v21  ;;  %v2546_v49 = vpop.f32.mrb[100].mxu1  ;;  %2914 = vpow2.f32 %v1780_v36  ;;  %v1927_v33 = vsel %vm1712_vm1, %v3843_v38, %v2363_v1  ;;  %vm1689_vm5 = vcmp.gt.f32.partialorder %v3868_v0, 0.0 }
 0x1de   :  { %v1332_v2 = vpop.f32.mrb[13].mxu0  ;;  %v2905_v11 = vpop.eup %2904  ;;  %v2366_v8 = vadd.f32 -1.0, %v2903_v25  ;;  %v1760_v5 = vmin.f32 %v3954_v56, 0.0  ;;  %v2449_v41 = vpack.c.bf16 %v1927_v33, %v1927_v33  ;;  %2916 = vpow2.f32 %v1836_v46 }
 0x1df   :  { %2120 = vst.msk [vmem:[%s4287_s3] sm:$0xf] %vm2119_vm3, %v2425_v40  ;;  %v3964_v12 = vpop.f32.mrb[101].mxu1  ;;  %v3966_v6 = vpop.f32.mrb[14].mxu0  ;;  %v2364_v15 = vadd.f32 -1.0, %v2905_v11  ;;  %v3984_v28 = vadd.f32 %v2588_v44, %v3694_v34  ;;  %v1765_v21 = vmin.f32 %v3962_v20, 0.0  ;;  %v2589_v40 = vadd.f32 %v3563_v48, %v3911_v42 }
 0x1e0   :  { %v2907_v19 = vpop.eup %2906  ;;  %v3973_v23 = vpop.f32.mrb[102].mxu1  ;;  %v1930_v10 = vsel %vm1715_vm2, %v3851_v9, %v2366_v8  ;;  %v1832_v63 = vmul.f32 1.442695, %v1760_v5  ;;  %2144 = vst.msk [vmem:[%s4287_s3 + $0x60] sm:$0xf] %vm2119_vm3, %v2449_v41  ;;  %vm1718_vm6 = vcmp.gt.f32.partialorder %v3889_v7, 0.0  ;;  %v4010_v36 = vadd.f32 %v3919_v16, %v3705_v47 }
 0x1e1   :  { %v1335_v26 = vpop.f32.mrb[15].mxu0  ;;  %v2340_v37 = vadd.f32 -1.0, %v2907_v19  ;;  %v3978_v50 = vpop.f32.mrb[103].mxu1  ;;  %v2452_v30 = vpack.c.bf16 %v1930_v10, %v1930_v10  ;;  %v1928_v38 = vsel %vm1713_vm4, %v3860_v17, %v2364_v15  ;;  %v1735_v34 = vmin.f32 %v3984_v28, 0.0 }
 0x1e2   :  { %v2450_v9 = vpack.c.bf16 %v1928_v38, %v1928_v38  ;;  %2918 = vpow2.f32 %v1832_v63  ;;  %v1842_v17 = vmul.f32 1.442695, %v1765_v21  ;;  %vm1716_vm7 = vcmp.gt.f32.partialorder %v3892_v35, 0.0 }
 0x1e3   :  { %v1904_v60 = vsel %vm1689_vm5, %v3868_v0, %v2340_v37  ;;  %2147 = vst.msk [vmem:[%s4287_s3 + $0x6c] sm:$0xf] %vm2119_vm3, %v2452_v30  ;;  %v4004_v0 = vadd.f32 %v3909_v32, %v3684_v24  ;;  %v2909_v25 = vpop.eup %2908  ;;  %v1782_v1 = vmul.f32 1.442695, %v1735_v34  ;;  %v4021_v24 = vadd.f32 %v3930_v22, %v3689_v29 }
 0x1e4   :  { %v2426_v51 = vpack.c.bf16 %v1904_v60, %v1904_v60  ;;  %2145 = vst.msk [vmem:[%s4287_s3 + $0x64] sm:$0xf] %vm2119_vm3, %v2450_v9  ;;  %v4012_v52 = vpop.f32.mrb[16].mxu0  ;;  %v4024_v32 = vadd.f32 %v2546_v49, %v3732_v14  ;;  %vm1690_vm8 = vcmp.gt.f32.partialorder %v3907_v57, 0.0  ;;  %v2369_v44 = vadd.f32 -1.0, %v2909_v25 }
 0x1e5   :  { %v4026_v47 = vpop.f32.mrb[104].mxu1  ;;  %v1340_v42 = vpop.f32.mrb[17].mxu0  ;;  %2920 = vpow2.f32 %v1842_v17  ;;  %v1763_v2 = vmin.f32 %v4004_v0, 0.0  ;;  %vm1691_vm9 = vcmp.gt.f32.partialorder %v3917_v27, 0.0  ;;  %v4036_v14 = vadd.f32 %v2589_v40, %v3702_v45 }
 0x1e6   :  { %2121 = vst.msk [vmem:[%s4287_s3 + $0x4] sm:$0xf] %vm2119_vm3, %v2426_v51  ;;  %v2911_v16 = vpop.eup %2910  ;;  %v4030_v11 = vpop.f32.mrb[105].mxu1  ;;  %2922 = vpow2.f32 %v1782_v1  ;;  %v1933_v33 = vsel %vm1718_vm6, %v3889_v7, %v2369_v44  ;;  %v1766_v26 = vmin.f32 %v4010_v36, 0.0  ;;  %v2590_v30 = vadd.f32 %v3563_v48, %v3946_v59 }
 0x1e7   :  { %v4032_v8 = vpop.f32.mrb[18].mxu0  ;;  %v2913_v46 = vpop.eup %2912  ;;  %v2341_v29 = vadd.f32 -1.0, %v2911_v16  ;;  %v1838_v5 = vmul.f32 1.442695, %v1763_v2  ;;  %v2455_v10 = vpack.c.bf16 %v1933_v33, %v1933_v33  ;;  %v1736_v60 = vmin.f32 %v4036_v14, 0.0 }
 0x1e8   :  { %v2551_v22 = vpop.f32.mrb[106].mxu1  ;;  %v1343_v49 = vpop.f32.mrb[19].mxu0  ;;  %v2367_v15 = vadd.f32 -1.0, %v2913_v46  ;;  %v1844_v59 = vmul.f32 1.442695, %v1766_v26  ;;  %vm1719_vm10 = vcmp.gt.f32.partialorder %v3903_v4, 0.0  ;;  %v4075_v40 = vadd.f32 %v2590_v30, %v3692_v31 }
 0x1e9   :  { %v2915_v19 = vpop.eup %2914  ;;  %v4042_v41 = vpop.f32.mrb[107].mxu1  ;;  %v1905_v37 = vsel %vm1690_vm8, %v3907_v57, %v2341_v29  ;;  %2924 = vpow2.f32 %v1838_v5  ;;  %2150 = vst.msk [vmem:[%s4287_s3 + $0x78] sm:$0xf] %vm2119_vm3, %v2455_v10  ;;  %v1784_v21 = vmul.f32 1.442695, %v1736_v60  ;;  %v1764_v51 = vmin.f32 %v4021_v24, 0.0 }
 0x1ea   :  { %v2342_v45 = vadd.f32 -1.0, %v2915_v19  ;;  %v2917_v38 = vpop.eup %2916  ;;  %v2427_v63 = vpack.c.bf16 %v1905_v37, %v1905_v37  ;;  %v1931_v7 = vsel %vm1716_vm7, %v3892_v35, %v2367_v15  ;;  %vm1717_vm11 = vcmp.gt.f32.partialorder %v3954_v56, 0.0  ;;  %v4100_v49 = vld [vmem:[%s4286_s2] ss:$0 sm:$0xff] }
 0x1eb   :  { %v2453_v57 = vpack.c.bf16 %v1931_v7, %v1931_v7  ;;  %v2370_v48 = vadd.f32 -1.0, %v2917_v38  ;;  %2926 = vpow2.f32 %v1844_v59  ;;  %v1840_v16 = vmul.f32 1.442695, %v1764_v51 }
 0x1ec   :  { %v1906_v9 = vsel %vm1691_vm9, %v3917_v27, %v2342_v45  ;;  %2122 = vst.msk [vmem:[%s4287_s3 + $0x8] sm:$0xf] %vm2119_vm3, %v2427_v63  ;;  %v4066_v34 = vpop.f32.mrb[20].mxu0  ;;  %v2919_v17 = vpop.eup %2918  ;;  %2928 = vpow2.f32 %v1784_v21  ;;  %vm1722_vm12 = vcmp.gt.f32.partialorder %v3962_v20, 0.0  ;;  %v1769_v2 = vmin.f32 %v4024_v32, 0.0 }
 0x1ed   :  { %v2428_v35 = vpack.c.bf16 %v1906_v9, %v1906_v9  ;;  %2148 = vst.msk [vmem:[%s4287_s3 + $0x70] sm:$0xf] %vm2119_vm3, %v2453_v57  ;;  %v1934_v27 = vsel %vm1719_vm10, %v3903_v4, %v2370_v48  ;;  %v1348_v25 = vpop.f32.mrb[21].mxu0  ;;  %v2368_v42 = vadd.f32 -1.0, %v2919_v17  ;;  %v1737_v4 = vmin.f32 %v4075_v40, 0.0 }
 0x1ee   :  { %v2456_v1 = vpack.c.bf16 %v1934_v27, %v1934_v27  ;;  %v4081_v44 = vpop.f32.mrb[22].mxu0  ;;  %v4088_v31 = vadd.f32 %v3964_v12, %v3716_v54  ;;  %2930 = vpow2.f32 %v1840_v16  ;;  %v2591_v54 = vadd.f32 %v4100_v49, %v3966_v6 }
 0x1ef   :  { %2123 = vst.msk [vmem:[%s4287_s3 + $0xc] sm:$0xf] %vm2119_vm3, %v2428_v35  ;;  %v1351_v46 = vpop.f32.mrb[23].mxu0  ;;  %v2921_v29 = vpop.eup %2920  ;;  %v1932_v22 = vsel %vm1717_vm11, %v3954_v56, %v2368_v42  ;;  %v4106_v12 = vadd.f32 %v3973_v23, %v3743_v58  ;;  %v1786_v5 = vmul.f32 1.442695, %v1737_v4  ;;  %vm1692_vm13 = vcmp.gt.f32.partialorder %v3984_v28, 0.0 }
 0x1f0   :  { %2151 = vst.msk [vmem:[%s4287_s3 + $0x7c] sm:$0xf] %vm2119_vm3, %v2456_v1  ;;  %v2923_v19 = vpop.eup %2922  ;;  %v2454_v33 = vpack.c.bf16 %v1932_v22, %v1932_v22  ;;  %v2373_v15 = vadd.f32 -1.0, %v2921_v29  ;;  %v1850_v26 = vmul.f32 1.442695, %v1769_v2  ;;  %v1767_v37 = vmin.f32 %v4088_v31, 0.0 }
 0x1f1   :  { %v2343_v56 = vadd.f32 -1.0, %v2923_v19  ;;  %v4111_v10 = vadd.f32 %v2591_v54, %v3697_v43  ;;  %vm1720_vm14 = vcmp.gt.f32.partialorder %v4004_v0, 0.0  ;;  %2932 = vpow2.f32 %v1786_v5 }
 0x1f2   :  { %2149 = vst.msk [vmem:[%s4287_s3 + $0x74] sm:$0xf] %vm2119_vm3, %v2454_v33  ;;  %v1937_v58 = vsel %vm1722_vm12, %v3962_v20, %v2373_v15  ;;  %v1770_v6 = vmin.f32 %v4106_v12, 0.0  ;;  %2934 = vpow2.f32 %v1850_v26  ;;  %v1846_v43 = vmul.f32 1.442695, %v1767_v37 }
 0x1f3   :  { %v2925_v23 = vpop.eup %2924  ;;  %v1907_v45 = vsel %vm1692_vm13, %v3984_v28, %v2343_v56  ;;  %v2459_v30 = vpack.c.bf16 %v1937_v58, %v1937_v58  ;;  %vm1723_vm15 = vcmp.gt.f32.partialorder %v4010_v36, 0.0  ;;  %v1738_v7 = vmin.f32 %v4111_v10, 0.0 }
 0x1f4   :  { %v2429_v38 = vpack.c.bf16 %v1907_v45, %v1907_v45  ;;  %v2371_v63 = vadd.f32 -1.0, %v2925_v23  ;;  %2936 = vpow2.f32 %v1846_v43  ;;  %v1852_v20 = vmul.f32 1.442695, %v1770_v6 }
 0x1f5   :  { %2154 = vst.msk [vmem:[%s4287_s3 + $0x88] sm:$0xf] %vm2119_vm3, %v2459_v30  ;;  %v4131_v60 = vadd.f32 %v3978_v50, %v3721_v62  ;;  %v2592_v28 = vadd.f32 %v4100_v49, %v4012_v52  ;;  %v2927_v57 = vpop.eup %2926  ;;  %v1788_v48 = vmul.f32 1.442695, %v1738_v7  ;;  %v4144_v59 = vadd.f32 %v4026_v47, %v3780_v53 }
 0x1f6   :  { %2124 = vst.msk [vmem:[%s4287_s3 + $0x10] sm:$0xf] %vm2119_vm3, %v2429_v38  ;;  %v1935_v9 = vsel %vm1720_vm14, %v4004_v0, %v2371_v63  ;;  %v4148_v62 = vadd.f32 %v4030_v11, %v3756_v39  ;;  %v2929_v50 = vpop.eup %2928  ;;  %vm1693_vm0 = vcmp.gt.f32.partialorder %v4036_v14, 0.0  ;;  %v2374_v35 = vadd.f32 -1.0, %v2927_v57 }
 0x1f7   :  { %v2457_v52 = vpack.c.bf16 %v1935_v9, %v1935_v9  ;;  %2938 = vpow2.f32 %v1852_v20  ;;  %v2344_v21 = vadd.f32 -1.0, %v2929_v50  ;;  %v1768_v51 = vmin.f32 %v4131_v60, 0.0 }
 0x1f8   :  { %2940 = vpow2.f32 %v1788_v48  ;;  %v4153_v0 = vadd.f32 %v2592_v28, %v3710_v61  ;;  %v2931_v17 = vpop.eup %2930  ;;  %v1938_v39 = vsel %vm1723_vm15, %v4010_v36, %v2374_v35  ;;  %vm1721_vm1 = vcmp.gt.f32.partialorder %v4021_v24, 0.0 }
 0x1f9   :  { %2152 = vst.msk [vmem:[%s4287_s3 + $0x80] sm:$0xf] %vm2119_vm3, %v2457_v52  ;;  %vm1726_vm2 = vcmp.gt.f32.partialorder %v4024_v32, 0.0  ;;  %v1773_v53 = vmin.f32 %v4144_v59, 0.0  ;;  %v1908_v47 = vsel %vm1693_vm0, %v4036_v14, %v2344_v21  ;;  %v2460_v61 = vpack.c.bf16 %v1938_v39, %v1938_v39 }
 0x1fa   :  { %v2372_v11 = vadd.f32 -1.0, %v2931_v17  ;;  %v1848_v27 = vmul.f32 1.442695, %v1768_v51  ;;  %v2430_v25 = vpack.c.bf16 %v1908_v47, %v1908_v47  ;;  %vm1694_vm4 = vcmp.gt.f32.partialorder %v4075_v40, 0.0 }
 0x1fb   :  { %v1739_v1 = vmin.f32 %v4153_v0, 0.0  ;;  %v1858_v42 = vmul.f32 1.442695, %v1773_v53  ;;  %v2933_v16 = vpop.eup %2932  ;;  %2155 = vst.msk [vmem:[%s4287_s3 + $0x8c] sm:$0xf] %vm2119_vm3, %v2460_v61  ;;  %v1771_v14 = vmin.f32 %v4148_v62, 0.0  ;;  %v2593_v4 = vadd.f32 %v4100_v49, %v4032_v8 }
 0x1fc   :  { %v1936_v36 = vsel %vm1721_vm1, %v4021_v24, %v2372_v11  ;;  %2942 = vpow2.f32 %v1848_v27  ;;  %v2935_v2 = vpop.eup %2934  ;;  %2125 = vst.msk [vmem:[%s4287_s3 + $0x14] sm:$0xf] %vm2119_vm3, %v2430_v25  ;;  %v2345_v29 = vadd.f32 -1.0, %v2933_v16  ;;  %v4185_v33 = vadd.f32 %v4042_v41, %v3767_v18 }
 0x1fd   :  { %v2458_v46 = vpack.c.bf16 %v1936_v36, %v1936_v36  ;;  %v1790_v22 = vmul.f32 1.442695, %v1739_v1  ;;  %2944 = vpow2.f32 %v1858_v42  ;;  %v2377_v54 = vadd.f32 -1.0, %v2935_v2 }
 0x1fe   :  { %v1854_v19 = vmul.f32 1.442695, %v1771_v14  ;;  %v4181_v24 = vadd.f32 %v2593_v4, %v3718_v13  ;;  %v2937_v8 = vpop.eup %2936  ;;  %v1909_v15 = vsel %vm1694_vm4, %v4075_v40, %v2345_v29  ;;  %v2594_v5 = vadd.f32 %v4100_v49, %v4066_v34 }
 0x1ff   :  { %2153 = vst.msk [vmem:[%s4287_s3 + $0x84] sm:$0xf] %vm2119_vm3, %v2458_v46  ;;  %2946 = vpow2.f32 %v1790_v22  ;;  %v2595_v13 = vadd.f32 %v4100_v49, %v4081_v44  ;;  %v2431_v26 = vpack.c.bf16 %v1909_v15, %v1909_v15  ;;  %v1941_v18 = vsel %vm1726_vm2, %v4024_v32, %v2377_v54 }
 0x200   :  { %v2375_v41 = vadd.f32 -1.0, %v2937_v8  ;;  %2948 = vpow2.f32 %v1854_v19  ;;  %v2463_v37 = vpack.c.bf16 %v1941_v18, %v1941_v18  ;;  %vm1724_vm5 = vcmp.gt.f32.partialorder %v4088_v31, 0.0 }
 0x201   :  { %v2939_v56 = vpop.eup %2938  ;;  %vm1727_vm6 = vcmp.gt.f32.partialorder %v4106_v12, 0.0  ;;  %v1740_v40 = vmin.f32 %v4181_v24, 0.0  ;;  %2126 = vst.msk [vmem:[%s4287_s3 + $0x18] sm:$0xf] %vm2119_vm3, %v2431_v26  ;;  %v1772_v32 = vmin.f32 %v4185_v33, 0.0  ;;  %v4211_v49 = vadd.f32 %v2594_v5, %v3708_v55 }
 0x202   :  { %v2941_v58 = vpop.eup %2940  ;;  %v1939_v34 = vsel %vm1724_vm5, %v4088_v31, %v2375_v41  ;;  %v2378_v44 = vadd.f32 -1.0, %v2939_v56  ;;  %2158 = vst.msk [vmem:[%s4287_s3 + $0x98] sm:$0xf] %vm2119_vm3, %v2463_v37  ;;  %v4218_v30 = vadd.f32 %v2595_v13, %v3713_v3  ;;  %vm1695_vm7 = vcmp.gt.f32.partialorder %v4111_v10, 0.0 }
 0x203   :  { %v2461_v6 = vpack.c.bf16 %v1939_v34, %v1939_v34  ;;  %v2346_v23 = vadd.f32 -1.0, %v2941_v58  ;;  %v1792_v45 = vmul.f32 1.442695, %v1740_v40  ;;  %v1856_v43 = vmul.f32 1.442695, %v1772_v32 }
 0x204   :  { %v1942_v31 = vsel %vm1727_vm6, %v4106_v12, %v2378_v44  ;;  %v1741_v38 = vmin.f32 %v4211_v49, 0.0  ;;  %v1742_v28 = vmin.f32 %v4218_v30, 0.0  ;;  %vm1725_vm8 = vcmp.gt.f32.partialorder %v4131_v60, 0.0 }
 0x205   :  { %2156 = vst.msk [vmem:[%s4287_s3 + $0x90] sm:$0xf] %vm2119_vm3, %v2461_v6  ;;  %v1910_v55 = vsel %vm1695_vm7, %v4111_v10, %v2346_v23  ;;  %v2464_v63 = vpack.c.bf16 %v1942_v31, %v1942_v31  ;;  %2950 = vpow2.f32 %v1792_v45  ;;  %vm1730_vm9 = vcmp.gt.f32.partialorder %v4144_v59, 0.0 }
 0x206   :  { %v2943_v7 = vpop.eup %2942  ;;  %v2432_v20 = vpack.c.bf16 %v1910_v55, %v1910_v55  ;;  %2952 = vpow2.f32 %v1856_v43  ;;  %v1794_v3 = vmul.f32 1.442695, %v1741_v38  ;;  %v1796_v9 = vmul.f32 1.442695, %v1742_v28 }
 0x207   :  { %v2945_v57 = vpop.eup %2944  ;;  %2159 = vst.msk [vmem:[%s4287_s3 + $0x9c] sm:$0xf] %vm2119_vm3, %v2464_v63  ;;  %v2376_v12 = vadd.f32 -1.0, %v2943_v7  ;;  %vm2162_vm10 = vcmask 286720   ;;  %vm1696_vm11 = vcmp.gt.f32.partialorder %v4153_v0, 0.0  ;;  %vm1728_vm12 = vcmp.gt.f32.partialorder %v4148_v62, 0.0 }
 0x208   :  { %2127 = vst.msk [vmem:[%s4287_s3 + $0x1c] sm:$0xf] %vm2119_vm3, %v2432_v20  ;;  %v2381_v10 = vadd.f32 -1.0, %v2945_v57  ;;  %2954 = vpow2.f32 %v1794_v3  ;;  %vm1697_vm13 = vcmp.gt.f32.partialorder %v4181_v24, 0.0  ;;  %vm1729_vm14 = vcmp.gt.f32.partialorder %v4185_v33, 0.0 }
 0x209   :  { %v2947_v48 = vpop.eup %2946  ;;  %v1940_v50 = vsel %vm1725_vm8, %v4131_v60, %v2376_v12  ;;  %2956 = vpow2.f32 %v1796_v9  ;;  %vm1698_vm15 = vcmp.gt.f32.partialorder %v4211_v49, 0.0  ;;  %vm1699_vm0 = vcmp.gt.f32.partialorder %v4218_v30, 0.0 }
 0x20a   :  { %v2949_v52 = vpop.eup %2948  ;;  %v2462_v35 = vpack.c.bf16 %v1940_v50, %v1940_v50  ;;  %v2347_v21 = vadd.f32 -1.0, %v2947_v48  ;;  %v1945_v51 = vsel %vm1730_vm9, %v4144_v59, %v2381_v10 }
 0x20b   :  { %v2467_v17 = vpack.c.bf16 %v1945_v51, %v1945_v51  ;;  %v2379_v39 = vadd.f32 -1.0, %v2949_v52 }
 0x20c   :  { %2157 = vst.msk [vmem:[%s4287_s3 + $0x94] sm:$0xf] %vm2119_vm3, %v2462_v35  ;;  %v1911_v60 = vsel %vm1696_vm11, %v4153_v0, %v2347_v21 }
 0x20d   :  { %v2433_v53 = vpack.c.bf16 %v1911_v60, %v1911_v60  ;;  %2163 = vst.msk [vmem:[%s4287_s3 + $0xa8] sm:$0x1] %vm2162_vm10, %v2467_v17  ;;  %v1943_v59 = vsel %vm1728_vm12, %v4148_v62, %v2379_v39 }
 0x20e   :  { %v2465_v47 = vpack.c.bf16 %v1943_v59, %v1943_v59 }
 0x20f   :  { %v2951_v61 = vpop.eup %2950  ;;  %2128 = vst.msk [vmem:[%s4287_s3 + $0x20] sm:$0xf] %vm2119_vm3, %v2433_v53 }
 0x210   :  { %v2953_v11 = vpop.eup %2952  ;;  %2160 = vst.msk [vmem:[%s4287_s3 + $0xa0] sm:$0xf] %vm2119_vm3, %v2465_v47  ;;  %v2348_v0 = vadd.f32 -1.0, %v2951_v61 }
 0x211   :  { %v2380_v27 = vadd.f32 -1.0, %v2953_v11 }
 0x212   :  { %v2955_v25 = vpop.eup %2954  ;;  %v1912_v62 = vsel %vm1697_vm13, %v4181_v24, %v2348_v0 }
 0x213   :  { %v2434_v1 = vpack.c.bf16 %v1912_v62, %v1912_v62  ;;  %v1944_v42 = vsel %vm1729_vm14, %v4185_v33, %v2380_v27  ;;  %v2349_v16 = vadd.f32 -1.0, %v2955_v25  ;;  %v2957_v36 = vpop.eup %2956 }
 0x214   :  { %v2466_v14 = vpack.c.bf16 %v1944_v42, %v1944_v42  ;;  %v2350_v2 = vadd.f32 -1.0, %v2957_v36 }
 0x215   :  { %2129 = vst.msk [vmem:[%s4287_s3 + $0x24] sm:$0xf] %vm2119_vm3, %v2434_v1  ;;  %v1913_v4 = vsel %vm1698_vm15, %v4211_v49, %v2349_v16 }
 0x216   :  { %2161 = vst.msk [vmem:[%s4287_s3 + $0xa4] sm:$0xf] %vm2119_vm3, %v2466_v14  ;;  %v2435_v46 = vpack.c.bf16 %v1913_v4, %v1913_v4  ;;  %v1914_v29 = vsel %vm1699_vm0, %v4218_v30, %v2350_v2 }
 0x217   :  { %v2436_v22 = vpack.c.bf16 %v1914_v29, %v1914_v29 }
 0x218   :  { %2130 = vst.msk [vmem:[%s4287_s3 + $0x28] sm:$0xf] %vm2119_vm3, %v2435_v46 }
 0x219   :  { %2131 = vst.msk [vmem:[%s4287_s3 + $0x2c] sm:$0xf] %vm2119_vm3, %v2436_v22 }

// kernel: discrete_policy_cnn_forward.8
= control target key start
LH: loop header
LB: loop body
LE: loop exit
PB: predicated region body
PF: predicated region fallthrough
CT: control target
= control target key end

     0   :  { %v1318_v41 = vmov 0   ;;  %vm646_vm0 = vcmask 31744   ;;  %vm659_vm1 = vcmask 1041408   ;;  %vm990_vm3 = vcmask 388096   ;;  %s1643_s1 = inlined_call_operand.vmem [shape: bf16[900,48], index: 1, kind: input, shape index: {}]   ;;  %s1644_s0 = inlined_call_operand.vmem [shape: bf16[50,900], index: 0, kind: input, shape index: {}]   ;;  %s1645_s2 = inlined_call_operand.vmem [shape: f32[1,48], index: 2, kind: input, shape index: {}]   ;;  %s1646_s3 = inlined_call_operand.vmem [shape: bf16[50,48], index: 3, kind: output, shape index: {}]  }
   0x1   :  { %v1239_v0 = vld [vmem:[%s1643_s1 + $0x40] sm:$0xff]   ;;  %v1243_v4 = vld [vmem:[%s1643_s1 + $0x48] sm:$0xff]   ;;  %v1247_v8 = vld [vmem:[%s1643_s1 + $0x50] sm:$0xff]   ;;  %vm997_vm10 = vcmask 385024  }
   0x2   :  { %v1240_v1 = vld [vmem:[%s1643_s1 + $0xc0] sm:$0xff]   ;;  %1118 = vmatprep.subr.bf16.mxu0 %v1239_v0  ;;  %v1244_v5 = vld [vmem:[%s1643_s1 + $0xc8] sm:$0xff]   ;;  %v1248_v9 = vld [vmem:[%s1643_s1 + $0xd0] sm:$0xff]  }
   0x3   :  { %v1241_v2 = vld [vmem:[%s1643_s1] sm:$0xff]   ;;  %1158 = vmatprep.subr.bf16.mxu1 %v1240_v1  ;;  %v1245_v6 = vld [vmem:[%s1643_s1 + $0x8] sm:$0xff]   ;;  %v1249_v10 = vld [vmem:[%s1643_s1 + $0x10] sm:$0xff]  }
   0x4   :  { %v1242_v3 = vld [vmem:[%s1643_s1 + $0x80] sm:$0xff]   ;;  %1119 = vmatpush3.bf16.msra.mxu0 %v1241_v2  ;;  %v1246_v7 = vld [vmem:[%s1643_s1 + $0x88] sm:$0xff]   ;;  %v1250_v11 = vld [vmem:[%s1643_s1 + $0x90] sm:$0xff]  }
   0x5   :  { %1159 = vmatpush3.bf16.msra.mxu1 %v1242_v3  ;;  %1120 = vmatprep.subr.bf16.mxu0 %v1243_v4  ;;  %v1251_v12 = vld [vmem:[%s1643_s1 + $0x58] sm:$0xff]   ;;  %v1255_v16 = vld [vmem:[%s1643_s1 + $0x60] sm:$0xff]   ;;  %v1259_v20 = vld [vmem:[%s1643_s1 + $0x68] sm:$0xff]  }
   0x6   :  { %1160 = vmatprep.subr.bf16.mxu1 %v1244_v5  ;;  %v1252_v13 = vld [vmem:[%s1643_s1 + $0xd8] sm:$0xff]   ;;  %v1256_v17 = vld [vmem:[%s1643_s1 + $0xe0] sm:$0xff]   ;;  %v1260_v21 = vld [vmem:[%s1643_s1 + $0xe8] sm:$0xff]  }
   0x7   :  { %v1253_v14 = vld [vmem:[%s1643_s1 + $0x18] sm:$0xff]   ;;  %v1257_v18 = vld [vmem:[%s1643_s1 + $0x20] sm:$0xff]   ;;  %v1261_v22 = vld [vmem:[%s1643_s1 + $0x28] sm:$0xff]  }
   0x8   :  { %1121 = vmatpush3.bf16.msra.mxu0 %v1245_v6  ;;  %v1254_v15 = vld [vmem:[%s1643_s1 + $0x98] sm:$0xff]   ;;  %v1258_v19 = vld [vmem:[%s1643_s1 + $0xa0] sm:$0xff]   ;;  %v1262_v23 = vld [vmem:[%s1643_s1 + $0xa8] sm:$0xff]  }
   0x9   :  { %1161 = vmatpush3.bf16.msra.mxu1 %v1246_v7  ;;  %1122 = vmatprep.subr.bf16.mxu0 %v1247_v8  ;;  %v1263_v24 = vld [vmem:[%s1643_s1 + $0x70] sm:$0xff]   ;;  %v1267_v28 = vld [vmem:[%s1643_s1 + $0x78] sm:$0xff]   ;;  %v15_v32 = vld [vmem:[%s1644_s0] sm:$0xff] }
   0xa   :  { %1162 = vmatprep.subr.bf16.mxu1 %v1248_v9  ;;  %v1264_v25 = vld [vmem:[%s1643_s1 + $0xf0] sm:$0xff]   ;;  %v1268_v29 = vld [vmem:[%s1643_s1 + $0xf8] sm:$0xff]   ;;  %v19_v33 = vld [vmem:[%s1644_s0 + $0x20] sm:$0xff] }
   0xb   :  { %v1265_v26 = vld [vmem:[%s1643_s1 + $0x30] sm:$0xff]   ;;  %v1269_v30 = vld [vmem:[%s1643_s1 + $0x38] sm:$0xff]   ;;  %v16_v34 = vld [vmem:[%s1644_s0 + $0x8] sm:$0xff]  ;;  %v1004_v35 = vcombine.low %v15_v32, %v19_v33  ;;  %v1005_v36 = vcombine.high %v15_v32, %v19_v33 }
   0xc   :  { %1123 = vmatpush3.bf16.msra.mxu0 %v1249_v10  ;;  %v1266_v27 = vld [vmem:[%s1643_s1 + $0xb0] sm:$0xff]   ;;  %v1270_v31 = vld [vmem:[%s1643_s1 + $0xb8] sm:$0xff]   ;;  %v20_v37 = vld [vmem:[%s1644_s0 + $0x28] sm:$0xff] }
   0xd   :  { %1163 = vmatpush3.bf16.msra.mxu1 %v1250_v11  ;;  %1124 = vmatprep.subr.bf16.mxu0 %v1251_v12  ;;  %v1006_v38 = vcombine.low %v16_v34, %v20_v37  ;;  %v1007_v39 = vcombine.high %v16_v34, %v20_v37  ;;  %v1271_v40 = vld [vmem:[%s1643_s1 + $0x140] sm:$0xff]   ;;  %v1274_v44 = vld [vmem:[%s1643_s1 + $0x148] sm:$0xff]   ;;  %v1277_v51 = vld [vmem:[%s1643_s1 + $0x150] sm:$0xff]  }
   0xe   :  { %1164 = vmatprep.subr.bf16.mxu1 %v1252_v13  ;;  %695 = vmatprep.mubr.bf16.mxu0 %v1005_v36  ;;  %v1272_v42 = vld [vmem:[%s1643_s1 + $0x100] sm:$0xff]   ;;  %v1275_v45 = vld [vmem:[%s1643_s1 + $0x108] sm:$0xff]   ;;  %v1278_v55 = vld [vmem:[%s1643_s1 + $0x110] sm:$0xff]  }
   0xf   :  { %759 = vmatprep.mubr.bf16.mxu1 %v1007_v39  ;;  %v1273_v43 = vld [vmem:[%s1643_s1 + $0x180] sm:$0xff]   ;;  %v1276_v46 = vld [vmem:[%s1643_s1 + $0x188] sm:$0xff]   ;;  %v1279_v56 = vld [vmem:[%s1643_s1 + $0x190] sm:$0xff]  }
  0x10   :  { %1125 = vmatpush3.bf16.msra.mxu0 %v1253_v14  ;;  %v23_v47 = vld [vmem:[%s1644_s0 + $0x40] sm:$0xff]  ;;  %v24_v52 = vld [vmem:[%s1644_s0 + $0x48] sm:$0xff]  ;;  %v1280_v58 = vld [vmem:[%s1643_s1 + $0x158] sm:$0xff]  }
  0x11   :  { %1165 = vmatpush3.bf16.msra.mxu1 %v1254_v15  ;;  %1126 = vmatprep.subr.bf16.mxu0 %v1255_v16  ;;  %v27_v48 = vld [vmem:[%s1644_s0 + $0x60] sm:$0xff]  ;;  %v28_v53 = vld [vmem:[%s1644_s0 + $0x68] sm:$0xff]  ;;  %v1281_v59 = vld [vmem:[%s1643_s1 + $0x118] sm:$0xff]  }
  0x12   :  { %1166 = vmatprep.subr.bf16.mxu1 %v1256_v17  ;;  %v1013_v49 = vcombine.high %v23_v47, %v27_v48  ;;  %v1012_v50 = vcombine.low %v23_v47, %v27_v48  ;;  %v1015_v54 = vcombine.high %v24_v52, %v28_v53  ;;  %v1014_v57 = vcombine.low %v24_v52, %v28_v53  ;;  %v1282_v60 = vld [vmem:[%s1643_s1 + $0x198] sm:$0xff]   ;;  %v31_v61 = vld [vmem:[%s1644_s0 + $0x80] sm:$0xff]  ;;  %v32_v2 = vld [vmem:[%s1644_s0 + $0x88] sm:$0xff] }
  0x13   :  { %v35_v62 = vld [vmem:[%s1644_s0 + $0xa0] sm:$0xff]  ;;  %v36_v3 = vld [vmem:[%s1644_s0 + $0xa8] sm:$0xff]  ;;  %v1291_v13 = vld [vmem:[%s1643_s1 + $0x170] sm:$0xff]  }
  0x14   :  { %1127 = vmatpush3.bf16.msra.mxu0 %v1257_v18  ;;  %v1021_v63 = vcombine.high %v31_v61, %v35_v62  ;;  %v1020_v0 = vcombine.low %v31_v61, %v35_v62  ;;  %v1283_v1 = vld [vmem:[%s1643_s1 + $0x160] sm:$0xff]   ;;  %v1023_v4 = vcombine.high %v32_v2, %v36_v3  ;;  %v1022_v7 = vcombine.low %v32_v2, %v36_v3  ;;  %v1286_v8 = vld [vmem:[%s1643_s1 + $0x168] sm:$0xff]   ;;  %v1293_v17 = vld [vmem:[%s1643_s1 + $0x130] sm:$0xff]  }
  0x15   :  { %1167 = vmatpush3.bf16.msra.mxu1 %v1258_v19  ;;  %1128 = vmatprep.subr.bf16.mxu0 %v1259_v20  ;;  %v1284_v5 = vld [vmem:[%s1643_s1 + $0x120] sm:$0xff]   ;;  %v1287_v9 = vld [vmem:[%s1643_s1 + $0x128] sm:$0xff]   ;;  %v1294_v18 = vld [vmem:[%s1643_s1 + $0x1b0] sm:$0xff]  }
  0x16   :  { %1168 = vmatprep.subr.bf16.mxu1 %v1260_v21  ;;  %v1285_v6 = vld [vmem:[%s1643_s1 + $0x1a0] sm:$0xff]   ;;  %v1288_v10 = vld [vmem:[%s1643_s1 + $0x1a8] sm:$0xff]   ;;  %v1296_v20 = vld [vmem:[%s1643_s1 + $0x178] sm:$0xff]  }
  0x17   :  { %v39_v11 = vld [vmem:[%s1644_s0 + $0xc0] sm:$0x11]  ;;  %v40_v14 = vld [vmem:[%s1644_s0 + $0xc8] sm:$0x11]  ;;  %v17_v21 = vld [vmem:[%s1644_s0 + $0x10] sm:$0xff] }
  0x18   :  { %1129 = vmatpush3.bf16.msra.mxu0 %v1261_v22  ;;  %v1029_v12 = vcombine.high %v39_v11, %v39_v11  ;;  %v1028_v15 = vcombine.low %v39_v11, %v39_v11  ;;  %v1031_v16 = vcombine.high %v40_v14, %v40_v14  ;;  %v1030_v19 = vcombine.low %v40_v14, %v40_v14  ;;  %v1297_v22 = vld [vmem:[%s1643_s1 + $0x138] sm:$0xff]   ;;  %v33_v39 = vld [vmem:[%s1644_s0 + $0x90] sm:$0xff] }
  0x19   :  { %1169 = vmatpush3.bf16.msra.mxu1 %v1262_v23  ;;  %1130 = vmatprep.subr.bf16.mxu0 %v1263_v24  ;;  %v21_v23 = vld [vmem:[%s1644_s0 + $0x30] sm:$0xff]  ;;  %v1298_v24 = vld [vmem:[%s1643_s1 + $0x1b8] sm:$0xff]  }
  0x1a   :  { %1170 = vmatprep.subr.bf16.mxu1 %v1264_v25  ;;  %v1009_v25 = vcombine.high %v17_v21, %v21_v23  ;;  %v1008_v32 = vcombine.low %v17_v21, %v21_v23  ;;  %v30_v36 = vld [vmem:[%s1644_s0 + $0x78] sm:$0xff]  ;;  %v41_v47 = vld [vmem:[%s1644_s0 + $0xd0] sm:$0x11] }
  0x1b   :  { %v1032_v53 = vcombine.low %v41_v47, %v41_v47 }
  0x1c   :  { %1131 = vmatpush3.bf16.msra.mxu0 %v1265_v26  ;;  %v18_v26 = vld [vmem:[%s1644_s0 + $0x18] sm:$0xff] }
  0x1d   :  { %1171 = vmatpush3.bf16.msra.mxu1 %v1266_v27  ;;  %1132 = vmatprep.subr.bf16.mxu0 %v1267_v28  ;;  %v22_v27 = vld [vmem:[%s1644_s0 + $0x38] sm:$0xff]  ;;  %v1299_v28 = vld [vmem:[%s1643_s1 + $0x1c0] ss:$0 sps:$4 sm:$0x33]  }
  0x1e   :  { %1172 = vmatprep.subr.bf16.mxu1 %v1268_v29  ;;  %v1011_v29 = vcombine.high %v18_v26, %v22_v27  ;;  %v661_v34 = vsel %vm659_vm1, %v1299_v28, 0  ;;  %v1010_v37 = vcombine.low %v18_v26, %v22_v27 }
  0x20   :  { %1133 = vmatpush3.bf16.msra.mxu0 %v1269_v30  ;;  %v25_v30 = vld [vmem:[%s1644_s0 + $0x50] sm:$0xff] }
  0x21   :  { %1173 = vmatpush3.bf16.msra.mxu1 %v1270_v31  ;;  %1198 = vmatprep.subr.bf16.mxu0 %v1271_v40  ;;  %v29_v31 = vld [vmem:[%s1644_s0 + $0x70] sm:$0xff] }
  0x22   :  { %855 = vmatprep.subr.bf16.mxu1 %v1318_v41  ;;  %v1017_v33 = vcombine.high %v25_v30, %v29_v31  ;;  %v37_v40 = vld [vmem:[%s1644_s0 + $0xb0] sm:$0xff] }
  0x23   :  { %696 = vmatmul.mubr.bf16.vlgmr.msra.gmra.mrb[0].mxu0 %v1004_v35  ;;  %v26_v35 = vld [vmem:[%s1644_s0 + $0x58] sm:$0xff]  ;;  %v1024_v48 = vcombine.low %v33_v39, %v37_v40 }
  0x24   :  { %760 = vmatmul.mubr.bf16.vlgmr.msra.gmra.mrb[0].mxu1 %v1006_v38  ;;  %1199 = vmatpush3.bf16.msra.mxu0 %v1272_v42  ;;  %v1019_v38 = vcombine.high %v26_v35, %v30_v36  ;;  %v1025_v42 = vcombine.high %v33_v39, %v37_v40 }
  0x25   :  { %856 = vmatpush1.bf16.msra.mxu1 %v1273_v43  ;;  %1200 = vmatprep.subr.bf16.mxu0 %v1274_v44  ;;  %v34_v43 = vld [vmem:[%s1644_s0 + $0x98] sm:$0xff] }
  0x26   :  { %857 = vmatprep.subr.bf16.mxu1 %v1318_v41  ;;  %703 = vmatprep.mubr.bf16.mxu0 %v1013_v49  ;;  %v38_v44 = vld [vmem:[%s1644_s0 + $0xb8] sm:$0xff]  ;;  %v1033_v49 = vcombine.high %v41_v47, %v41_v47 }
  0x27   :  { %767 = vmatprep.mubr.bf16.mxu1 %v1015_v54 }
  0x28   :  { %1201 = vmatpush3.bf16.msra.mxu0 %v1275_v45  ;;  %v1018_v45 = vcombine.low %v26_v35, %v30_v36 }
  0x29   :  { %858 = vmatpush1.bf16.msra.mxu1 %v1276_v46  ;;  %1202 = vmatprep.subr.bf16.mxu0 %v1277_v51  ;;  %v1027_v46 = vcombine.high %v34_v43, %v38_v44  ;;  %v1026_v51 = vcombine.low %v34_v43, %v38_v44 }
  0x2a   :  { %859 = vmatprep.subr.bf16.mxu1 %v1318_v41 }
  0x2b   :  { %704 = vmatmul.mubr.bf16.gmra.mrb[4].mxu0 %v1012_v50  ;;  %v42_v50 = vld [vmem:[%s1644_s0 + $0xd8] sm:$0x11] }
  0x2c   :  { %1203 = vmatpush3.bf16.msra.mxu0 %v1278_v55  ;;  %768 = vmatmul.mubr.bf16.gmra.mrb[4].mxu1 %v1014_v57  ;;  %v1035_v52 = vcombine.high %v42_v50, %v42_v50  ;;  %v1034_v54 = vcombine.low %v42_v50, %v42_v50  ;;  %v1003_v57 = vld [vmem:[%s1645_s2] ss:$0 sm:$0xff] }
  0x2d   :  { %860 = vmatpush1.bf16.msra.mxu1 %v1279_v56  ;;  %1204 = vmatprep.subr.bf16.mxu0 %v1280_v58 }
  0x2e   :  { %861 = vmatprep.subr.bf16.mxu1 %v1318_v41  ;;  %711 = vmatprep.mubr.bf16.mxu0 %v1021_v63 }
  0x2f   :  { %775 = vmatprep.mubr.bf16.mxu1 %v1023_v4 }
  0x30   :  { %1205 = vmatpush3.bf16.msra.mxu0 %v1281_v59 }
  0x31   :  { %862 = vmatpush1.bf16.msra.mxu1 %v1282_v60  ;;  %1206 = vmatprep.subr.bf16.mxu0 %v1283_v1 }
  0x32   :  { %863 = vmatprep.subr.bf16.mxu1 %v1318_v41 }
  0x33   :  { %712 = vmatmul.mubr.bf16.gmra.mrb[8].mxu0 %v1020_v0 }
  0x34   :  { %1207 = vmatpush3.bf16.msra.mxu0 %v1284_v5  ;;  %776 = vmatmul.mubr.bf16.gmra.mrb[8].mxu1 %v1022_v7 }
  0x35   :  { %864 = vmatpush1.bf16.msra.mxu1 %v1285_v6  ;;  %1208 = vmatprep.subr.bf16.mxu0 %v1286_v8 }
  0x36   :  { %865 = vmatprep.subr.bf16.mxu1 %v1318_v41  ;;  %719 = vmatprep.mubr.bf16.mxu0 %v1029_v12 }
  0x37   :  { %783 = vmatprep.mubr.bf16.mxu1 %v1031_v16 }
  0x38   :  { %1209 = vmatpush3.bf16.msra.mxu0 %v1287_v9 }
  0x39   :  { %866 = vmatpush1.bf16.msra.mxu1 %v1288_v10  ;;  %1210 = vmatprep.subr.bf16.mxu0 %v1291_v13 }
  0x3a   :  { %867 = vmatprep.subr.bf16.mxu1 %v1318_v41 }
  0x3b   :  { %720 = vmatmul.mubr.bf16.gmra.mrb[12].mxu0 %v1028_v15 }
  0x3c   :  { %1211 = vmatpush3.bf16.msra.mxu0 %v1293_v17  ;;  %784 = vmatmul.mubr.bf16.gmra.mrb[12].mxu1 %v1030_v19 }
  0x3d   :  { %868 = vmatpush1.bf16.msra.mxu1 %v1294_v18  ;;  %1212 = vmatprep.subr.bf16.mxu0 %v1296_v20 }
  0x3e   :  { %869 = vmatprep.subr.bf16.mxu1 %v1318_v41  ;;  %823 = vmatprep.mubr.bf16.mxu0 %v1009_v25 }
  0x3f   :  { %1093 = vmatprep.mubr.msk.bf16.mxu1 %vm646_vm0, %v1011_v29 }
  0x40   :  { %1213 = vmatpush3.bf16.msra.mxu0 %v1297_v22 }
  0x41   :  { %870 = vmatpush1.bf16.msra.mxu1 %v1298_v24 }
  0x42   :  { %871 = vmatprep.subr.bf16.mxu1 %v1318_v41  ;;  %v1016_v41 = vcombine.low %v25_v30, %v29_v31 }
  0x43   :  { %824 = vmatmul.mubr.bf16.vlgmr.msra.gmra.mrb[16].mxu0 %v1008_v32 }
  0x44   :  { %831 = vmatprep.mubr.bf16.mxu0 %v1017_v33 }
  0x45   :  { %872 = vmatpush1.bf16.msra.mxu1 %v661_v34 }
  0x48   :  { %888 = vmatmul.mubr.bf16.vlgmr.msra.gmra.mrb[16].mxu1 %v1010_v37 }
  0x49   :  { %1094 = vmatprep.mubr.msk.bf16.mxu1 %vm646_vm0, %v1019_v38 }
  0x4b   :  { %832 = vmatmul.mubr.bf16.gmra.mrb[20].mxu0 %v1016_v41 }
  0x4c   :  { %839 = vmatprep.mubr.bf16.mxu0 %v1025_v42 }
  0x50   :  { %896 = vmatmul.mubr.bf16.gmra.mrb[20].mxu1 %v1018_v45 }
  0x51   :  { %1095 = vmatprep.mubr.msk.bf16.mxu1 %vm646_vm0, %v1027_v46 }
  0x53   :  { %840 = vmatmul.mubr.bf16.gmra.mrb[24].mxu0 %v1024_v48 }
  0x54   :  { %847 = vmatprep.mubr.bf16.mxu0 %v1033_v49 }
  0x58   :  { %904 = vmatmul.mubr.bf16.gmra.mrb[24].mxu1 %v1026_v51 }
  0x59   :  { %1096 = vmatprep.mubr.msk.bf16.mxu1 %vm646_vm0, %v1035_v52 }
  0x5b   :  { %848 = vmatmul.mubr.bf16.gmra.mrb[28].mxu0 %v1032_v53 }
  0x60   :  { %912 = vmatmul.mubr.bf16.gmra.mrb[28].mxu1 %v1034_v54 }
  0xf6   :  { %v1134_v55 = vpop.f32.mrb[0].mxu0 }
  0xf7   :  { %v1174_v56 = vpop.f32.mrb[0].mxu1  ;;  %v1135_v58 = vpop.f32.mrb[1].mxu0 }
  0xf8   :  { %v1136_v59 = vadd.f32 %v1135_v58, %v1134_v55  ;;  %v1175_v60 = vpop.f32.mrb[1].mxu1  ;;  %v1137_v61 = vpop.f32.mrb[2].mxu0 }
  0xf9   :  { %v1176_v62 = vadd.f32 %v1175_v60, %v1174_v56  ;;  %v1177_v63 = vpop.f32.mrb[2].mxu1  ;;  %v1138_v0 = vpop.f32.mrb[3].mxu0 }
  0xfa   :  { %v698_v1 = vadd.f32 %v1136_v59, %v1003_v57  ;;  %v1139_v2 = vadd.f32 %v1138_v0, %v1137_v61  ;;  %v1178_v3 = vpop.f32.mrb[3].mxu1 }
  0xfb   :  { %v1179_v4 = vadd.f32 %v1178_v3, %v1177_v63 }
  0xfc   :  { %v762_v5 = vadd.f32 %v1176_v62, %v698_v1  ;;  %v701_v6 = vadd.f32 %v1139_v2, %v1003_v57 }
  0xfe   :  { %v765_v7 = vadd.f32 %v1179_v4, %v701_v6  ;;  %v1140_v8 = vpop.f32.mrb[4].mxu0 }
  0xff   :  { %v1141_v9 = vpop.f32.mrb[5].mxu0  ;;  %v1180_v12 = vpop.f32.mrb[4].mxu1 }
 0x100   :  { %v1142_v10 = vadd.f32 %v1141_v9, %v1140_v8  ;;  %v1143_v11 = vpop.f32.mrb[6].mxu0  ;;  %v1181_v16 = vpop.f32.mrb[5].mxu1 }
 0x101   :  { %v1144_v13 = vpop.f32.mrb[7].mxu0  ;;  %v1182_v17 = vadd.f32 %v1181_v16, %v1180_v12  ;;  %v1183_v18 = vpop.f32.mrb[6].mxu1 }
 0x102   :  { %v706_v14 = vadd.f32 %v1142_v10, %v1003_v57  ;;  %v1145_v15 = vadd.f32 %v1144_v13, %v1143_v11  ;;  %v1184_v20 = vpop.f32.mrb[7].mxu1 }
 0x103   :  { %v1185_v22 = vadd.f32 %v1184_v20, %v1183_v18 }
 0x104   :  { %v709_v19 = vadd.f32 %v1145_v15, %v1003_v57  ;;  %v770_v21 = vadd.f32 %v1182_v17, %v706_v14 }
 0x106   :  { %v1146_v23 = vpop.f32.mrb[8].mxu0  ;;  %v773_v24 = vadd.f32 %v1185_v22, %v709_v19 }
 0x107   :  { %v1147_v25 = vpop.f32.mrb[9].mxu0  ;;  %v1186_v28 = vpop.f32.mrb[8].mxu1 }
 0x108   :  { %v1148_v26 = vadd.f32 %v1147_v25, %v1146_v23  ;;  %v1149_v27 = vpop.f32.mrb[10].mxu0  ;;  %v1187_v32 = vpop.f32.mrb[9].mxu1 }
 0x109   :  { %v1150_v29 = vpop.f32.mrb[11].mxu0  ;;  %v1188_v33 = vadd.f32 %v1187_v32, %v1186_v28  ;;  %v1189_v34 = vpop.f32.mrb[10].mxu1 }
 0x10a   :  { %v714_v30 = vadd.f32 %v1148_v26, %v1003_v57  ;;  %v1151_v31 = vadd.f32 %v1150_v29, %v1149_v27  ;;  %v1190_v36 = vpop.f32.mrb[11].mxu1 }
 0x10b   :  { %v1191_v38 = vadd.f32 %v1190_v36, %v1189_v34 }
 0x10c   :  { %v717_v35 = vadd.f32 %v1151_v31, %v1003_v57  ;;  %v778_v37 = vadd.f32 %v1188_v33, %v714_v30 }
 0x10e   :  { %v1152_v39 = vpop.f32.mrb[12].mxu0  ;;  %v1610_v40 = vadd.f32 %v1191_v38, %v717_v35 }
 0x10f   :  { %v1153_v41 = vpop.f32.mrb[13].mxu0  ;;  %v1192_v44 = vpop.f32.mrb[12].mxu1 }
 0x110   :  { %v1154_v42 = vadd.f32 %v1153_v41, %v1152_v39  ;;  %v1155_v43 = vpop.f32.mrb[14].mxu0  ;;  %v1193_v47 = vpop.f32.mrb[13].mxu1 }
 0x111   :  { %v1156_v45 = vpop.f32.mrb[15].mxu0  ;;  %v1194_v48 = vadd.f32 %v1193_v47, %v1192_v44  ;;  %v1195_v49 = vpop.f32.mrb[14].mxu1 }
 0x112   :  { %v722_v46 = vadd.f32 %v1154_v42, %v1003_v57  ;;  %v1196_v50 = vpop.f32.mrb[15].mxu1 }
 0x114   :  { %v1612_v51 = vadd.f32 %v1194_v48, %v722_v46 }
 0x116   :  { %v1214_v52 = vpop.f32.mrb[16].mxu0 }
 0x117   :  { %v1215_v53 = vpop.f32.mrb[17].mxu0 }
 0x118   :  { %v1216_v54 = vadd.f32 %v1215_v53, %v1214_v52  ;;  %v1217_v55 = vpop.f32.mrb[18].mxu0 }
 0x119   :  { %v1218_v56 = vpop.f32.mrb[19].mxu0 }
 0x11a   :  { %v1219_v58 = vadd.f32 %v1218_v56, %v1217_v55  ;;  %v826_v59 = vadd.f32 %v1216_v54, %v762_v5 }
 0x11b   :  { %v889_v60 = vpop.f32.mrb[16].mxu1 }
 0x11c   :  { %v891_v61 = vpop.f32.mrb[17].mxu1  ;;  %v890_v62 = vadd.f32 %v889_v60, %v826_v59  ;;  %v829_v63 = vadd.f32 %v1219_v58, %v765_v7 }
 0x11d   :  { %v892_v0 = vpop.f32.mrb[18].mxu1 }
 0x11e   :  { %v894_v1 = vpop.f32.mrb[19].mxu1  ;;  %v926_v57 = vmin.f32 %v890_v62, 0.0  ;;  %v893_v2 = vadd.f32 %v892_v0, %v829_v63  ;;  %v1220_v3 = vpop.f32.mrb[20].mxu0  ;;  %vm919_vm2 = vcmp.gt.f32.partialorder %v890_v62, 0.0 }
 0x11f   :  { %v1221_v4 = vpop.f32.mrb[21].mxu0 }
 0x120   :  { %v933_v6 = vmul.f32 1.442695, %v926_v57  ;;  %v927_v8 = vmin.f32 %v893_v2, 0.0  ;;  %v1222_v9 = vadd.f32 %v1221_v4, %v1220_v3  ;;  %v1223_v10 = vpop.f32.mrb[22].mxu0  ;;  %vm920_vm4 = vcmp.gt.f32.partialorder %v893_v2, 0.0 }
 0x121   :  { %v1224_v11 = vpop.f32.mrb[23].mxu0 }
 0x122   :  { %1304 = vpow2.f32 %v933_v6  ;;  %v935_v12 = vmul.f32 1.442695, %v927_v8  ;;  %v1225_v13 = vadd.f32 %v1224_v11, %v1223_v10  ;;  %v834_v14 = vadd.f32 %v1222_v9, %v770_v21 }
 0x123   :  { %v897_v5 = vpop.f32.mrb[20].mxu1 }
 0x124   :  { %v899_v15 = vpop.f32.mrb[21].mxu1  ;;  %1306 = vpow2.f32 %v935_v12  ;;  %v898_v16 = vadd.f32 %v897_v5, %v834_v14  ;;  %v837_v7 = vadd.f32 %v1225_v13, %v773_v24 }
 0x125   :  { %v900_v17 = vpop.f32.mrb[22].mxu1 }
 0x126   :  { %v902_v18 = vpop.f32.mrb[23].mxu1  ;;  %v928_v19 = vmin.f32 %v898_v16, 0.0  ;;  %v901_v20 = vadd.f32 %v900_v17, %v837_v7  ;;  %v1226_v22 = vpop.f32.mrb[24].mxu0  ;;  %vm921_vm5 = vcmp.gt.f32.partialorder %v898_v16, 0.0 }
 0x127   :  { %v1227_v23 = vpop.f32.mrb[25].mxu0 }
 0x128   :  { %v937_v25 = vmul.f32 1.442695, %v928_v19  ;;  %v929_v26 = vmin.f32 %v901_v20, 0.0  ;;  %v1228_v27 = vadd.f32 %v1227_v23, %v1226_v22  ;;  %v1229_v28 = vpop.f32.mrb[26].mxu0  ;;  %vm922_vm6 = vcmp.gt.f32.partialorder %v901_v20, 0.0 }
 0x129   :  { %v1230_v29 = vpop.f32.mrb[27].mxu0 }
 0x12a   :  { %1308 = vpow2.f32 %v937_v25  ;;  %v939_v30 = vmul.f32 1.442695, %v929_v26  ;;  %v1231_v31 = vadd.f32 %v1230_v29, %v1229_v28  ;;  %v842_v21 = vadd.f32 %v1228_v27, %v778_v37 }
 0x12b   :  { %v905_v32 = vpop.f32.mrb[24].mxu1 }
 0x12c   :  { %v907_v33 = vpop.f32.mrb[25].mxu1  ;;  %v1305_v34 = vpop.eup %1304  ;;  %1310 = vpow2.f32 %v939_v30  ;;  %v906_v24 = vadd.f32 %v905_v32, %v842_v21  ;;  %v845_v35 = vadd.f32 %v1231_v31, %v1610_v40 }
 0x12d   :  { %v908_v36 = vpop.f32.mrb[26].mxu1  ;;  %v1097_v38 = vadd.f32 -1.0, %v1305_v34 }
 0x12e   :  { %v910_v39 = vpop.f32.mrb[27].mxu1  ;;  %v1307_v41 = vpop.eup %1306  ;;  %v930_v42 = vmin.f32 %v906_v24, 0.0  ;;  %v909_v43 = vadd.f32 %v908_v36, %v845_v35  ;;  %vm923_vm7 = vcmp.gt.f32.partialorder %v906_v24, 0.0 }
 0x12f   :  { %v1232_v44 = vpop.f32.mrb[28].mxu0  ;;  %v954_v45 = vsel %vm919_vm2, %v890_v62, %v1097_v38  ;;  %v1098_v46 = vadd.f32 -1.0, %v1307_v41 }
 0x130   :  { %v1233_v47 = vpop.f32.mrb[29].mxu0  ;;  %v1111_v37 = vpack.c.bf16 %v954_v45, %v954_v45  ;;  %v941_v48 = vmul.f32 1.442695, %v930_v42  ;;  %v931_v49 = vmin.f32 %v909_v43, 0.0  ;;  %vm924_vm8 = vcmp.gt.f32.partialorder %v909_v43, 0.0 }
 0x131   :  { %v1235_v50 = vpop.f32.mrb[30].mxu0  ;;  %v955_v52 = vsel %vm920_vm4, %v893_v2, %v1098_v46  ;;  %v1234_v53 = vadd.f32 %v1233_v47, %v1232_v44 }
 0x132   :  { %v1236_v40 = vpop.f32.mrb[31].mxu0  ;;  %991 = vst.msk [vmem:[%s1646_s3] sm:$0xf] %vm990_vm3, %v1111_v37  ;;  %v1112_v54 = vpack.c.bf16 %v955_v52, %v955_v52  ;;  %1312 = vpow2.f32 %v941_v48  ;;  %v943_v55 = vmul.f32 1.442695, %v931_v49 }
 0x133   :  { %v913_v56 = vpop.f32.mrb[28].mxu1  ;;  %v850_v58 = vadd.f32 %v1234_v53, %v1612_v51 }
 0x134   :  { %v915_v59 = vpop.f32.mrb[29].mxu1  ;;  %v1309_v60 = vpop.eup %1308  ;;  %992 = vst.msk [vmem:[%s1646_s3 + $0x4] sm:$0xf] %vm990_vm3, %v1112_v54  ;;  %1314 = vpow2.f32 %v943_v55 }
 0x135   :  { %v916_v61 = vpop.f32.mrb[30].mxu1  ;;  %v1099_v62 = vadd.f32 -1.0, %v1309_v60  ;;  %v914_v63 = vadd.f32 %v913_v56, %v850_v58 }
 0x136   :  { %v917_v0 = vpop.f32.mrb[31].mxu1  ;;  %v1311_v1 = vpop.eup %1310 }
 0x137   :  { %v956_v57 = vsel %vm921_vm5, %v898_v16, %v1099_v62  ;;  %v1100_v2 = vadd.f32 -1.0, %v1311_v1  ;;  %v932_v3 = vmin.f32 %v914_v63, 0.0  ;;  %vm925_vm9 = vcmp.gt.f32.partialorder %v914_v63, 0.0 }
 0x138   :  { %v1113_v4 = vpack.c.bf16 %v956_v57, %v956_v57 }
 0x139   :  { %v957_v51 = vsel %vm922_vm6, %v901_v20, %v1100_v2  ;;  %v945_v6 = vmul.f32 1.442695, %v932_v3 }
 0x13a   :  { %993 = vst.msk [vmem:[%s1646_s3 + $0x8] sm:$0xf] %vm990_vm3, %v1113_v4  ;;  %v1114_v8 = vpack.c.bf16 %v957_v51, %v957_v51 }
 0x13b   :  { %1316 = vpow2.f32 %v945_v6 }
 0x13c   :  { %v1313_v9 = vpop.eup %1312  ;;  %994 = vst.msk [vmem:[%s1646_s3 + $0xc] sm:$0xf] %vm990_vm3, %v1114_v8 }
 0x13d   :  { %v1101_v10 = vadd.f32 -1.0, %v1313_v9 }
 0x13e   :  { %v1315_v11 = vpop.eup %1314 }
 0x13f   :  { %v958_v12 = vsel %vm923_vm7, %v906_v24, %v1101_v10  ;;  %v1102_v13 = vadd.f32 -1.0, %v1315_v11 }
 0x140   :  { %v1115_v14 = vpack.c.bf16 %v958_v12, %v958_v12 }
 0x141   :  { %v959_v5 = vsel %vm924_vm8, %v909_v43, %v1102_v13 }
 0x142   :  { %995 = vst.msk [vmem:[%s1646_s3 + $0x10] sm:$0xf] %vm990_vm3, %v1115_v14  ;;  %v1116_v15 = vpack.c.bf16 %v959_v5, %v959_v5 }
 0x144   :  { %996 = vst.msk [vmem:[%s1646_s3 + $0x14] sm:$0xf] %vm990_vm3, %v1116_v15 }
 0x145   :  { %v1317_v16 = vpop.eup %1316 }
 0x146   :  { %v1103_v7 = vadd.f32 -1.0, %v1317_v16 }
 0x148   :  { %v960_v17 = vsel %vm925_vm9, %v914_v63, %v1103_v7 }
 0x149   :  { %v1117_v18 = vpack.c.bf16 %v960_v17, %v960_v17 }
 0x14b   :  { %998 = vst.msk [vmem:[%s1646_s3 + $0x18] sm:$0x1] %vm997_vm10, %v1117_v18 }

// kernel: discrete_policy_cnn_forward.9
= control target key start
LH: loop header
LB: loop body
LE: loop exit
PB: predicated region body
PF: predicated region fallthrough
CT: control target
= control target key end

     0   :  { %v538_v0 = vmov 0   ;;  %vm276_vm0 = vcmask 392192   ;;  %vm410_vm2 = vcmask 519168   ;;  %vm413_vm5 = vcmask 516096   ;;  %s683_s1 = inlined_call_operand.vmem [shape: bf16[432,64], index: 1, kind: input, shape index: {}]   ;;  %s684_s0 = inlined_call_operand.vmem [shape: bf16[18,432], index: 0, kind: input, shape index: {}]   ;;  %s685_s2 = inlined_call_operand.vmem [shape: f32[1,64], index: 2, kind: input, shape index: {}]   ;;  %s686_s3 = inlined_call_operand.vmem [shape: bf16[18,64], index: 3, kind: output, shape index: {}]  }
   0x1   :  { %331 = vmatprep.subr.bf16.mxu1 %v538_v0  ;;  %v495_v1 = vld [vmem:[%s683_s1 + $0x80] sm:$0xff]   ;;  %v498_v4 = vld [vmem:[%s683_s1 + $0x88] sm:$0xff]   ;;  %v501_v7 = vld [vmem:[%s683_s1 + $0x90] sm:$0xff]  }
   0x2   :  { %v496_v2 = vld [vmem:[%s683_s1 + $0x40] sm:$0xff]   ;;  %332 = vmatpush1.bf16.msra.mxu1 %v495_v1  ;;  %v499_v5 = vld [vmem:[%s683_s1 + $0x48] sm:$0xff]   ;;  %v502_v8 = vld [vmem:[%s683_s1 + $0x50] sm:$0xff]  }
   0x3   :  { %v497_v3 = vld [vmem:[%s683_s1] sm:$0xff]   ;;  %466 = vmatprep.subr.bf16.mxu0 %v496_v2  ;;  %333 = vmatprep.subr.bf16.mxu1 %v538_v0  ;;  %v500_v6 = vld [vmem:[%s683_s1 + $0x8] sm:$0xff]   ;;  %v503_v9 = vld [vmem:[%s683_s1 + $0x10] sm:$0xff]  }
   0x4   :  { %467 = vmatpush3.bf16.msra.mxu0 %v497_v3  ;;  %v504_v10 = vld [vmem:[%s683_s1 + $0x98] sm:$0xff]   ;;  %v508_v13 = vld [vmem:[%s683_s1 + $0x60] sm:$0xff]   ;;  %v511_v16 = vld [vmem:[%s683_s1 + $0x68] sm:$0xff]  }
   0x5   :  { %468 = vmatprep.subr.bf16.mxu0 %v499_v5  ;;  %v505_v11 = vld [vmem:[%s683_s1 + $0x58] sm:$0xff]   ;;  %v507_v14 = vld [vmem:[%s683_s1 + $0xa0] sm:$0xff]   ;;  %v510_v17 = vld [vmem:[%s683_s1 + $0xa8] sm:$0xff]  }
   0x6   :  { %334 = vmatpush1.bf16.msra.mxu1 %v498_v4  ;;  %v506_v12 = vld [vmem:[%s683_s1 + $0x18] sm:$0xff]   ;;  %v509_v15 = vld [vmem:[%s683_s1 + $0x20] sm:$0xff]   ;;  %v512_v18 = vld [vmem:[%s683_s1 + $0x28] sm:$0xff]  }
   0x7   :  { %335 = vmatprep.subr.bf16.mxu1 %v538_v0  ;;  %v514_v19 = vld [vmem:[%s683_s1 + $0x70] sm:$0xff]   ;;  %v516_v22 = vld [vmem:[%s683_s1 + $0xb8] sm:$0xff]   ;;  %v19_v26 = vld [vmem:[%s684_s0 + $0x20] sm:$0x11] }
   0x8   :  { %469 = vmatpush3.bf16.msra.mxu0 %v500_v6  ;;  %v513_v20 = vld [vmem:[%s683_s1 + $0xb0] sm:$0xff]   ;;  %v517_v23 = vld [vmem:[%s683_s1 + $0x78] sm:$0xff]   ;;  %v519_v28 = vld [vmem:[%s683_s1 + $0xc0] sm:$0xff]   ;;  %v425_v30 = vcombine.high %v19_v26, %v19_v26  ;;  %v424_v33 = vcombine.low %v19_v26, %v19_v26 }
   0x9   :  { %470 = vmatprep.subr.bf16.mxu0 %v502_v8  ;;  %v515_v21 = vld [vmem:[%s683_s1 + $0x30] sm:$0xff]   ;;  %v518_v25 = vld [vmem:[%s683_s1 + $0x38] sm:$0xff]   ;;  %v523_v31 = vld [vmem:[%s683_s1 + $0xc8] sm:$0xff]  }
   0xa   :  { %336 = vmatpush1.bf16.msra.mxu1 %v501_v7  ;;  %v522_v24 = vld [vmem:[%s684_s0 + $0x4] ss:$16 sps:$4 sm:$0xff]   ;;  %v528_v27 = vld [vmem:[%s684_s0 + $0xc] ss:$16 sps:$4 sm:$0xff]   ;;  %v520_v29 = vld [vmem:[%s684_s0] ss:$16 sps:$4 sm:$0xff]  }
   0xb   :  { %337 = vmatprep.subr.bf16.mxu1 %v538_v0  ;;  %315 = vmatprep.mubr.bf16.mxu0 %v522_v24  ;;  %v524_v32 = vld [vmem:[%s683_s1 + $0xd0] sm:$0xff]   ;;  %v20_v34 = vld [vmem:[%s684_s0 + $0x28] sm:$0x11]  ;;  %v419_v44 = vld [vmem:[%s685_s2] ss:$0 sm:$0xff] }
   0xc   :  { %471 = vmatpush3.bf16.msra.mxu0 %v503_v9  ;;  %455 = vmatprep.mubr.msk.bf16.mxu1 %vm276_vm0, %v528_v27  ;;  %v526_v35 = vld [vmem:[%s684_s0 + $0x8] ss:$16 sps:$4 sm:$0xff]   ;;  %v427_v36 = vcombine.high %v20_v34, %v20_v34  ;;  %v426_v37 = vcombine.low %v20_v34, %v20_v34 }
   0xd   :  { %472 = vmatprep.subr.bf16.mxu0 %v505_v11 }
   0xe   :  { %338 = vmatpush1.bf16.msra.mxu1 %v504_v10 }
   0xf   :  { %339 = vmatprep.subr.bf16.mxu1 %v538_v0 }
  0x10   :  { %473 = vmatpush3.bf16.msra.mxu0 %v506_v12 }
  0x11   :  { %474 = vmatprep.subr.bf16.mxu0 %v508_v13 }
  0x12   :  { %340 = vmatpush1.bf16.msra.mxu1 %v507_v14 }
  0x13   :  { %341 = vmatprep.subr.bf16.mxu1 %v538_v0 }
  0x14   :  { %475 = vmatpush3.bf16.msra.mxu0 %v509_v15 }
  0x15   :  { %476 = vmatprep.subr.bf16.mxu0 %v511_v16 }
  0x16   :  { %342 = vmatpush1.bf16.msra.mxu1 %v510_v17 }
  0x17   :  { %343 = vmatprep.subr.bf16.mxu1 %v538_v0 }
  0x18   :  { %477 = vmatpush3.bf16.msra.mxu0 %v512_v18 }
  0x19   :  { %478 = vmatprep.subr.bf16.mxu0 %v514_v19 }
  0x1a   :  { %344 = vmatpush1.bf16.msra.mxu1 %v513_v20 }
  0x1b   :  { %345 = vmatprep.subr.bf16.mxu1 %v538_v0 }
  0x1c   :  { %479 = vmatpush3.bf16.msra.mxu0 %v515_v21 }
  0x1d   :  { %480 = vmatprep.subr.bf16.mxu0 %v517_v23 }
  0x1e   :  { %346 = vmatpush1.bf16.msra.mxu1 %v516_v22 }
  0x1f   :  { %347 = vmatprep.subr.bf16.mxu1 %v538_v0 }
  0x20   :  { %481 = vmatpush3.bf16.msra.mxu0 %v518_v25 }
  0x22   :  { %348 = vmatpush1.bf16.msra.mxu1 %v519_v28 }
  0x23   :  { %316 = vmatmul.mubr.bf16.vlgmr.msra.gmra.mrb[0].mxu0 %v520_v29  ;;  %349 = vmatprep.subr.bf16.mxu1 %v538_v0 }
  0x24   :  { %323 = vmatprep.mubr.bf16.mxu0 %v425_v30 }
  0x26   :  { %350 = vmatpush1.bf16.msra.mxu1 %v523_v31 }
  0x27   :  { %351 = vmatprep.subr.bf16.mxu1 %v538_v0 }
  0x2a   :  { %352 = vmatpush1.bf16.msra.mxu1 %v524_v32 }
  0x2b   :  { %324 = vmatmul.mubr.bf16.gmra.mrb[4].mxu0 %v424_v33 }
  0x2d   :  { %364 = vmatmul.mubr.bf16.vlgmr.msra.gmra.mrb[0].mxu1 %v526_v35 }
  0x2e   :  { %456 = vmatprep.mubr.msk.bf16.mxu1 %vm276_vm0, %v427_v36 }
  0x35   :  { %372 = vmatmul.mubr.bf16.gmra.mrb[4].mxu1 %v426_v37 }
  0xf6   :  { %v482_v38 = vpop.f32.mrb[0].mxu0 }
  0xf7   :  { %v483_v39 = vpop.f32.mrb[1].mxu0 }
  0xf8   :  { %v484_v40 = vadd.f32 %v483_v39, %v482_v38  ;;  %v485_v41 = vpop.f32.mrb[2].mxu0 }
  0xf9   :  { %v486_v42 = vpop.f32.mrb[3].mxu0 }
  0xfa   :  { %v487_v43 = vadd.f32 %v486_v42, %v485_v41  ;;  %v318_v45 = vadd.f32 %v484_v40, %v419_v44 }
  0xfc   :  { %v321_v53 = vadd.f32 %v487_v43, %v419_v44 }
  0xfe   :  { %v488_v46 = vpop.f32.mrb[4].mxu0 }
  0xff   :  { %v489_v47 = vpop.f32.mrb[5].mxu0 }
 0x100   :  { %v365_v48 = vpop.f32.mrb[0].mxu1  ;;  %v490_v49 = vadd.f32 %v489_v47, %v488_v46  ;;  %v491_v50 = vpop.f32.mrb[6].mxu0 }
 0x101   :  { %v366_v51 = vadd.f32 %v365_v48, %v318_v45  ;;  %v367_v52 = vpop.f32.mrb[1].mxu1  ;;  %v492_v54 = vpop.f32.mrb[7].mxu0 }
 0x102   :  { %v368_v55 = vpop.f32.mrb[2].mxu1  ;;  %v326_v61 = vadd.f32 %v490_v49, %v419_v44 }
 0x103   :  { %v382_v56 = vmin.f32 %v366_v51, 0.0  ;;  %v369_v57 = vadd.f32 %v368_v55, %v321_v53  ;;  %v370_v58 = vpop.f32.mrb[3].mxu1  ;;  %vm379_vm1 = vcmp.gt.f32.partialorder %v366_v51, 0.0 }
 0x105   :  { %v385_v59 = vmul.f32 1.442695, %v382_v56  ;;  %v383_v60 = vmin.f32 %v369_v57, 0.0  ;;  %vm380_vm3 = vcmp.gt.f32.partialorder %v369_v57, 0.0 }
 0x107   :  { %532 = vpow2.f32 %v385_v59  ;;  %v387_v62 = vmul.f32 1.442695, %v383_v60 }
 0x108   :  { %v373_v63 = vpop.f32.mrb[4].mxu1 }
 0x109   :  { %534 = vpow2.f32 %v387_v62  ;;  %v374_v0 = vadd.f32 %v373_v63, %v326_v61  ;;  %v375_v1 = vpop.f32.mrb[5].mxu1 }
 0x10a   :  { %v376_v2 = vpop.f32.mrb[6].mxu1 }
 0x10b   :  { %v384_v3 = vmin.f32 %v374_v0, 0.0  ;;  %v377_v4 = vpop.f32.mrb[7].mxu1  ;;  %vm381_vm4 = vcmp.gt.f32.partialorder %v374_v0, 0.0 }
 0x10d   :  { %v389_v5 = vmul.f32 1.442695, %v384_v3 }
 0x10f   :  { %536 = vpow2.f32 %v389_v5 }
 0x111   :  { %v533_v6 = vpop.eup %532 }
 0x112   :  { %v457_v7 = vadd.f32 -1.0, %v533_v6 }
 0x113   :  { %v535_v8 = vpop.eup %534 }
 0x114   :  { %v394_v9 = vsel %vm379_vm1, %v366_v51, %v457_v7  ;;  %v458_v10 = vadd.f32 -1.0, %v535_v8 }
 0x115   :  { %v463_v11 = vpack.c.bf16 %v394_v9, %v394_v9 }
 0x116   :  { %v395_v12 = vsel %vm380_vm3, %v369_v57, %v458_v10 }
 0x117   :  { %411 = vst.msk [vmem:[%s686_s3] sm:$0xf] %vm410_vm2, %v463_v11  ;;  %v464_v13 = vpack.c.bf16 %v395_v12, %v395_v12 }
 0x119   :  { %v537_v14 = vpop.eup %536  ;;  %412 = vst.msk [vmem:[%s686_s3 + $0x4] sm:$0xf] %vm410_vm2, %v464_v13 }
 0x11a   :  { %v459_v15 = vadd.f32 -1.0, %v537_v14 }
 0x11c   :  { %v396_v16 = vsel %vm381_vm4, %v374_v0, %v459_v15 }
 0x11d   :  { %v465_v17 = vpack.c.bf16 %v396_v16, %v396_v16 }
 0x11f   :  { %414 = vst.msk [vmem:[%s686_s3 + $0x8] sm:$0x1] %vm413_vm5, %v465_v17 }

// kernel: discrete_policy_cnn_forward.10
= control target key start
LH: loop header
LB: loop body
LE: loop exit
PB: predicated region body
PF: predicated region fallthrough
CT: control target
= control target key end

     0   :  { %v634_v21 = vmov 1966171168   ;;  %v100_v23 = vlaneseq  ;;  %v635_v40 = vmov 0.0   ;;  %vm636_vm0 = vmmov 0   ;;  %s774_s1 = inlined_call_operand.vmem [shape: bf16[576,64], index: 1, kind: input, shape index: {}]   ;;  %s775_s0 = inlined_call_operand.vmem [shape: bf16[2,576], index: 0, kind: input, shape index: {}]   ;;  %s776_s2 = inlined_call_operand.vmem [shape: f32[1,64], index: 2, kind: input, shape index: {}]   ;;  %s777_s3 = inlined_call_operand.vmem [shape: bf16[2,64], index: 3, kind: output, shape index: {}]  }
   0x1   :  { %v595_v0 = vld [vmem:[%s774_s1 + $0x40] sm:$0xff]   ;;  %v599_v4 = vld [vmem:[%s774_s1 + $0x48] sm:$0xff]   ;;  %v603_v8 = vld [vmem:[%s774_s1 + $0x50] sm:$0xff]   ;;  %v98_v22 = vunpack.c.l.s4 %v634_v21  ;;  %vm355_vm1 = vcmask 523264   ;;  %vm486_vm3 = vcmask 516096  }
   0x2   :  { %v596_v1 = vld [vmem:[%s774_s1] sm:$0xff]   ;;  %531 = vmatprep.subr.bf16.mxu0 %v595_v0  ;;  %v600_v5 = vld [vmem:[%s774_s1 + $0x8] sm:$0xff]   ;;  %v604_v9 = vld [vmem:[%s774_s1 + $0x10] sm:$0xff]   ;;  %v101_v29 = vshrl.u32 %v100_v23, 7 }
   0x3   :  { %v597_v2 = vld [vmem:[%s774_s1 + $0xc0] sm:$0xff]   ;;  %532 = vmatpush3.bf16.msra.mxu0 %v596_v1  ;;  %v601_v6 = vld [vmem:[%s774_s1 + $0xc8] sm:$0xff]   ;;  %v605_v10 = vld [vmem:[%s774_s1 + $0xd0] sm:$0xff]   ;;  %v99_v28 = vunpack.c.0.s8 %v98_v22 }
   0x4   :  { %v598_v3 = vld [vmem:[%s774_s1 + $0x80] sm:$0xff]   ;;  %553 = vmatprep.subr.bf16.mxu1 %v597_v2  ;;  %533 = vmatprep.subr.bf16.mxu0 %v599_v4  ;;  %v602_v7 = vld [vmem:[%s774_s1 + $0x88] sm:$0xff]   ;;  %v606_v11 = vld [vmem:[%s774_s1 + $0x90] sm:$0xff]  }
   0x5   :  { %554 = vmatpush3.bf16.msra.mxu1 %v598_v3  ;;  %v607_v12 = vld [vmem:[%s774_s1 + $0x58] sm:$0xff]   ;;  %v611_v16 = vld [vmem:[%s774_s1 + $0x60] sm:$0xff]   ;;  %v615_v20 = vld [vmem:[%s774_s1 + $0x68] sm:$0xff]   ;;  %v102_v34 = vsub.s32 %v99_v28, %v101_v29 }
   0x6   :  { %555 = vmatprep.subr.bf16.mxu1 %v601_v6  ;;  %v608_v13 = vld [vmem:[%s774_s1 + $0x18] sm:$0xff]   ;;  %v612_v17 = vld [vmem:[%s774_s1 + $0x20] sm:$0xff]   ;;  %v616_v24 = vld [vmem:[%s774_s1 + $0x28] sm:$0xff]  }
   0x7   :  { %534 = vmatpush3.bf16.msra.mxu0 %v600_v5  ;;  %v609_v14 = vld [vmem:[%s774_s1 + $0xd8] sm:$0xff]   ;;  %v613_v18 = vld [vmem:[%s774_s1 + $0xe0] sm:$0xff]   ;;  %v617_v25 = vld [vmem:[%s774_s1 + $0xe8] sm:$0xff]  }
   0x8   :  { %535 = vmatprep.subr.bf16.mxu0 %v603_v8  ;;  %v610_v15 = vld [vmem:[%s774_s1 + $0x98] sm:$0xff]   ;;  %v614_v19 = vld [vmem:[%s774_s1 + $0xa0] sm:$0xff]   ;;  %v618_v26 = vld [vmem:[%s774_s1 + $0xa8] sm:$0xff]  }
   0x9   :  { %556 = vmatpush3.bf16.msra.mxu1 %v602_v7  ;;  %v619_v27 = vld [vmem:[%s774_s1 + $0x70] sm:$0xff]   ;;  %v623_v33 = vld [vmem:[%s774_s1 + $0x78] sm:$0xff]   ;;  %v15_v37 = vld [vmem:[%s775_s0] sm:$0x1f] }
   0xa   :  { %557 = vmatprep.subr.bf16.mxu1 %v605_v10  ;;  %v620_v30 = vld [vmem:[%s774_s1 + $0x30] sm:$0xff]   ;;  %v624_v35 = vld [vmem:[%s774_s1 + $0x38] sm:$0xff]   ;;  %v103_v38 = vrot.slane %v15_v37, %v102_v34  ;;  %v628_v44 = vld [vmem:[%s774_s1 + $0x100] sm:$0xff]   ;;  %v96_v48 = vcombine.high %v15_v37, %v15_v37 }
   0xb   :  { %536 = vmatpush3.bf16.msra.mxu0 %v604_v9  ;;  %v621_v31 = vld [vmem:[%s774_s1 + $0xf0] sm:$0xff]   ;;  %v625_v36 = vld [vmem:[%s774_s1 + $0xf8] sm:$0xff]   ;;  %v629_v47 = vld [vmem:[%s774_s1 + $0x108] sm:$0xff]  }
   0xc   :  { %537 = vmatprep.subr.bf16.mxu0 %v607_v12  ;;  %v622_v32 = vld [vmem:[%s774_s1 + $0xb0] sm:$0xff]   ;;  %v627_v39 = vld [vmem:[%s774_s1 + $0xb8] sm:$0xff]   ;;  %v111_v41 = vcombine.high %v103_v38, %v103_v38  ;;  %v118_v42 = vrot.slane %v103_v38, %v102_v34  ;;  %v110_v50 = vrot.slane %v96_v48, %v102_v34  ;;  %v492_v54 = vld [vmem:[%s776_s2] ss:$0 sm:$0xff] }
   0xd   :  { %558 = vmatpush3.bf16.msra.mxu1 %v606_v11  ;;  %v630_v49 = vld [vmem:[%s774_s1 + $0x110] sm:$0xff]   ;;  %v631_v51 = vld [vmem:[%s774_s1 + $0x118] sm:$0xff]  }
   0xe   :  { %559 = vmatprep.subr.bf16.mxu1 %v609_v14  ;;  %v132_v43 = vrot.slane %v111_v41, %v102_v34  ;;  %v133_v45 = vcombine.high %v118_v42, %v118_v42  ;;  %v125_v52 = vrot.slane %v110_v50, %v102_v34 }
   0xf   :  { %538 = vmatpush3.bf16.msra.mxu0 %v608_v13 }
  0x10   :  { %539 = vmatprep.subr.bf16.mxu0 %v611_v16  ;;  %391 = vmatprep.mubr.bf16.mxu0 %v132_v43  ;;  %v134_v46 = vcombine.high %v132_v43, %v132_v43 }
  0x11   :  { %560 = vmatpush3.bf16.msra.mxu1 %v610_v15 }
  0x12   :  { %561 = vmatprep.subr.bf16.mxu1 %v613_v18  ;;  %431 = vmatprep.mubr.bf16.mxu1 %v134_v46 }
  0x13   :  { %540 = vmatpush3.bf16.msra.mxu0 %v612_v17 }
  0x14   :  { %541 = vmatprep.subr.bf16.mxu0 %v615_v20 }
  0x15   :  { %562 = vmatpush3.bf16.msra.mxu1 %v614_v19 }
  0x16   :  { %563 = vmatprep.subr.bf16.mxu1 %v617_v25 }
  0x17   :  { %542 = vmatpush3.bf16.msra.mxu0 %v616_v24 }
  0x18   :  { %543 = vmatprep.subr.bf16.mxu0 %v619_v27 }
  0x19   :  { %564 = vmatpush3.bf16.msra.mxu1 %v618_v26 }
  0x1a   :  { %565 = vmatprep.subr.bf16.mxu1 %v621_v31 }
  0x1b   :  { %544 = vmatpush3.bf16.msra.mxu0 %v620_v30 }
  0x1c   :  { %545 = vmatprep.subr.bf16.mxu0 %v623_v33 }
  0x1d   :  { %566 = vmatpush3.bf16.msra.mxu1 %v622_v32 }
  0x1e   :  { %567 = vmatprep.subr.bf16.mxu1 %v625_v36 }
  0x1f   :  { %546 = vmatpush3.bf16.msra.mxu0 %v624_v35 }
  0x20   :  { %580 = vmatprep.subr.bf16.mxu0 %v635_v40 }
  0x21   :  { %568 = vmatpush3.bf16.msra.mxu1 %v627_v39 }
  0x22   :  { %392 = vmatmul.mubr.bf16.vlgmr.msra.gmra.mrb[0].mxu0 %v118_v42 }
  0x23   :  { %581 = vmatpush3.bf16.msra.mxu0 %v628_v44  ;;  %588 = vmatprep.mubr.msk.bf16.mxu0 %vm636_vm0, %v635_v40 }
  0x24   :  { %432 = vmatmul.mubr.bf16.vlgmr.msra.gmra.mrb[0].mxu1 %v133_v45  ;;  %582 = vmatprep.subr.bf16.mxu0 %v635_v40 }
  0x27   :  { %583 = vmatpush3.bf16.msra.mxu0 %v629_v47 }
  0x28   :  { %584 = vmatprep.subr.bf16.mxu0 %v635_v40 }
  0x2b   :  { %585 = vmatpush3.bf16.msra.mxu0 %v630_v49 }
  0x2c   :  { %586 = vmatprep.subr.bf16.mxu0 %v635_v40 }
  0x2f   :  { %587 = vmatpush3.bf16.msra.mxu0 %v631_v51 }
  0x32   :  { %589 = vmatmul.mubr.msk.bf16.vlgmr.msra.gmra.mrb[4].mxu0 %vm355_vm1, %v125_v52 }
  0xf5   :  { %v547_v53 = vpop.f32.mrb[0].mxu0 }
  0xf6   :  { %v548_v55 = vpop.f32.mrb[1].mxu0 }
  0xf7   :  { %v549_v56 = vadd.f32 %v548_v55, %v547_v53  ;;  %v550_v57 = vpop.f32.mrb[2].mxu0  ;;  %v569_v58 = vpop.f32.mrb[0].mxu1 }
  0xf8   :  { %v551_v59 = vpop.f32.mrb[3].mxu0  ;;  %v570_v60 = vpop.f32.mrb[1].mxu1 }
  0xf9   :  { %v394_v61 = vadd.f32 %v549_v56, %v492_v54  ;;  %v571_v62 = vadd.f32 %v570_v60, %v569_v58  ;;  %v572_v63 = vpop.f32.mrb[2].mxu1 }
  0xfa   :  { %v573_v0 = vpop.f32.mrb[3].mxu1 }
  0xfb   :  { %v434_v1 = vadd.f32 %v571_v62, %v394_v61 }
 0x105   :  { %v473_v2 = vpop.f32.mrb[4].mxu0 }
 0x106   :  { %v474_v3 = vadd.f32 %v473_v2, %v434_v1  ;;  %v590_v4 = vpop.f32.mrb[5].mxu0 }
 0x107   :  { %v476_v5 = vpop.f32.mrb[6].mxu0 }
 0x108   :  { %v480_v6 = vmin.f32 %v474_v3, 0.0  ;;  %v591_v7 = vpop.f32.mrb[7].mxu0  ;;  %vm479_vm2 = vcmp.gt.f32.partialorder %v474_v3, 0.0 }
 0x10a   :  { %v481_v8 = vmul.f32 1.442695, %v480_v6 }
 0x10c   :  { %632 = vpow2.f32 %v481_v8 }
 0x116   :  { %v633_v9 = vpop.eup %632 }
 0x117   :  { %v530_v10 = vadd.f32 -1.0, %v633_v9 }
 0x119   :  { %v484_v11 = vsel %vm479_vm2, %v474_v3, %v530_v10 }
 0x11a   :  { %v485_v12 = vpack.c.bf16 %v484_v11, %v484_v11 }
 0x11c   :  { %487 = vst.msk [vmem:[%s777_s3] sm:$0x1] %vm486_vm3, %v485_v12 }

// kernel: discrete_policy_cnn_forward.11
= control target key start
LH: loop header
LB: loop body
LE: loop exit
PB: predicated region body
PF: predicated region fallthrough
CT: control target
= control target key end

     0   :  { %v369_v1 = vmov 0.0   ;;  %vm370_vm0 = vmmov 0   ;;  %s465_s0 = inlined_call_operand.vmem [shape: bf16[2,64], index: 0, kind: input, shape index: {}]   ;;  %s466_s1 = inlined_call_operand.vmem [shape: bf16[64,32], index: 1, kind: input, shape index: {}]   ;;  %s467_s2 = inlined_call_operand.vmem [shape: f32[1,32], index: 2, kind: input, shape index: {}]   ;;  %s468_s3 = inlined_call_operand.vmem [shape: bf16[32,32], index: 3, kind: input, shape index: {}]   ;;  %s469_s4 = inlined_call_operand.vmem [shape: f32[1,32], index: 4, kind: input, shape index: {}]   ;;  %s470_s5 = inlined_call_operand.vmem [shape: bf16[32,8], index: 5, kind: input, shape index: {}]   ;;  %s471_s6 = inlined_call_operand.vmem [shape: f32[1,8], index: 6, kind: input, shape index: {}]   ;;  %s472_s7 = inlined_call_operand.hbm [shape: f32[2,8], index: 7, kind: output, shape index: {}]  }
   0x1   :  { %v333_v0 = vld [vmem:[%s466_s1] sm:$0xff]   ;;  %302 = vmatprep.subr.bf16.mxu0 %v369_v1  ;;  %314 = vmatprep.subr.bf16.mxu1 %v369_v1  ;;  %v334_v2 = vld [vmem:[%s466_s1 + $0x8] sm:$0xff]   ;;  %v335_v3 = vld [vmem:[%s466_s1 + $0x10] sm:$0xff]  }
   0x2   :  { %303 = vmatpush3.bf16.msra.mxu0 %v333_v0  ;;  %310 = vmatprep.mubr.msk.bf16.mxu0 %vm370_vm0, %v369_v1 }
   0x3   :  { %304 = vmatprep.subr.bf16.mxu0 %v369_v1  ;;  %318 = vmatprep.mubr.msk.bf16.mxu1 %vm370_vm0, %v369_v1 }
   0x6   :  { %305 = vmatpush3.bf16.msra.mxu0 %v334_v2 }
   0x7   :  { %306 = vmatprep.subr.bf16.mxu0 %v369_v1 }
   0x8   :  { %12 = vsyncpa [#allocation3], 0  ;;  %v336_v4 = vld [vmem:[%s466_s1 + $0x18] sm:$0xff]   ;;  %v28_v5 = vld [vmem:[%s465_s0] sm:$0x1]  ;;  %vm68_vm1 = vcmask 523264  }
   0x9   :  { %v337_v6 = vld [vmem:[%s468_s3] sm:$0xff]   ;;  %v338_v7 = vld [vmem:[%s468_s3 + $0x8] sm:$0xff]   ;;  %vm142_vm3 = vcmask 261120   ;;  %vm259_vm5 = vcmask 58368  }
   0xa   :  { %307 = vmatpush3.bf16.msra.mxu0 %v335_v3  ;;  %315 = vmatpush3.bf16.msra.mxu1 %v337_v6  ;;  %v275_v8 = vld [vmem:[%s467_s2] ss:$0 sm:$0xff]  ;;  %v340_v21 = vld [vmem:[%s470_s5 + $0x8] sm:$0xff]  }
   0xb   :  { %308 = vmatprep.subr.bf16.mxu0 %v369_v1  ;;  %316 = vmatprep.subr.bf16.mxu1 %v369_v1  ;;  %v339_v20 = vld [vmem:[%s470_s5] sm:$0xff]  }
   0xc   :  { %v282_v22 = vld [vmem:[%s469_s4] ss:$0 sm:$0xff]  ;;  %s371_s4 = smov [#allocation2]  }
   0xd   :  { %v287_v34 = vld [vmem:[%s471_s6] ss:$0 sm:$0xff]  ;;  %s267_s20 = sshll.u32 %s371_s4, 4  ;;  %s268_s20 = int_to_ptr.vmem [resolvable:$true] %s267_s20 }
   0xe   :  { %309 = vmatpush3.bf16.msra.mxu0 %v336_v4  ;;  %317 = vmatpush3.bf16.msra.mxu1 %v338_v7  ;;  %s345_s21 = scalar_lea.vmem %s268_s20, 32  ;;  %p350_p1 = scmp.lt.s32.totalorder %s268_s20, %s268_s20 }
   0xf   :  { %322 = vmatprep.subr.bf16.mxu1 %v369_v1  ;;  %p346_p0 = scmp.ne.s32.totalorder %s268_s20, %s345_s21  ;;  %p351_p2 = scmp.lt.s32.totalorder %s345_s21, %s345_s21 }
  0x11   :  { %311 = vmatmul.mubr.msk.bf16.vlgmr.msra.gmra.mrb[0].mxu0 %vm68_vm1, %v28_v5  ;;  %p352_p3 = por %p351_p2, %p350_p1 }
  0x13   :  { %p353_p4 = pnand %p352_p3, %p346_p0 }
  0xe4   :  { %v106_v9 = vpop.f32.mrb[0].mxu0 }
  0xe5   :  { %v107_v10 = vadd.f32 %v275_v8, %v106_v9  ;;  %v312_v11 = vpop.f32.mrb[1].mxu0 }
  0xe6   :  { %v109_v12 = vpop.f32.mrb[2].mxu0 }
  0xe7   :  { %v113_v13 = vmin.f32 %v107_v10, 0.0  ;;  %v313_v14 = vpop.f32.mrb[3].mxu0  ;;  %vm112_vm2 = vcmp.gt.f32.partialorder %v107_v10, 0.0 }
  0xe9   :  { %v114_v15 = vmul.f32 1.442695, %v113_v13 }
  0xeb   :  { %341 = vpow2.f32 %v114_v15 }
  0xf5   :  { %v342_v16 = vpop.eup %341 }
  0xf6   :  { %v281_v17 = vadd.f32 -1.0, %v342_v16 }
  0xf8   :  { %v117_v18 = vsel %vm112_vm2, %v107_v10, %v281_v17 }
  0xf9   :  { %v118_v19 = vpack.c.bf16 %v117_v18, %v117_v18 }
  0xfb   :  { %319 = vmatmul.mubr.msk.bf16.vlgmr.msra.gmra.mrb[0].mxu1 %vm142_vm3, %v118_v19 }
  0xfc   :  { %326 = vmatprep.mubr.msk.bf16.mxu1 %vm370_vm0, %v369_v1  ;;  %323 = vmatpush3.bf16.msra.mxu1 %v339_v20 }
  0xfd   :  { %324 = vmatprep.subr.bf16.mxu1 %v369_v1 }
 0x100   :  { %325 = vmatpush3.bf16.msra.mxu1 %v340_v21 }
 0x1ce   :  { %v180_v23 = vpop.f32.mrb[0].mxu1 }
 0x1cf   :  { %v181_v24 = vadd.f32 %v282_v22, %v180_v23  ;;  %v320_v25 = vpop.f32.mrb[1].mxu1 }
 0x1d0   :  { %v183_v26 = vpop.f32.mrb[2].mxu1 }
 0x1d1   :  { %v187_v27 = vmin.f32 %v181_v24, 0.0  ;;  %v321_v28 = vpop.f32.mrb[3].mxu1  ;;  %vm186_vm4 = vcmp.gt.f32.partialorder %v181_v24, 0.0 }
 0x1d3   :  { %v188_v29 = vmul.f32 1.442695, %v187_v27 }
 0x1d5   :  { %343 = vpow2.f32 %v188_v29 }
 0x1df   :  { %v344_v30 = vpop.eup %343 }
 0x1e0   :  { %v286_v31 = vadd.f32 -1.0, %v344_v30 }
 0x1e2   :  { %v191_v32 = vsel %vm186_vm4, %v181_v24, %v286_v31 }
 0x1e3   :  { %v192_v33 = vpack.c.bf16 %v191_v32, %v191_v32 }
 0x1e5   :  { %327 = vmatmul.mubr.msk.bf16.vlgmr.msra.gmra.mrb[4].mxu1 %vm142_vm3, %v192_v33 }
 0x2b8   :  { %v253_v35 = vpop.f32.mrb[4].mxu1 }
 0x2b9   :  { %v254_v36 = vadd.f32 %v287_v34, %v253_v35  ;;  %v328_v37 = vpop.f32.mrb[5].mxu1 }
 0x2ba   :  { %v256_v38 = vpop.f32.mrb[6].mxu1 }
 0x2bb   :  { %v329_v39 = vpop.f32.mrb[7].mxu1  ;;  %260 = vst.msk [vmem:[#allocation2] sm:$0x3] %vm259_vm5, %v254_v36 }
 0x2bc   :  { %356 = shalt.err (!%p353_p4)
}
 0x2bd   :  { %s357_s6 = scalar_lea.hbm %s472_s7, 32 }
 0x2be   :  { %p358_p5 = scmp.ne.s32.totalorder %s472_s7, %s357_s6  ;;  %p361_p6 = scmp.lt.u32.totalorder %s357_s6, %s472_s7 }
 0x2c0   :  { %p363_p7 = pnand %p361_p6, %p358_p5 }
 0x2c2   :  { %366 = shalt.err (!%p363_p7)
}
 0x2c3   :  { %270 = dma.vmem_to_hbm [thread:$0]  %s268_s20, 32, %s472_s7, [#allocation3]  }
 0x2c4   :  { %367 = dma.done.wait [#allocation3], 32  }
 0x2c5   :  { %368 = vsyncadd [#allocation3], 4294967264 }
 0x2c6   :  { %274 = vsyncpa [#allocation3], 1 }

</bundles_post_ra>
